<compile_context>
chip_gen: v7x
topology: tpu7x:2x2x1
jax: 0.10.0
libtpu: 0.0.40
codegen_flags: <defaults>
</compile_context>

<pallas_src>
import jax
import jax.numpy as jnp
from jax.experimental import pallas as pl
from jax.experimental.pallas import tpu as pltpu

D = 768        # embedding dim (codet5-base hidden / GGNN embedding_dim)
H = 2 * D      # classifier hidden size (768 * 2)
C = 2          # number of classes
TN = 768       # N-tile of the dense layer (2 tiles)


def _fused_head_kernel(g_ref, t_ref, wd_ref, bd_ref, wo_ref, bo_ref, lab_ref,
                       prob_ref, loss_ref,
                       gn_ref, tn_ref, acc_ref):
    """Per-N-tile: dense(1536,1536) tile -> tanh -> partial out_proj logits,
    accumulated in VMEM; softmax + CE fused into the last grid step."""
    i = pl.program_id(0)

    # ---- init (tile 0): normalize features once, zero the logit accumulator.
    @pl.when(i == 0)
    def _init():
        g = g_ref[...]                                                # [B, D] f32
        t = t_ref[...]                                                # [B, D] f32
        # L2 normalization: x / x.norm(dim=-1, keepdim=True) (rsqrt -> EUP).
        # No epsilon, matching PyTorch x / x.norm() semantics.
        g = g * jax.lax.rsqrt(jnp.sum(g * g, axis=-1, keepdims=True))
        t = t * jax.lax.rsqrt(jnp.sum(t * t, axis=-1, keepdims=True))
        gn_ref[...] = g.astype(jnp.bfloat16)
        tn_ref[...] = t.astype(jnp.bfloat16)
        acc_ref[...] = jnp.zeros_like(acc_ref)

    # ---- split matmul instead of concatenating [g, t]:
    #   h_tile = g_n @ Wd[:D, tile] + t_n @ Wd[D:, tile] + bd[tile]
    # Static ref slices are zero-cost views; weights bf16, accumulation f32.
    w_top = wd_ref[pl.ds(0, D), :]                                    # bf16 [D, TN]
    w_bot = wd_ref[pl.ds(D, D), :]                                    # bf16 [D, TN]
    h = jnp.dot(gn_ref[...], w_top, preferred_element_type=jnp.float32)
    h = h + jnp.dot(tn_ref[...], w_bot, preferred_element_type=jnp.float32)
    h = jnp.tanh(h + bd_ref[...])                                     # [B, TN] f32

    # ---- partial out_proj: this tile's rows of W_out (bf16 x bf16, f32 acc).
    acc_ref[...] += jnp.dot(h.astype(jnp.bfloat16), wo_ref[...],
                            preferred_element_type=jnp.float32)       # [B, C]

    # ---- finalize (last tile): bias + softmax + mean cross-entropy.
    @pl.when(i == pl.num_programs(0) - 1)
    def _finalize():
        logits = acc_ref[...] + bo_ref[...]                           # [B, C]
        m = jnp.max(logits, axis=-1, keepdims=True)
        e = jnp.exp(logits - m)
        denom = jnp.sum(e, axis=-1, keepdims=True)
        prob_ref[...] = e / denom

        # CrossEntropyLoss (mean reduction): pick log-prob of the label class.
        # TODO(synk): PyTorch's default ignore_index=-100 is not handled.
        logp = (logits - m) - jnp.log(denom)                          # [B, C]
        cls = jax.lax.broadcasted_iota(jnp.int32, logp.shape, 1)      # [B, C]
        mask = cls == lab_ref[...]                                    # int32 compare
        nll = -jnp.sum(jnp.where(mask, logp, 0.0), axis=-1,
                       keepdims=True)                                 # [B, 1]
        loss_ref[0, 0] = jnp.sum(nll) / logp.shape[0]


def classification_concat_forward(graph_feat, text_feat, label,
                                  w_dense, b_dense, w_out, b_out):
    """graph_feat, text_feat: [B, 768] f32; label: [B] int. Returns (loss, prob)."""
    B = graph_feat.shape[0]
    n_tiles = H // TN

    # Pre-layout outside the hot path: bf16 weights; W_dense tile-major so each
    # column tile is a contiguous HBM read: [n_tiles, H, TN].
    wd = w_dense.astype(jnp.bfloat16).reshape(H, n_tiles, TN).transpose(1, 0, 2)
    wo = w_out.astype(jnp.bfloat16)                                   # [H, C]
    bd = b_dense.reshape(1, H).astype(jnp.float32)
    bo = b_out.reshape(1, C).astype(jnp.float32)
    lab = label.astype(jnp.int32).reshape(B, 1)                       # no one-hot

    cost = pl.CostEstimate(
        flops=2 * B * H * H + 2 * B * H * C,
        transcendentals=B * H + B * C,
        bytes_accessed=2 * H * H + 2 * H * C + 4 * (2 * B * D + B * C + H + C))

    # Single fused kernel. The 2-tile reduction axis is "arbitrary" (sequential
    # accumulation into VMEM scratch); the weight DMA of tile i+1 overlaps the
    # compute of tile i via BlockSpec pipelining.  On v7x a 2-way "parallel"
    # split of this axis would stream one weight half per TensorCore, but that
    # precludes in-kernel fusion of the epilogue; single-TC fusion wins on
    # v5e/v6e where launch overhead dominates.
    prob, loss = pl.pallas_call(
        _fused_head_kernel,
        grid=(n_tiles,),
        in_specs=[pl.BlockSpec((B, D), lambda i: (0, 0)),      # graph features
                  pl.BlockSpec((B, D), lambda i: (0, 0)),      # text features
                  pl.BlockSpec((None, H, TN), lambda i: (i, 0, 0)),  # dense W tile (bf16)
                  pl.BlockSpec((1, TN), lambda i: (0, i)),     # dense bias tile
                  pl.BlockSpec((TN, C), lambda i: (i, 0)),     # out_proj W tile (bf16)
                  pl.BlockSpec((1, C), lambda i: (0, 0)),      # out_proj bias
                  pl.BlockSpec((B, 1), lambda i: (0, 0))],     # int32 labels
        out_specs=[pl.BlockSpec((B, C), lambda i: (0, 0)),
                   pl.BlockSpec(memory_space=pltpu.MemorySpace.SMEM)],
        out_shape=[jax.ShapeDtypeStruct((B, C), jnp.float32),
                   jax.ShapeDtypeStruct((1, 1), jnp.float32)],
        scratch_shapes=[pltpu.VMEM((B, D), jnp.bfloat16),      # normalized graph feats
                        pltpu.VMEM((B, D), jnp.bfloat16),      # normalized text feats
                        pltpu.VMEM((B, C), jnp.float32)],      # logit accumulator
        compiler_params=pltpu.CompilerParams(
            dimension_semantics=("arbitrary",)),
        cost_estimate=cost,
    )(graph_feat, text_feat, wd, bd, wo, bo, lab)
    return loss[0, 0], prob


def _reference_forward(graph_feat, text_feat, label, w_dense, b_dense, w_out, b_out):
    g = graph_feat / jnp.linalg.norm(graph_feat, axis=-1, keepdims=True)
    t = text_feat / jnp.linalg.norm(text_feat, axis=-1, keepdims=True)
    vec = jnp.concatenate([g, t], axis=-1)
    h = jnp.tanh(vec @ w_dense + b_dense)
    logits = h @ w_out + b_out
    prob = jax.nn.softmax(logits, axis=-1)
    logp = jax.nn.log_softmax(logits, axis=-1)
    loss = -jnp.mean(jnp.take_along_axis(logp, label[:, None], axis=-1))
    return loss, prob


if __name__ == "__main__":
    key = jax.random.PRNGKey(0)
    kg, kt, kw1, kw2, kl = jax.random.split(key, 5)

    B = 2
    # Surrogate encoder outputs (see TODO(synk) above).
    graph_feat = jax.random.normal(kg, (B, D), jnp.float32)
    text_feat = jax.random.normal(kt, (B, D), jnp.float32)
    label = jax.random.randint(kl, (B,), 0, C, dtype=jnp.int32)

    # Deterministic classifier-head parameters (RobertaClassificationHead shapes).
    w_dense = jax.random.normal(kw1, (H, H), jnp.float32) * 0.02     # Linear(1536,1536)
    b_dense = jnp.zeros((H,), jnp.float32)
    w_out = jax.random.normal(kw2, (H, C), jnp.float32) * 0.02       # Linear(1536,2)
    b_out = jnp.zeros((C,), jnp.float32)

    loss, prob = classification_concat_forward(graph_feat, text_feat, label,
                                               w_dense, b_dense, w_out, b_out)
    jax.block_until_ready((loss, prob))
    assert prob.shape == (B, C) and loss.shape == ()

    # Sanity check vs f32 JAX reference (bf16 weights -> loose tolerance).
    ref_loss, ref_prob = _reference_forward(graph_feat, text_feat, label,
                                            w_dense, b_dense, w_out, b_out)
    assert jnp.allclose(prob, ref_prob, atol=5e-2), (prob, ref_prob)
    assert jnp.allclose(loss, ref_loss, atol=5e-2), (loss, ref_loss)

    print("KERNEL_OK")
</pallas_src>

<mosaic_0001>
module attributes {stable_mosaic.version = 11 : i64} {
  func.func @_fused_head_kernel(%arg0: i32, %arg1: memref<2x768xf32, #tpu.memory_space<vmem>>, %arg2: memref<2x768xf32, #tpu.memory_space<vmem>>, %arg3: memref<1x1536x768xbf16, #tpu.memory_space<vmem>>, %arg4: memref<1x768xf32, #tpu.memory_space<vmem>>, %arg5: memref<768x2xbf16, #tpu.memory_space<vmem>>, %arg6: memref<1x2xf32, #tpu.memory_space<vmem>>, %arg7: memref<2x1xi32, #tpu.memory_space<vmem>>, %arg8: memref<2x2xf32, #tpu.memory_space<vmem>>, %arg9: memref<1x1xf32, #tpu.memory_space<smem>>, %arg10: memref<2x768xbf16, #tpu.memory_space<vmem>>, %arg11: memref<2x768xbf16, #tpu.memory_space<vmem>>, %arg12: memref<2x2xf32, #tpu.memory_space<vmem>>) attributes {dimension_semantics = [#tpu.dimension_semantics<arbitrary>], iteration_bounds = array<i64: 2>, scalar_prefetch = 0 : i64, scratch_operands = 3 : i64, tpu.core_type = #tpu.core_type<tc>, window_params = [{pipeline_mode = #tpu.pipeline_mode<synchronous>, transform_indices = @transform_0, window_bounds = array<i64: 2, 768>}, {pipeline_mode = #tpu.pipeline_mode<synchronous>, transform_indices = @transform_1, window_bounds = array<i64: 2, 768>}, {transform_indices = @transform_2, window_bounds = array<i64: 1, 1536, 768>}, {transform_indices = @transform_3, window_bounds = array<i64: 1, 768>}, {transform_indices = @transform_4, window_bounds = array<i64: 768, 2>}, {pipeline_mode = #tpu.pipeline_mode<synchronous>, transform_indices = @transform_5, window_bounds = array<i64: 1, 2>}, {pipeline_mode = #tpu.pipeline_mode<synchronous>, transform_indices = @transform_6, window_bounds = array<i64: 2, 1>}, {pipeline_mode = #tpu.pipeline_mode<synchronous>, transform_indices = @transform_7, window_bounds = array<i64: 2, 2>}, {transform_indices = @transform_8, window_bounds = array<i64: 1, 1>}]} {
    %c0_i32 = arith.constant 0 : i32
    %0 = arith.cmpi eq, %arg0, %c0_i32 : i32
    %1 = arith.extui %0 : i1 to i32
    %c0_i32_0 = arith.constant 0 : i32
    %2 = arith.cmpi ne, %1, %c0_i32_0 : i32
    scf.if %2 {
      %c0_20 = arith.constant 0 : index
      %c0_21 = arith.constant 0 : index
      %25 = vector.load %arg1[%c0_20, %c0_21] : memref<2x768xf32, #tpu.memory_space<vmem>>, vector<2x768xf32>
      %c0_22 = arith.constant 0 : index
      %c0_23 = arith.constant 0 : index
      %26 = vector.load %arg2[%c0_22, %c0_23] : memref<2x768xf32, #tpu.memory_space<vmem>>, vector<2x768xf32>
      %27 = arith.mulf %25, %25 : vector<2x768xf32>
      %cst_24 = arith.constant dense<0.000000e+00> : vector<2xf32>
      %28 = vector.multi_reduction <add>, %27, %cst_24 [1] : vector<2x768xf32> to vector<2xf32>
      %29 = vector.shape_cast %28 : vector<2xf32> to vector<2x1xf32>
      %30 = math.rsqrt %29 : vector<2x1xf32>
      %31 = vector.broadcast %30 : vector<2x1xf32> to vector<2x768xf32>
      %32 = arith.mulf %25, %31 : vector<2x768xf32>
      %33 = arith.mulf %26, %26 : vector<2x768xf32>
      %cst_25 = arith.constant dense<0.000000e+00> : vector<2xf32>
      %34 = vector.multi_reduction <add>, %33, %cst_25 [1] : vector<2x768xf32> to vector<2xf32>
      %35 = vector.shape_cast %34 : vector<2xf32> to vector<2x1xf32>
      %36 = math.rsqrt %35 : vector<2x1xf32>
      %37 = vector.broadcast %36 : vector<2x1xf32> to vector<2x768xf32>
      %38 = arith.mulf %26, %37 : vector<2x768xf32>
      %39 = arith.truncf %32 : vector<2x768xf32> to vector<2x768xbf16>
      %c0_26 = arith.constant 0 : index
      %c0_27 = arith.constant 0 : index
      %40 = vector.load %arg10[%c0_26, %c0_27] : memref<2x768xbf16, #tpu.memory_space<vmem>>, vector<2x768xbf16>
      tpu.vector_store %arg10[%c0_26, %c0_27], %39 {strides = array<i32>} : memref<2x768xbf16, #tpu.memory_space<vmem>>, vector<2x768xbf16>,
      %41 = arith.truncf %38 : vector<2x768xf32> to vector<2x768xbf16>
      %c0_28 = arith.constant 0 : index
      %c0_29 = arith.constant 0 : index
      %42 = vector.load %arg11[%c0_28, %c0_29] : memref<2x768xbf16, #tpu.memory_space<vmem>>, vector<2x768xbf16>
      tpu.vector_store %arg11[%c0_28, %c0_29], %41 {strides = array<i32>} : memref<2x768xbf16, #tpu.memory_space<vmem>>, vector<2x768xbf16>,
      %cst_30 = arith.constant 0.000000e+00 : f32
      %43 = vector.broadcast %cst_30 : f32 to vector<2x2xf32>
      %c0_31 = arith.constant 0 : index
      %c0_32 = arith.constant 0 : index
      %44 = vector.load %arg12[%c0_31, %c0_32] : memref<2x2xf32, #tpu.memory_space<vmem>>, vector<2x2xf32>
      tpu.vector_store %arg12[%c0_31, %c0_32], %43 {strides = array<i32>} : memref<2x2xf32, #tpu.memory_space<vmem>>, vector<2x2xf32>,
    } else {
    }
    %c0 = arith.constant 0 : index
    %c0_1 = arith.constant 0 : index
    %c0_2 = arith.constant 0 : index
    %3 = vector.load %arg3[%c0, %c0_1, %c0_2] : memref<1x1536x768xbf16, #tpu.memory_space<vmem>>, vector<1x768x768xbf16>
    %4 = vector.shape_cast %3 : vector<1x768x768xbf16> to vector<768x768xbf16>
    %c0_3 = arith.constant 0 : index
    %c768 = arith.constant 768 : index
    %c0_4 = arith.constant 0 : index
    %5 = vector.load %arg3[%c0_3, %c768, %c0_4] : memref<1x1536x768xbf16, #tpu.memory_space<vmem>>, vector<1x768x768xbf16>
    %6 = vector.shape_cast %5 : vector<1x768x768xbf16> to vector<768x768xbf16>
    %c0_5 = arith.constant 0 : index
    %c0_6 = arith.constant 0 : index
    %7 = vector.load %arg10[%c0_5, %c0_6] : memref<2x768xbf16, #tpu.memory_space<vmem>>, vector<2x768xbf16>
    %cst = arith.constant dense<0.000000e+00> : vector<2x768xf32>
    %8 = tpu.matmul %7, %4, %cst {dimension_numbers = #tpu.dot_dimension_numbers<[1], [0], [0], [1], [0, 0, 1, 1], [], []>} : vector<2x768xbf16>, vector<768x768xbf16>, vector<2x768xf32> -> vector<2x768xf32>
    %c0_7 = arith.constant 0 : index
    %c0_8 = arith.constant 0 : index
    %9 = vector.load %arg11[%c0_7, %c0_8] : memref<2x768xbf16, #tpu.memory_space<vmem>>, vector<2x768xbf16>
    %cst_9 = arith.constant dense<0.000000e+00> : vector<2x768xf32>
    %10 = tpu.matmul %9, %6, %cst_9 {dimension_numbers = #tpu.dot_dimension_numbers<[1], [0], [0], [1], [0, 0, 1, 1], [], []>} : vector<2x768xbf16>, vector<768x768xbf16>, vector<2x768xf32> -> vector<2x768xf32>
    %11 = arith.addf %8, %10 : vector<2x768xf32>
    %c0_10 = arith.constant 0 : index
    %c0_11 = arith.constant 0 : index
    %12 = vector.load %arg4[%c0_10, %c0_11] : memref<1x768xf32, #tpu.memory_space<vmem>>, vector<1x768xf32>
    %13 = vector.broadcast %12 : vector<1x768xf32> to vector<2x768xf32>
    %14 = arith.addf %11, %13 : vector<2x768xf32>
    %15 = math.tanh %14 : vector<2x768xf32>
    %c0_12 = arith.constant 0 : index
    %c0_13 = arith.constant 0 : index
    %16 = vector.load %arg12[%c0_12, %c0_13] : memref<2x2xf32, #tpu.memory_space<vmem>>, vector<2x2xf32>
    %17 = arith.truncf %15 : vector<2x768xf32> to vector<2x768xbf16>
    %c0_14 = arith.constant 0 : index
    %c0_15 = arith.constant 0 : index
    %18 = vector.load %arg5[%c0_14, %c0_15] : memref<768x2xbf16, #tpu.memory_space<vmem>>, vector<768x2xbf16>
    %cst_16 = arith.constant dense<0.000000e+00> : vector<2x2xf32>
    %19 = tpu.matmul %17, %18, %cst_16 {dimension_numbers = #tpu.dot_dimension_numbers<[1], [0], [0], [1], [0, 0, 1, 1], [], []>} : vector<2x768xbf16>, vector<768x2xbf16>, vector<2x2xf32> -> vector<2x2xf32>
    %20 = arith.addf %16, %19 : vector<2x2xf32>
    %c0_17 = arith.constant 0 : index
    %c0_18 = arith.constant 0 : index
    %21 = vector.load %arg12[%c0_17, %c0_18] : memref<2x2xf32, #tpu.memory_space<vmem>>, vector<2x2xf32>
    tpu.vector_store %arg12[%c0_17, %c0_18], %20 {strides = array<i32>} : memref<2x2xf32, #tpu.memory_space<vmem>>, vector<2x2xf32>,
    %c1_i32 = arith.constant 1 : i32
    %22 = arith.cmpi eq, %arg0, %c1_i32 : i32
    %23 = arith.extui %22 : i1 to i32
    %c0_i32_19 = arith.constant 0 : i32
    %24 = arith.cmpi ne, %23, %c0_i32_19 : i32
    scf.if %24 {
      %c0_20 = arith.constant 0 : index
      %c0_21 = arith.constant 0 : index
      %25 = vector.load %arg12[%c0_20, %c0_21] : memref<2x2xf32, #tpu.memory_space<vmem>>, vector<2x2xf32>
      %c0_22 = arith.constant 0 : index
      %c0_23 = arith.constant 0 : index
      %26 = vector.load %arg6[%c0_22, %c0_23] : memref<1x2xf32, #tpu.memory_space<vmem>>, vector<1x2xf32>
      %27 = vector.broadcast %26 : vector<1x2xf32> to vector<2x2xf32>
      %28 = arith.addf %25, %27 : vector<2x2xf32>
      %cst_24 = arith.constant dense<0xFF800000> : vector<2xf32>
      %29 = vector.multi_reduction <maximumf>, %28, %cst_24 [1] : vector<2x2xf32> to vector<2xf32>
      %30 = vector.shape_cast %29 : vector<2xf32> to vector<2x1xf32>
      %31 = vector.broadcast %30 : vector<2x1xf32> to vector<2x2xf32>
      %32 = arith.subf %28, %31 : vector<2x2xf32>
      %33 = math.exp %32 : vector<2x2xf32>
      %cst_25 = arith.constant dense<0.000000e+00> : vector<2xf32>
      %34 = vector.multi_reduction <add>, %33, %cst_25 [1] : vector<2x2xf32> to vector<2xf32>
      %35 = vector.shape_cast %34 : vector<2xf32> to vector<2x1xf32>
      %36 = vector.broadcast %35 : vector<2x1xf32> to vector<2x2xf32>
      %37 = arith.divf %33, %36 : vector<2x2xf32>
      %c0_26 = arith.constant 0 : index
      %c0_27 = arith.constant 0 : index
      %38 = vector.load %arg8[%c0_26, %c0_27] : memref<2x2xf32, #tpu.memory_space<vmem>>, vector<2x2xf32>
      tpu.vector_store %arg8[%c0_26, %c0_27], %37 {strides = array<i32>} : memref<2x2xf32, #tpu.memory_space<vmem>>, vector<2x2xf32>,
      %39 = vector.broadcast %30 : vector<2x1xf32> to vector<2x2xf32>
      %40 = arith.subf %28, %39 : vector<2x2xf32>
      %41 = math.log %35 : vector<2x1xf32>
      %42 = vector.broadcast %41 : vector<2x1xf32> to vector<2x2xf32>
      %43 = arith.subf %40, %42 : vector<2x2xf32>
      %44 = tpu.iota {dimensions = array<i32: 1>} : vector<2x2xi32>
      %c0_28 = arith.constant 0 : index
      %c0_29 = arith.constant 0 : index
      %45 = vector.load %arg7[%c0_28, %c0_29] : memref<2x1xi32, #tpu.memory_space<vmem>>, vector<2x1xi32>
      %46 = vector.broadcast %45 : vector<2x1xi32> to vector<2x2xi32>
      %47 = arith.cmpi eq, %44, %46 : vector<2x2xi32>
      %cst_30 = arith.constant 0.000000e+00 : f32
      %48 = vector.broadcast %cst_30 : f32 to vector<2x2xf32>
      %49 = arith.select %47, %43, %48 : vector<2x2xi1>, vector<2x2xf32>
      %cst_31 = arith.constant dense<0.000000e+00> : vector<2xf32>
      %50 = vector.multi_reduction <add>, %49, %cst_31 [1] : vector<2x2xf32> to vector<2xf32>
      %51 = vector.shape_cast %50 : vector<2xf32> to vector<2x1xf32>
      %cst_32 = arith.constant 0.000000e+00 : f32
      %52 = vector.broadcast %cst_32 : f32 to vector<2x1xf32>
      %53 = arith.subf %52, %51 : vector<2x1xf32>
      %54 = vector.shape_cast %53 : vector<2x1xf32> to vector<1x2x1xf32>
      %cst_33 = arith.constant dense<0.000000e+00> : vector<1xf32>
      %55 = vector.multi_reduction <add>, %54, %cst_33 [1, 2] : vector<1x2x1xf32> to vector<1xf32>
      %56 = vector.shape_cast %55 : vector<1xf32> to vector<1x1x1xf32>
      %57 = vector.extract %56[0, 0, 0] : f32 from vector<1x1x1xf32>
      %cst_34 = arith.constant 2.000000e+00 : f32
      %58 = arith.divf %57, %cst_34 : f32
      %c0_35 = arith.constant 0 : index
      %c0_36 = arith.constant 0 : index
      %59 = memref.load %arg9[%c0_35, %c0_36] : memref<1x1xf32, #tpu.memory_space<smem>>
      memref.store %58, %arg9[%c0_35, %c0_36] : memref<1x1xf32, #tpu.memory_space<smem>>
    } else {
    }
    return
  }
  func.func @transform_0(%arg0: i32) -> (i32, i32) {
    %c0_i32 = arith.constant 0 : i32
    %c0_i32_0 = arith.constant 0 : i32
    %c0_i32_1 = arith.constant 0 : i32
    return %c0_i32, %c0_i32_0 : i32, i32
  }
  func.func @transform_1(%arg0: i32) -> (i32, i32) {
    %c0_i32 = arith.constant 0 : i32
    %c0_i32_0 = arith.constant 0 : i32
    %c0_i32_1 = arith.constant 0 : i32
    return %c0_i32, %c0_i32_0 : i32, i32
  }
  func.func @transform_2(%arg0: i32) -> (i32, i32, i32) {
    %c0_i32 = arith.constant 0 : i32
    %c0_i32_0 = arith.constant 0 : i32
    %c0_i32_1 = arith.constant 0 : i32
    return %arg0, %c0_i32, %c0_i32_0 : i32, i32, i32
  }
  func.func @transform_3(%arg0: i32) -> (i32, i32) {
    %c0_i32 = arith.constant 0 : i32
    %c0_i32_0 = arith.constant 0 : i32
    return %c0_i32, %arg0 : i32, i32
  }
  func.func @transform_4(%arg0: i32) -> (i32, i32) {
    %c0_i32 = arith.constant 0 : i32
    %c0_i32_0 = arith.constant 0 : i32
    return %arg0, %c0_i32 : i32, i32
  }
  func.func @transform_5(%arg0: i32) -> (i32, i32) {
    %c0_i32 = arith.constant 0 : i32
    %c0_i32_0 = arith.constant 0 : i32
    %c0_i32_1 = arith.constant 0 : i32
    return %c0_i32, %c0_i32_0 : i32, i32
  }
  func.func @transform_6(%arg0: i32) -> (i32, i32) {
    %c0_i32 = arith.constant 0 : i32
    %c0_i32_0 = arith.constant 0 : i32
    %c0_i32_1 = arith.constant 0 : i32
    return %c0_i32, %c0_i32_0 : i32, i32
  }
  func.func @transform_7(%arg0: i32) -> (i32, i32) {
    %c0_i32 = arith.constant 0 : i32
    %c0_i32_0 = arith.constant 0 : i32
    %c0_i32_1 = arith.constant 0 : i32
    return %c0_i32, %c0_i32_0 : i32, i32
  }
  func.func @transform_8(%arg0: i32) -> (i32, i32) {
    %c0_i32 = arith.constant 0 : i32
    %c0_i32_0 = arith.constant 0 : i32
    %c0_i32_1 = arith.constant 0 : i32
    return %c0_i32, %c0_i32_0 : i32, i32
  }
}

</mosaic_0001>

<bundles_post_ra>
// kernel: tpu_custom_call.1
= control target key start
LH: loop header
LB: loop body
LE: loop exit
PB: predicated region body
PF: predicated region fallthrough
CT: control target
= control target key end

     0   :  { %s8977_s0 = inlined_call_operand.hbm [shape: f32[2,768], index: 0, kind: input, shape index: {}]   ;;  %s8978_s1 = inlined_call_operand.hbm [shape: f32[2,768], index: 1, kind: input, shape index: {}]   ;;  %s8979_s2 = inlined_call_operand.hbm [shape: bf16[2,1536,768], index: 2, kind: input, shape index: {}]   ;;  %s8980_s3 = inlined_call_operand.hbm [shape: f32[1,1536], index: 3, kind: input, shape index: {}]   ;;  %s8981_s4 = inlined_call_operand.vmem [shape: bf16[1536,2], index: 4, kind: input, shape index: {}]   ;;  %s8982_s5 = inlined_call_operand.hbm [shape: f32[1,2], index: 5, kind: input, shape index: {}]   ;;  %s8983_s6 = inlined_call_operand.vmem [shape: s32[2,1], index: 6, kind: input, shape index: {}]   ;;  %s8984_s7 = inlined_call_operand.hbm [shape: f32[2,2], index: 7, kind: output, shape index: {0}]   ;;  %s8985_s8 = inlined_call_operand.hbm [shape: f32[1,1], index: 8, kind: output, shape index: {1}]  }
   0x1   :  { %8992 = sst [smem:[#allocation22_spill]] %s8977_s0 }
   0x2   :  { %8993 = sst [smem:[#allocation23_spill]] %s8978_s1 }
   0x3   :  { %8994 = sst [smem:[#allocation24_spill]] %s8979_s2 }
   0x4   :  { %14 = vsyncpa [#allocation6], 0 }
   0x5   :  { %15 = vsyncpa [#allocation10], 0 }
   0x6   :  { %16 = vsyncpa [#allocation7], 0 }
   0x7   :  { %17 = vsyncpa [#allocation8], 0  ;;  %s7827_s27 = smov 0   ;;  %s7829_s28 = smov 0  }
   0x8   :  { %s7831_s29 = smov 0   ;;  %s7833_s30 = smov 0  }
   0x9 LB: > { %s7846_s9 = sadd.s32 4294967295, %s7765_s30   ;;  %s7849_s10 = sadd.s32 1, %s7765_s30   ;;  %s7765_s30 = sphi %s7833_s30, %s9020_s30   ;;  %s7761_s29 = sphi %s7831_s29, %s9019_s29   ;;  %s7757_s28 = sphi %s7829_s28, %s9018_s28   ;;  %s7753_s27 = sphi %s7827_s27, %s9017_s27  }
   0xa   : > { %s69_s11 = ssub.s32 %s7765_s30, %s7849_s10  ;;  %s72_s12 = sadd.s32 1, %s7761_s29 }
   0xb   : > { %p70_p0 = scmp.eq.s32.totalorder %s69_s11, 0  ;;  %p79_p1 = scmp.ne.s32.totalorder %s7761_s29, %s7757_s28 }
   0xc   : > { %p80_p2 = scmp.eq.s32.totalorder %s7765_s30, 0  ;;  %p85_p3 = scmp.ne.s32.totalorder %s7757_s28, %s7753_s27 }
   0xd   : > { %s7859_s13 = scalar_select %p70_p0, %s7761_s29, %s72_s12  }
   0xe   : > { %p7861_p4 = por %p80_p2, %p79_p1  ;;  %p8986_p5 = scmp.eq.s32.totalorder %s7846_s9, 0 }
   0xf   : > { %p5769_p6 = scmp.ge.s32.totalorder %s7765_s30, 1  ;;  %p232_p7 = scmp.lt.s32.totalorder %s7765_s30, 3 }
  0x10   : > { %p7870_p8 = por %p8986_p5, %p85_p3  ;;  %s7767_s17 = smov [#allocation5]  }
  0x11   : > { %p7875_p10 = pnand %p5769_p6, %p232_p7  ;;  %s245_s18 = sshll.u32 %s7767_s17, 4  ;;  %s246_s18 = int_to_ptr.vmem [resolvable:$true] %s245_s18 }
  0x12   : > { %s8996_s15 = scalar_select %p7870_p8, 1, 0 }
  0x13   : > { %s8997_s16 = scalar_select %p7875_p10, 1, 0 }
  0x14   : > { %p6518_p11 = pneg %p7875_p10  ;;  %p6538_p12 = scmp.lt.s32.totalorder %s7765_s30, 2 }
  0x15   : > { %s7768_s20 = smov [#allocation9]   ;;  %s9000_s0 = sld [smem:[#allocation22_spill]] }
  0x16   : > { %p7884_p13 = pnand %p6518_p11, %p8986_p5  ;;  %s256_s21 = sshll.u32 %s7768_s20, 4  ;;  %s7894_s21 = int_to_ptr.vmem [resolvable:$true] %s256_s21 }
  0x17   : > { %p7890_p0 = pnand %p6538_p12, %p7861_p4 }
  0x18   : > { %s8998_s19 = scalar_select %p7884_p13, 1, 0 }
  0x19   : > { %s8999_s22 = scalar_select %p7890_p0, 1, 0 }
  0x1a   : > { %p7905_p2 = pneg %p7884_p13 }
  0x1b   : > { %s7529_s26 = scalar_lea.hbm %s9000_s0, 192 }
  0x1c   : > { %p7530_p1 = scmp.ne.s32.totalorder %s9000_s0, %s7529_s26  ;;  %p7536_p6 = scmp.lt.u32.totalorder %s7529_s26, %s9000_s0 }
  0x1e   : > { %p7532_p3 = pnand %p7905_p2, %p7530_p1 }
  0x20   : > { %p7533_p4 = pneg %p7532_p3 }
  0x22   : > { %p7538_p7 = pnand %p7536_p6, %p7533_p4 }
  0x24   : > { %7541 = shalt.err (!%p7538_p7)
}
  0x25   : > { %s7542_s20 = scalar_lea.vmem %s246_s18, 192  ;;  %p7550_p5 = scmp.lt.s32.totalorder %s246_s18, %s246_s18 }
  0x26   : > { %p7543_p11 = scmp.ne.s32.totalorder %s246_s18, %s7542_s20  ;;  %p7551_p8 = scmp.lt.s32.totalorder %s7542_s20, %s7542_s20 }
  0x28   : > { %p7545_p12 = pnand %p7543_p11, %p7905_p2  ;;  %p7552_p10 = por %p7551_p8, %p7550_p5 }
  0x2a   : > { %p7546_p9 = pneg %p7545_p12 }
  0x2c   : > { %p7553_p0 = pnand %p7552_p10, %p7546_p9 }
  0x2e   : > { %7556 = shalt.err (!%p7553_p0)
}
  0x2f   : > { %6521 = dma.hbm_to_vmem [thread:$0]  (!%p7884_p13), %s9000_s0, 192, %s246_s18, [#allocation6]  }
  0x30   : > { %s9002_s1 = sld [smem:[#allocation23_spill]] }
  0x36   : > { %s7557_s11 = scalar_lea.hbm %s9002_s1, 192 }
  0x37   : > { %p7558_p1 = scmp.ne.s32.totalorder %s9002_s1, %s7557_s11  ;;  %p7564_p8 = scmp.lt.u32.totalorder %s7557_s11, %s9002_s1 }
  0x39   : > { %p7560_p3 = pnand %p7558_p1, %p7905_p2 }
  0x3b   : > { %p7561_p5 = pneg %p7560_p3 }
  0x3d   : > { %p7566_p9 = pnand %p7564_p8, %p7561_p5 }
  0x3f   : > { %7569 = shalt.err (!%p7566_p9)
}
  0x40   : > { %s7570_s18 = scalar_lea.vmem %s7894_s21, 192  ;;  %p7578_p6 = scmp.lt.s32.totalorder %s7894_s21, %s7894_s21 }
  0x41   : > { %p7571_p10 = scmp.ne.s32.totalorder %s7894_s21, %s7570_s18  ;;  %p7579_p7 = scmp.lt.s32.totalorder %s7570_s18, %s7570_s18 }
  0x43   : > { %p7573_p0 = pnand %p7571_p10, %p7905_p2  ;;  %p7580_p11 = por %p7579_p7, %p7578_p6 }
  0x45   : > { %p7574_p4 = pneg %p7573_p0 }
  0x47   : > { %p7581_p12 = pnand %p7580_p11, %p7574_p4 }
  0x49   : > { %7584 = shalt.err (!%p7581_p12)
}
  0x4a   : > { %6524 = dma.hbm_to_vmem [thread:$0]  (!%p7884_p13), %s9002_s1, 192, %s7894_s21, [#allocation10]  }
  0x4b   : > { %s8990_s25 = sand.u32 1, %s7761_s29   ;;  %s6488_s26 = smul.u32 73728, %s7765_s30 }
  0x4c   : > { %s6487_s27 = smul.u32 4608, %s8990_s25  ;;  %s9003_s2 = sld [smem:[#allocation24_spill]] }
  0x4d   : > { %s7769_s23 = smov [#allocation13]   ;;  %s9004_s21 = sand.u32 1, %s7765_s30  }
  0x4e   : > { %s285_s20 = scalar_lea.vmem [#allocation11], %s6487_s27  ;;  %s267_s24 = sshll.u32 %s7769_s23, 4  ;;  %s7955_s24 = int_to_ptr.vmem [resolvable:$true] %s267_s24 }
  0x4f   : > { %s292_s18 = sshll.u32 %s285_s20, 4  ;;  %s7959_s0 = scalar_lea.sflag [#allocation6], %s9004_s21  ;;  %s7953_s18 = int_to_ptr.vmem [resolvable:$true] %s292_s18 }
  0x50   : > { %p9005_p3 = scmp.ne.s32.totalorder %s8999_s22, 0 }
  0x52   : > { %s7951_s17 = scalar_lea.hbm %s9003_s2, %s6488_s26  ;;  %p7587_p5 = pneg %p9005_p3 }
  0x53   : > { %s7585_s25 = scalar_lea.hbm %s7951_s17, 73728  ;;  %s7590_s11 = scalar_lea.hbm %s9003_s2, 147456 }
  0x54   : > { %p7586_p1 = scmp.ne.s32.totalorder %s7951_s17, %s7585_s25  ;;  %p7591_p10 = scmp.lt.u32.totalorder %s7951_s17, %s9003_s2 }
  0x55   : > { %p7592_p0 = scmp.lt.u32.totalorder %s7590_s11, %s7585_s25  ;;  %p7594_p6 = scmp.lt.u32.totalorder %s7585_s25, %s7951_s17 }
  0x56   : > { %p7588_p8 = pnand %p7587_p5, %p7586_p1 }
  0x57   : > { %p7593_p4 = por %p7592_p0, %p7591_p10 }
  0x58   : > { %p7589_p9 = pneg %p7588_p8 }
  0x59   : > { %p7595_p7 = por %p7594_p6, %p7593_p4 }
  0x5b   : > { %p7596_p11 = pnand %p7595_p7, %p7589_p9 }
  0x5d   : > { %7599 = shalt.err (!%p7596_p11)
}
  0x5e   : > { %s7600_s23 = scalar_lea.vmem %s7953_s18, 73728  ;;  %s7770_s21 = smov [#allocation11]  }
  0x5f   : > { %p7601_p12 = scmp.ne.s32.totalorder %s7953_s18, %s7600_s23  ;;  %s7605_s26 = sshll.u32 %s7770_s21, 4  ;;  %s7606_s26 = int_to_ptr.vmem [resolvable:$false] %s7605_s26 }
  0x60   : > { %s7607_s27 = scalar_lea.vmem %s7606_s26, 147456  ;;  %p7608_p13 = scmp.lt.s32.totalorder %s7953_s18, %s7606_s26 }
  0x61   : > { %p7603_p1 = pnand %p7601_p12, %p7587_p5  ;;  %p7609_p10 = scmp.lt.s32.totalorder %s7607_s27, %s7600_s23 }
  0x63   : > { %p7604_p8 = pneg %p7603_p1  ;;  %p7610_p0 = por %p7609_p10, %p7608_p13 }
  0x65   : > { %p7611_p4 = pnand %p7610_p0, %p7604_p8 }
  0x67   : > { %7614 = shalt.err (!%p7611_p4)
}
  0x68   : > { %s7771_s25 = smov 384   ;;  %s7772_s11 = smov 24  }
  0x69   : > { %6531 = dma.hbm_to_vmem [thread:$0]  (!%p9005_p3), %s7951_s17, 73728, %s7953_s18, %s7959_s0, %s7771_s25, %s7771_s25, %s7772_s11  }
  0x6a   : > { %s7615_s21 = scalar_lea.hbm %s8982_s5, 16 }
  0x6b   : > { %p7616_p9 = scmp.ne.s32.totalorder %s8982_s5, %s7615_s21  ;;  %p7622_p7 = scmp.lt.u32.totalorder %s7615_s21, %s8982_s5 }
  0x6d   : > { %p7618_p13 = pnand %p7616_p9, %p7905_p2 }
  0x6f   : > { %p7619_p6 = pneg %p7618_p13 }
  0x71   : > { %p7624_p11 = pnand %p7622_p7, %p7619_p6 }
  0x73   : > { %7627 = shalt.err (!%p7624_p11)
}
  0x74   : > { %s7628_s17 = scalar_lea.vmem %s7955_s24, 16  ;;  %s7635_s1 = scalar_lea.vmem %s7955_s24, 32 }
  0x75   : > { %p7629_p12 = scmp.ne.s32.totalorder %s7955_s24, %s7628_s17  ;;  %p7636_p10 = scmp.lt.s32.totalorder %s7955_s24, %s7955_s24 }
  0x76   : > { %p7637_p0 = scmp.lt.s32.totalorder %s7635_s1, %s7628_s17 }
  0x77   : > { %p7631_p1 = pnand %p7629_p12, %p7905_p2 }
  0x78   : > { %p7638_p4 = por %p7637_p0, %p7636_p10 }
  0x79   : > { %p7632_p8 = pneg %p7631_p1 }
  0x7b   : > { %p7639_p9 = pnand %p7638_p4, %p7632_p8 }
  0x7d   : > { %7642 = shalt.err (!%p7639_p9)
}
  0x7e   : > { %p9006_p13 = scmp.ne.s32.totalorder %s8998_s19, 0  ;;  %s9007_s12 = sand.u32 1, %s7761_s29  }
  0x7f   : > { %s6489_s27 = smul.u32 6, %s9007_s12  ;;  %s7648_s26 = scalar_lea.hbm %s8980_s3, 192 }
  0x80   : > { %6527 = dma.hbm_to_vmem [thread:$0]  (!%p9006_p13), %s8982_s5, 16, %s7955_s24, [#allocation10]  }
  0x81   : > { %s6420_s25 = smul.u32 96, %s7765_s30  ;;  %s306_s19 = scalar_lea.vmem [#allocation12], %s6489_s27 }
  0x82   : > { %s314_s21 = sshll.u32 %s306_s19, 4  ;;  %s315_s21 = int_to_ptr.vmem [resolvable:$true] %s314_s21 }
  0x83   : > { %s8017_s20 = scalar_lea.hbm %s8980_s3, %s6420_s25 }
  0x84   : > { %s7643_s23 = scalar_lea.hbm %s8017_s20, 96  ;;  %p7649_p11 = scmp.lt.u32.totalorder %s8017_s20, %s8980_s3 }
  0x85   : > { %p7644_p2 = scmp.ne.s32.totalorder %s8017_s20, %s7643_s23  ;;  %p7650_p12 = scmp.lt.u32.totalorder %s7648_s26, %s7643_s23 }
  0x86   : > { %p7652_p8 = scmp.lt.u32.totalorder %s7643_s23, %s8017_s20 }
  0x87   : > { %p7646_p6 = pnand %p7644_p2, %p7587_p5  ;;  %p7651_p1 = por %p7650_p12, %p7649_p11 }
  0x89   : > { %p7647_p7 = pneg %p7646_p6  ;;  %p7653_p10 = por %p7652_p8, %p7651_p1 }
  0x8b   : > { %p7654_p0 = pnand %p7653_p10, %p7647_p7 }
  0x8d   : > { %7657 = shalt.err (!%p7654_p0)
}
  0x8e   : > { %s7658_s2 = scalar_lea.vmem %s315_s21, 96  ;;  %s7773_s18 = smov [#allocation12]  }
  0x8f   : > { %p7659_p4 = scmp.ne.s32.totalorder %s315_s21, %s7658_s2  ;;  %s7663_s12 = sshll.u32 %s7773_s18, 4  ;;  %s7664_s12 = int_to_ptr.vmem [resolvable:$false] %s7663_s12 }
  0x90   : > { %s7665_s27 = scalar_lea.vmem %s7664_s12, 192  ;;  %p7666_p2 = scmp.lt.s32.totalorder %s315_s21, %s7664_s12 }
  0x91   : > { %p7661_p9 = pnand %p7659_p4, %p7587_p5  ;;  %p7667_p6 = scmp.lt.s32.totalorder %s7665_s27, %s7658_s2 }
  0x93   : > { %p7662_p13 = pneg %p7661_p9  ;;  %p7668_p11 = por %p7667_p6, %p7666_p2 }
  0x95   : > { %p7669_p12 = pnand %p7668_p11, %p7662_p13 }
  0x97   : > { %7672 = shalt.err (!%p7669_p12)
}
  0x98   : > { %6534 = dma.hbm_to_vmem [thread:$0]  (!%p9005_p3), %s8017_s20, 96, %s315_s21, %s7959_s0  }
  0x99   : > { %p9008_p7 = scmp.ne.s32.totalorder %s8997_s16, 0 }
  0x9a   : > { %p9009_p5 = scmp.eq.s32.totalorder (!%p9008_p7), %s7846_s9, 0 }
  0x9b   : > { %332 = sbr.rel (%p9008_p7) target bundleno = 2127 (0x84f), region = 48 }
  0xa2   : > { %7728 = dma.done.wait (%p9009_p5), [#allocation6], 192   ;;  %p9010_p1 = pmov %p9009_p5 }
  0xa4   : > { %7730 = vsyncadd (%p9010_p1), [#allocation6], 4294967104  ;;  %p9011_p8 = pmov %p9010_p1 }
  0xa5   : > { %p9012_p10 = pmov %p9010_p1 }
  0xa6   : > { %7732 = dma.done.wait (%p9011_p8), [#allocation10], 192  }
  0xa7   : > { %7734 = vsyncadd (%p9012_p10), [#allocation10], 4294967104  ;;  %s342_s22 = sand.u32 1, %s7846_s9   ;;  %s344_s0 = sand.u32 1, %s7757_s28  }
  0xa8   : > { %s6490_s25 = smul.u32 4608, %s344_s0  ;;  %s343_s16 = scalar_lea.sflag [#allocation6], %s342_s22 }
  0xa9   : > { %p9013_p3 = scmp.ne.s32.totalorder %s8996_s15, 0 }
  0xaa   : > { %s8051_s11 = scalar_lea.vmem [#allocation11], %s6490_s25 }
  0xab   : > { %7736 = dma.done.wait (%p9013_p3), %s343_s16, 73824  }
  0xac   : > { %7738 = vsyncadd (%p9013_p3), %s343_s16, 4294893472  ;;  %s8057_s14 = smul.u32 6, %s344_s0  ;;  %p9014_p0 = pmov %p9010_p1 }
  0xae   : > { %s355_s20 = scalar_lea.vmem [#allocation12], %s8057_s14 }
  0xaf   : > { %7740 = dma.done.wait (%p9014_p0), [#allocation10], 16   ;;  %p9015_p4 = pmov %p9014_p0 }
  0xb0   : > { %s398_s19 = smul.u32 96, %s7846_s9  ;;  %p9016_p13 = scmp.ne.s32.totalorder %s7846_s9, 0 }
  0xb1   : > { %7742 = vsyncadd (%p9015_p4), [#allocation10], 4294967280  ;;  %v8072_v0 = vld [vmem:[#allocation5] sm:$0xff] (!%p9016_p13)  ;;  %v421_v1 = vlaneseq (!%p9016_p13)  ;;  %v7774_v3 = vmov (!%p9016_p13), 1983009808   ;;  %v8076_v5 = vld [vmem:[#allocation9] sm:$0xff] (!%p9016_p13) }
  0xb2   : > { %p399_p9 = scmp.lt.s32.totalorder %s398_s19, 191  ;;  %408 = sbr.rel (%p9016_p13) target bundleno = 377 (0x179), region = 72  ;;  %v413_v2 = vmul.f32 (!%p9016_p13), %v8072_v0, %v8072_v0  ;;  %v419_v4 = vunpack.c.l.s4 (!%p9016_p13), %v7774_v3  ;;  %v8078_v6 = vld [vmem:[#allocation5 + $0x8] sm:$0xf] (!%p9016_p13)  ;;  %v474_v8 = vmul.f32 (!%p9016_p13), %v8076_v5, %v8076_v5  ;;  %v8084_v11 = vld [vmem:[#allocation9 + $0x8] sm:$0xf] (!%p9016_p13) }
  0xb3   : > { %v8080_v7 = vshrl.u32 (!%p9016_p13), %v421_v1, 7  ;;  %v414_v13 = vmul.f32 (!%p9016_p13), %v8078_v6, %v8078_v6  ;;  %vm448_vm0 = vcmask (!%p9016_p13), 1041408   ;;  %v475_v17 = vmul.f32 (!%p9016_p13), %v8084_v11, %v8084_v11 }
  0xb4   : > { %s9022_s19 = smov (!%p399_p9, %s398_s19), 191  ;;  %v417_v9 = vcombine.high (!%p9016_p13), %v413_v2, %v413_v2  ;;  %v420_v10 = vunpack.c.0.s8 (!%p9016_p13), %v419_v4  ;;  %v478_v12 = vcombine.high (!%p9016_p13), %v474_v8, %v474_v8  ;;  %vm708_vm1 = vcmask (!%p9016_p13), 9216  }
  0xb5   : > { %s5780_s21 = sshll.u32 %s9022_s19, 2  ;;  %v7775_v50 = vmov (!%p9016_p13), 0.0   ;;  %v7776_v51 = vmov (!%p9016_p13), 269488144   ;;  %v7777_v58 = vmov (!%p9016_p13), 1966171168  }
  0xb6   : > { %s8068_s15 = scalar_lea.vmem %s8981_s4, %s5780_s21  ;;  %v8089_v14 = vsub.s32 (!%p9016_p13), %v420_v10, %v8080_v7  ;;  %709 = vst.msk [vmem:[#allocation4] sm:$0x3] (!%p9016_p13), %vm708_vm1, %v7775_v50  ;;  %v465_v52 = vunpack.c.l.s4 (!%p9016_p13), %v7776_v51  ;;  %v583_v59 = vunpack.c.l.s4 (!%p9016_p13), %v7777_v58 }
  0xb8   : > { %v424_v15 = vrot.slane (!%p9016_p13), %v413_v2, %v8089_v14  ;;  %v431_v16 = vrot.slane (!%p9016_p13), %v417_v9, %v8089_v14  ;;  %v485_v18 = vrot.slane (!%p9016_p13), %v474_v8, %v8089_v14  ;;  %v492_v19 = vrot.slane (!%p9016_p13), %v478_v12, %v8089_v14 }
  0xb9   : > { %v440_v22 = vrot.slane %v414_v13, %v8089_v14  ;;  %v501_v28 = vrot.slane %v475_v17, %v8089_v14  ;;  %v466_v54 = vunpack.c.0.s8 %v465_v52  ;;  %v584_v1 = vunpack.c.0.s8 %v583_v59 }
  0xba   : > { %v432_v20 = vcombine.high %v424_v15, %v424_v15  ;;  %v433_v21 = vcombine.high %v431_v16, %v431_v16  ;;  %v449_v23 = vsel %vm448_vm0, %v424_v15, 0.0  ;;  %v493_v24 = vcombine.high %v485_v18, %v485_v18 }
  0xbb   : > { %v494_v25 = vcombine.high %v492_v19, %v492_v19  ;;  %v452_v27 = vsel %vm448_vm0, %v431_v16, 0.0  ;;  %v509_v30 = vsel %vm448_vm0, %v485_v18, 0.0  ;;  %v512_v32 = vsel %vm448_vm0, %v492_v19, 0.0 }
  0xbc   : > { %v450_v26 = vsel %vm448_vm0, %v432_v20, 0.0  ;;  %v510_v31 = vsel %vm448_vm0, %v493_v24, 0.0  ;;  %v441_v33 = vcombine.high %v440_v22, %v440_v22  ;;  %v454_v34 = vsel %vm448_vm0, %v433_v21, 0.0 }
  0xbd   : > { %v451_v29 = vadd.f32 %v450_v26, %v449_v23  ;;  %v511_v35 = vadd.f32 %v510_v31, %v509_v30  ;;  %v514_v37 = vsel %vm448_vm0, %v494_v25, 0.0  ;;  %v456_v38 = vsel %vm448_vm0, %v440_v22, 0.0 }
  0xbe   : > { %v502_v39 = vcombine.high %v501_v28, %v501_v28  ;;  %v516_v42 = vsel %vm448_vm0, %v501_v28, 0.0  ;;  %v458_v43 = vsel %vm448_vm0, %v441_v33, 0.0  ;;  %v469_v56 = vsub.s32 %v466_v54, %v8080_v7 }
  0xbf   : > { %v453_v36 = vadd.f32 %v452_v27, %v451_v29  ;;  %v513_v40 = vadd.f32 %v512_v32, %v511_v35  ;;  %v587_v15 = vsub.s32 %v584_v1, %v8080_v7 }
  0xc0   : > { %v518_v47 = vsel %vm448_vm0, %v502_v39, 0.0 }
  0xc1   : > { %v455_v41 = vadd.f32 %v454_v34, %v453_v36  ;;  %v515_v44 = vadd.f32 %v514_v37, %v513_v40 }
  0xc3   : > { %v457_v45 = vadd.f32 %v456_v38, %v455_v41  ;;  %v517_v46 = vadd.f32 %v516_v42, %v515_v44 }
  0xc5   : > { %v459_v48 = vadd.f32 %v458_v43, %v457_v45  ;;  %v519_v49 = vadd.f32 %v518_v47, %v517_v46 }
  0xc7   : > { %460 = vadd.xlane.f32.xlu0 %v459_v48 }
  0xcb   : > { %520 = vadd.xlane.f32.xlu0 %v519_v49 }
 0x154   : > { %v461_v53 = vpop.xlane.xlu0 %460 }
 0x155   : > { %6591 = vrsqrt.f32 %v461_v53 }
 0x158   : > { %v521_v55 = vpop.xlane.xlu0 %520 }
 0x159   : > { %6593 = vrsqrt.f32 %v521_v55 }
 0x15f   : > { %v6592_v57 = vpop.eup %6591 }
 0x160   : > { %v470_v60 = vrot.slane %v6592_v57, %v469_v56 }
 0x162   : > { %v472_v61 = vmul.f32 %v470_v60, %v8072_v0  ;;  %v473_v62 = vmul.f32 %v470_v60, %v8078_v6 }
 0x163   : > { %v6594_v63 = vpop.eup %6593 }
 0x164   : > { %v536_v2 = vcombine.high %v472_v61, %v472_v61  ;;  %v543_v3 = vrot.slane %v472_v61, %v8089_v14  ;;  %v559_v4 = vrot.slane %v473_v62, %v8089_v14  ;;  %v530_v8 = vrot.slane %v6594_v63, %v469_v56 }
 0x166   : > { %v550_v9 = vrot.slane %v536_v2, %v8089_v14  ;;  %v551_v10 = vcombine.high %v543_v3, %v543_v3  ;;  %v560_v12 = vcombine.high %v559_v4, %v559_v4  ;;  %v532_v13 = vmul.f32 %v530_v8, %v8076_v5 }
 0x167   : > { %v533_v0 = vmul.f32 %v530_v8, %v8084_v11 }
 0x168   : > { %v552_v16 = vcombine.high %v550_v9, %v550_v9  ;;  %v5782_v6 = vpack.c.bf16 %v551_v10, %v543_v3  ;;  %v5784_v17 = vpack.c.bf16 %v560_v12, %v559_v4  ;;  %v623_v18 = vcombine.high %v532_v13, %v532_v13 }
 0x169   : > { %v630_v19 = vrot.slane %v532_v13, %v8089_v14  ;;  %v646_v20 = vrot.slane %v533_v0, %v8089_v14 }
 0x16a   : > { %v5783_v21 = vpack.c.bf16 %v552_v16, %v550_v9  ;;  %v637_v22 = vrot.slane %v623_v18, %v8089_v14  ;;  %v602_v23 = vrot.slane %v5784_v17, %v587_v15  ;;  %v588_v26 = vrot.slane %v5782_v6, %v587_v15 }
 0x16b   : > { %v638_v24 = vcombine.high %v630_v19, %v630_v19  ;;  %v647_v25 = vcombine.high %v646_v20, %v646_v20 }
 0x16c   : > { %v595_v5 = vrot.slane %v5783_v21, %v587_v15  ;;  %v639_v27 = vcombine.high %v637_v22, %v637_v22  ;;  %v617_v30 = vrot.slane %v602_v23, %v587_v15 }
 0x16d   : > { %v5785_v7 = vpack.c.bf16 %v638_v24, %v630_v19  ;;  %v5787_v28 = vpack.c.bf16 %v647_v25, %v646_v20 }
 0x16e   : > { %v603_v11 = vcombine.low %v588_v26, %v595_v5  ;;  %v5786_v29 = vpack.c.bf16 %v639_v27, %v637_v22 }
 0x16f   : > { %v675_v32 = vrot.slane %v5785_v7, %v587_v15  ;;  %v689_v34 = vrot.slane %v5787_v28, %v587_v15 }
 0x170   : > { %v610_v31 = vrot.slane %v603_v11, %v587_v15  ;;  %v682_v33 = vrot.slane %v5786_v29, %v587_v15 }
 0x171   : > { %v704_v14 = vrot.slane %v689_v34, %v587_v15 }
 0x172   : > { %v618_v35 = vcombine.low %v610_v31, %v617_v30  ;;  %v690_v36 = vcombine.low %v675_v32, %v682_v33 }
 0x174   : > { %620 = vst [vmem:[#allocation2] sm:$0x3f] %v618_v35  ;;  %v697_v37 = vrot.slane %v690_v36, %v587_v15 }
 0x176   : > { %v705_v38 = vcombine.low %v697_v37, %v704_v14 }
 0x178   : > { %707 = vst [vmem:[#allocation3] sm:$0x3f] %v705_v38 }
 0x179 PF: > { %v6595_v39 = vld [vmem:[%s8051_s11 + $0x904] ss:$24 sps:$4 sm:$0xff]   ;;  %v6599_v41 = vld [vmem:[%s8051_s11 + $0x900] ss:$24 sps:$4 sm:$0xff]   ;;  %v6601_v43 = vld [vmem:[%s8051_s11 + $0x934] ss:$24 sps:$4 sm:$0xff]   ;;  %v1293_v17 = vlaneseq }
 0x17a   : > { %v6597_v40 = vld [vmem:[%s8051_s11 + $0xc04] ss:$24 sps:$4 sm:$0xff]   ;;  %2782 = vmatprep.subr.bf16.mxu0 %v6595_v39  ;;  %v6600_v42 = vld [vmem:[%s8051_s11 + $0xc00] ss:$24 sps:$4 sm:$0xff]   ;;  %v6603_v44 = vld [vmem:[%s8051_s11 + $0xc34] ss:$24 sps:$4 sm:$0xff]  }
 0x17b   : > { %2823 = vmatprep.subr.bf16.mxu1 %v6597_v40  ;;  %2783 = vmatpush1.bf16.msra.mxu0 %v6599_v41  ;;  %v6605_v45 = vld [vmem:[%s8051_s11 + $0x930] ss:$24 sps:$4 sm:$0xff]   ;;  %v6607_v47 = vld [vmem:[%s8051_s11 + $0x964] ss:$24 sps:$4 sm:$0xff]   ;;  %v6611_v49 = vld [vmem:[%s8051_s11 + $0x960] ss:$24 sps:$4 sm:$0xff]  }
 0x17c   : > { %2824 = vmatpush1.bf16.msra.mxu1 %v6600_v42  ;;  %2784 = vmatprep.subr.bf16.mxu0 %v6601_v43  ;;  %v6606_v46 = vld [vmem:[%s8051_s11 + $0xc30] ss:$24 sps:$4 sm:$0xff]   ;;  %v6609_v48 = vld [vmem:[%s8051_s11 + $0xc64] ss:$24 sps:$4 sm:$0xff]   ;;  %v6612_v50 = vld [vmem:[%s8051_s11 + $0xc60] ss:$24 sps:$4 sm:$0xff]  }
 0x17d   : > { %2825 = vmatprep.subr.bf16.mxu1 %v6603_v44  ;;  %v6613_v51 = vld [vmem:[%s8051_s11 + $0x994] ss:$24 sps:$4 sm:$0xff]   ;;  %v6617_v53 = vld [vmem:[%s8051_s11 + $0x990] ss:$24 sps:$4 sm:$0xff]   ;;  %v6619_v55 = vld [vmem:[%s8051_s11 + $0x9c4] ss:$24 sps:$4 sm:$0xff]  }
 0x17e   : > { %v6615_v52 = vld [vmem:[%s8051_s11 + $0xc94] ss:$24 sps:$4 sm:$0xff]   ;;  %v6618_v54 = vld [vmem:[%s8051_s11 + $0xc90] ss:$24 sps:$4 sm:$0xff]   ;;  %v6621_v56 = vld [vmem:[%s8051_s11 + $0xcc4] ss:$24 sps:$4 sm:$0xff]  }
 0x17f   : > { %2785 = vmatpush1.bf16.msra.mxu0 %v6605_v45  ;;  %v6623_v57 = vld [vmem:[%s8051_s11 + $0x9c0] ss:$24 sps:$4 sm:$0xff]   ;;  %v6625_v59 = vld [vmem:[%s8051_s11 + $0x9f4] ss:$24 sps:$4 sm:$0xff]   ;;  %v6629_v61 = vld [vmem:[%s8051_s11 + $0x9f0] ss:$24 sps:$4 sm:$0xff]  }
 0x180   : > { %2826 = vmatpush1.bf16.msra.mxu1 %v6606_v46  ;;  %2786 = vmatprep.subr.bf16.mxu0 %v6607_v47  ;;  %v6624_v58 = vld [vmem:[%s8051_s11 + $0xcc0] ss:$24 sps:$4 sm:$0xff]   ;;  %v6627_v60 = vld [vmem:[%s8051_s11 + $0xcf4] ss:$24 sps:$4 sm:$0xff]   ;;  %v6630_v62 = vld [vmem:[%s8051_s11 + $0xcf0] ss:$24 sps:$4 sm:$0xff]  }
 0x181   : > { %2827 = vmatprep.subr.bf16.mxu1 %v6609_v48  ;;  %v6631_v63 = vld [vmem:[%s8051_s11 + $0xa24] ss:$24 sps:$4 sm:$0xff]   ;;  %v6635_v2 = vld [vmem:[%s8051_s11 + $0xa20] ss:$24 sps:$4 sm:$0xff]   ;;  %v6637_v4 = vld [vmem:[%s8051_s11 + $0xa54] ss:$24 sps:$4 sm:$0xff]  }
 0x182   : > { %v6633_v1 = vld [vmem:[%s8051_s11 + $0xd24] ss:$24 sps:$4 sm:$0xff]   ;;  %v6636_v3 = vld [vmem:[%s8051_s11 + $0xd20] ss:$24 sps:$4 sm:$0xff]   ;;  %v6639_v8 = vld [vmem:[%s8051_s11 + $0xd54] ss:$24 sps:$4 sm:$0xff]  }
 0x183   : > { %2787 = vmatpush1.bf16.msra.mxu0 %v6611_v49  ;;  %v6641_v9 = vld [vmem:[%s8051_s11 + $0xa50] ss:$24 sps:$4 sm:$0xff]   ;;  %v6643_v12 = vld [vmem:[%s8051_s11 + $0xa84] ss:$24 sps:$4 sm:$0xff]   ;;  %v6647_v15 = vld [vmem:[%s8051_s11 + $0xa80] ss:$24 sps:$4 sm:$0xff]  }
 0x184   : > { %2828 = vmatpush1.bf16.msra.mxu1 %v6612_v50  ;;  %2788 = vmatprep.subr.bf16.mxu0 %v6613_v51  ;;  %v6642_v10 = vld [vmem:[%s8051_s11 + $0xd50] ss:$24 sps:$4 sm:$0xff]   ;;  %v6645_v13 = vld [vmem:[%s8051_s11 + $0xd84] ss:$24 sps:$4 sm:$0xff]   ;;  %v6648_v0 = vld [vmem:[%s8051_s11 + $0xd80] ss:$24 sps:$4 sm:$0xff]  }
 0x185   : > { %2829 = vmatprep.subr.bf16.mxu1 %v6615_v52  ;;  %v7778_v16 = vmov 1966171168   ;;  %v6649_v18 = vld [vmem:[%s8051_s11 + $0xab4] ss:$24 sps:$4 sm:$0xff]   ;;  %v6653_v20 = vld [vmem:[%s8051_s11 + $0xab0] ss:$24 sps:$4 sm:$0xff]  }
 0x186   : > { %v1291_v6 = vunpack.c.l.s4 %v7778_v16  ;;  %v6651_v19 = vld [vmem:[%s8051_s11 + $0xdb4] ss:$24 sps:$4 sm:$0xff]   ;;  %v8163_v22 = vshrl.u32 %v1293_v17, 7  ;;  %v6654_v23 = vld [vmem:[%s8051_s11 + $0xdb0] ss:$24 sps:$4 sm:$0xff]   ;;  %vm5570_vm2 = vcmask 9216  }
 0x187   : > { %2789 = vmatpush1.bf16.msra.mxu0 %v6617_v53  ;;  %v6655_v24 = vld [vmem:[%s8051_s11 + $0xae4] ss:$24 sps:$4 sm:$0xff]   ;;  %v6659_v26 = vld [vmem:[%s8051_s11 + $0xae0] ss:$24 sps:$4 sm:$0xff]   ;;  %v6661_v7 = vld [vmem:[%s8051_s11 + $0xb14] ss:$24 sps:$4 sm:$0xff]  }
 0x188   : > { %2830 = vmatpush1.bf16.msra.mxu1 %v6618_v54  ;;  %2790 = vmatprep.subr.bf16.mxu0 %v6619_v55  ;;  %v1292_v21 = vunpack.c.0.s8 %v1291_v6  ;;  %v6657_v25 = vld [vmem:[%s8051_s11 + $0xde4] ss:$24 sps:$4 sm:$0xff]   ;;  %v6660_v5 = vld [vmem:[%s8051_s11 + $0xde0] ss:$24 sps:$4 sm:$0xff]   ;;  %v6663_v28 = vld [vmem:[%s8051_s11 + $0xe14] ss:$24 sps:$4 sm:$0xff]  }
 0x189   : > { %2831 = vmatprep.subr.bf16.mxu1 %v6621_v56  ;;  %v1287_v11 = vld [vmem:[#allocation3] sm:$0x3f]  ;;  %v6665_v29 = vld [vmem:[%s8051_s11 + $0xb10] ss:$24 sps:$4 sm:$0xff]   ;;  %v6673_v14 = vld [vmem:[%s8051_s11 + $0xb74] ss:$24 sps:$4 sm:$0xff]  }
 0x18a   : > { %v8171_v27 = vsub.s32 %v1292_v21, %v8163_v22  ;;  %v6666_v31 = vld [vmem:[%s8051_s11 + $0xe10] ss:$24 sps:$4 sm:$0xff]   ;;  %v6667_v32 = vld [vmem:[%s8051_s11 + $0xb44] ss:$24 sps:$4 sm:$0xff]   ;;  %v6671_v35 = vld [vmem:[%s8051_s11 + $0xb40] ss:$24 sps:$4 sm:$0xff]   ;;  %v1289_v44 = vcombine.high %v1287_v11, %v1287_v11 }
 0x18b   : > { %2791 = vmatpush1.bf16.msra.mxu0 %v6623_v57  ;;  %v6669_v33 = vld [vmem:[%s8051_s11 + $0xe44] ss:$24 sps:$4 sm:$0xff]   ;;  %v6672_v37 = vld [vmem:[%s8051_s11 + $0xe40] ss:$24 sps:$4 sm:$0xff]   ;;  %v6675_v38 = vld [vmem:[%s8051_s11 + $0xe74] ss:$24 sps:$4 sm:$0xff]  }
 0x18c   : > { %2832 = vmatpush1.bf16.msra.mxu1 %v6624_v58  ;;  %2792 = vmatprep.subr.bf16.mxu0 %v6625_v59  ;;  %v1296_v30 = vrot.slane %v1287_v11, %v8171_v27  ;;  %v6677_v40 = vld [vmem:[%s8051_s11 + $0xb70] ss:$24 sps:$4 sm:$0xff]   ;;  %v6679_v42 = vld [vmem:[%s8051_s11 + $0xba4] ss:$24 sps:$4 sm:$0xff]   ;;  %v6683_v45 = vld [vmem:[%s8051_s11 + $0xba0] ss:$24 sps:$4 sm:$0xff]   ;;  %v8202_v49 = vrot.slane %v1289_v44, %v8171_v27 }
 0x18d   : > { %2833 = vmatprep.subr.bf16.mxu1 %v6627_v60  ;;  %v6678_v41 = vld [vmem:[%s8051_s11 + $0xe70] ss:$24 sps:$4 sm:$0xff]   ;;  %v6681_v43 = vld [vmem:[%s8051_s11 + $0xea4] ss:$24 sps:$4 sm:$0xff]   ;;  %v6684_v46 = vld [vmem:[%s8051_s11 + $0xea0] ss:$24 sps:$4 sm:$0xff]  }
 0x18e   : > { %v1304_v34 = vcombine.high %v1296_v30, %v1296_v30  ;;  %v6685_v47 = vld [vmem:[%s8051_s11 + $0xbd4] ss:$24 sps:$4 sm:$0xff]   ;;  %v6689_v50 = vld [vmem:[%s8051_s11 + $0xbd0] ss:$24 sps:$4 sm:$0xff]   ;;  %v8206_v51 = vrot.slane %v1296_v30, %v8171_v27  ;;  %v6693_v53 = vld [vmem:[%s8051_s11 + $0xf04] ss:$24 sps:$4 sm:$0xff]   ;;  %v1305_v55 = vcombine.high %v8202_v49, %v8202_v49 }
 0x18f   : > { %2793 = vmatpush1.bf16.msra.mxu0 %v6629_v61  ;;  %v6687_v48 = vld [vmem:[%s8051_s11 + $0xed4] ss:$24 sps:$4 sm:$0xff]   ;;  %v6690_v52 = vld [vmem:[%s8051_s11 + $0xed0] ss:$24 sps:$4 sm:$0xff]   ;;  %v6691_v57 = vld [vmem:[%s8051_s11 + $0xf00] ss:$24 sps:$4 sm:$0xff]  }
 0x190   : > { %2834 = vmatpush1.bf16.msra.mxu1 %v6630_v62  ;;  %2794 = vmatprep.subr.bf16.mxu0 %v6631_v63  ;;  %v8182_v36 = vrot.slane %v1304_v34, %v8171_v27  ;;  %v6696_v54 = vld [vmem:[%s8051_s11 + $0x90c] ss:$24 sps:$4 sm:$0xff]   ;;  %v8215_v56 = vcombine.high %v8206_v51, %v8206_v51  ;;  %v6694_v58 = vld [vmem:[%s8051_s11 + $0x908] ss:$24 sps:$4 sm:$0xff]   ;;  %v6702_v60 = vld [vmem:[%s8051_s11 + $0x93c] ss:$24 sps:$4 sm:$0xff]   ;;  %v8222_v61 = vrot.slane %v1305_v55, %v8171_v27 }
 0x191   : > { %2835 = vmatprep.subr.bf16.mxu1 %v6633_v1  ;;  %v6699_v59 = vld [vmem:[%s8051_s11 + $0xf34] ss:$24 sps:$4 sm:$0xff]   ;;  %v6697_v62 = vld [vmem:[%s8051_s11 + $0xf30] ss:$24 sps:$4 sm:$0xff]   ;;  %v6705_v1 = vld [vmem:[%s8051_s11 + $0xf64] ss:$24 sps:$4 sm:$0xff]  }
 0x192   : > { %v8189_v39 = vcombine.high %v8182_v36, %v8182_v36  ;;  %2814 = vmatprep.mubr.bf16.mxu0 %v8182_v36  ;;  %v6700_v63 = vld [vmem:[%s8051_s11 + $0x938] ss:$24 sps:$4 sm:$0xff]   ;;  %v6718_v16 = vld [vmem:[%s8051_s11 + $0x9c8] ss:$24 sps:$4 sm:$0xff]   ;;  %v6723_v6 = vld [vmem:[%s8051_s11 + $0xff4] ss:$24 sps:$4 sm:$0xff]  }
 0x193   : > { %2795 = vmatpush1.bf16.msra.mxu0 %v6635_v2  ;;  %v6708_v2 = vld [vmem:[%s8051_s11 + $0x96c] ss:$24 sps:$4 sm:$0xff]   ;;  %v6739_v30 = vld [vmem:[%s8051_s11 + $0x1080] ss:$24 sps:$4 sm:$0xff]   ;;  %v6745_v34 = vld [vmem:[%s8051_s11 + $0x10b0] ss:$24 sps:$4 sm:$0xff]  }
 0x194   : > { %2836 = vmatpush1.bf16.msra.mxu1 %v6636_v3  ;;  %2796 = vmatprep.subr.bf16.mxu0 %v6637_v4  ;;  %v6703_v3 = vld [vmem:[%s8051_s11 + $0xf60] ss:$24 sps:$4 sm:$0xff]   ;;  %v6729_v21 = vld [vmem:[%s8051_s11 + $0x1024] ss:$24 sps:$4 sm:$0xff]   ;;  %p6412_p2 = scmp.ne.s32.totalorder %s7846_s9, 1 }
 0x195   : > { %2837 = vmatprep.subr.bf16.mxu1 %v6639_v8  ;;  %2855 = vmatprep.mubr.bf16.mxu1 %v8189_v39  ;;  %v6706_v4 = vld [vmem:[%s8051_s11 + $0x968] ss:$24 sps:$4 sm:$0xff]   ;;  %v6711_v8 = vld [vmem:[%s8051_s11 + $0xf94] ss:$24 sps:$4 sm:$0xff]   ;;  %v6741_v11 = vld [vmem:[%s8051_s11 + $0x1084] ss:$24 sps:$4 sm:$0xff]  }
 0x196   : > { %v6760_v44 = vld [vmem:[%s8051_s11 + $0xb18] ss:$24 sps:$4 sm:$0xff]   ;;  %v6777_v55 = vld [vmem:[%s8051_s11 + $0x11a4] ss:$24 sps:$4 sm:$0xff]   ;;  %vm5612_vm4 = vcmask (!%p6412_p2), 1024  }
 0x197   : > { %2797 = vmatpush1.bf16.msra.mxu0 %v6641_v9  ;;  %v6714_v9 = vld [vmem:[%s8051_s11 + $0x99c] ss:$24 sps:$4 sm:$0xff]  }
 0x198   : > { %2838 = vmatpush1.bf16.msra.mxu1 %v6642_v10  ;;  %2798 = vmatprep.subr.bf16.mxu0 %v6643_v12  ;;  %v6709_v10 = vld [vmem:[%s8051_s11 + $0xf90] ss:$24 sps:$4 sm:$0xff]  }
 0x199   : > { %2839 = vmatprep.subr.bf16.mxu1 %v6645_v13  ;;  %v6712_v12 = vld [vmem:[%s8051_s11 + $0x998] ss:$24 sps:$4 sm:$0xff]   ;;  %v6717_v13 = vld [vmem:[%s8051_s11 + $0xfc4] ss:$24 sps:$4 sm:$0xff]  }
 0x19b   : > { %2799 = vmatpush1.bf16.msra.mxu0 %v6647_v15  ;;  %v6720_v15 = vld [vmem:[%s8051_s11 + $0x9cc] ss:$24 sps:$4 sm:$0xff]  }
 0x19c   : > { %2840 = vmatpush1.bf16.msra.mxu1 %v6648_v0  ;;  %2800 = vmatprep.subr.bf16.mxu0 %v6649_v18  ;;  %v6715_v0 = vld [vmem:[%s8051_s11 + $0xfc0] ss:$24 sps:$4 sm:$0xff]   ;;  %v6726_v18 = vld [vmem:[%s8051_s11 + $0x9fc] ss:$24 sps:$4 sm:$0xff]  }
 0x19d   : > { %2841 = vmatprep.subr.bf16.mxu1 %v6651_v19  ;;  %v6721_v19 = vld [vmem:[%s8051_s11 + $0xff0] ss:$24 sps:$4 sm:$0xff]  }
 0x19f   : > { %2801 = vmatpush1.bf16.msra.mxu0 %v6653_v20  ;;  %v6724_v20 = vld [vmem:[%s8051_s11 + $0x9f8] ss:$24 sps:$4 sm:$0xff]  }
 0x1a0   : > { %2842 = vmatpush1.bf16.msra.mxu1 %v6654_v23  ;;  %2802 = vmatprep.subr.bf16.mxu0 %v6655_v24  ;;  %v6732_v23 = vld [vmem:[%s8051_s11 + $0xa2c] ss:$24 sps:$4 sm:$0xff]   ;;  %v6727_v24 = vld [vmem:[%s8051_s11 + $0x1020] ss:$24 sps:$4 sm:$0xff]  }
 0x1a1   : > { %2843 = vmatprep.subr.bf16.mxu1 %v6657_v25  ;;  %v6730_v25 = vld [vmem:[%s8051_s11 + $0xa28] ss:$24 sps:$4 sm:$0xff]  }
 0x1a3   : > { %2803 = vmatpush1.bf16.msra.mxu0 %v6659_v26  ;;  %v6735_v26 = vld [vmem:[%s8051_s11 + $0x1054] ss:$24 sps:$4 sm:$0xff]  }
 0x1a4   : > { %2844 = vmatpush1.bf16.msra.mxu1 %v6660_v5  ;;  %2804 = vmatprep.subr.bf16.mxu0 %v6661_v7  ;;  %v6738_v5 = vld [vmem:[%s8051_s11 + $0xa5c] ss:$24 sps:$4 sm:$0xff]   ;;  %v6733_v7 = vld [vmem:[%s8051_s11 + $0x1050] ss:$24 sps:$4 sm:$0xff]  }
 0x1a5   : > { %2845 = vmatprep.subr.bf16.mxu1 %v6663_v28  ;;  %v6736_v28 = vld [vmem:[%s8051_s11 + $0xa58] ss:$24 sps:$4 sm:$0xff]  }
 0x1a7   : > { %2805 = vmatpush1.bf16.msra.mxu0 %v6665_v29  ;;  %v6744_v29 = vld [vmem:[%s8051_s11 + $0xa8c] ss:$24 sps:$4 sm:$0xff]  }
 0x1a8   : > { %2846 = vmatpush1.bf16.msra.mxu1 %v6666_v31  ;;  %2806 = vmatprep.subr.bf16.mxu0 %v6667_v32  ;;  %v6742_v31 = vld [vmem:[%s8051_s11 + $0xa88] ss:$24 sps:$4 sm:$0xff]   ;;  %v6747_v32 = vld [vmem:[%s8051_s11 + $0x10b4] ss:$24 sps:$4 sm:$0xff]  }
 0x1a9   : > { %2847 = vmatprep.subr.bf16.mxu1 %v6669_v33  ;;  %v6750_v33 = vld [vmem:[%s8051_s11 + $0xabc] ss:$24 sps:$4 sm:$0xff]  }
 0x1ab   : > { %2807 = vmatpush1.bf16.msra.mxu0 %v6671_v35  ;;  %v6748_v35 = vld [vmem:[%s8051_s11 + $0xab8] ss:$24 sps:$4 sm:$0xff]  }
 0x1ac   : > { %2848 = vmatpush1.bf16.msra.mxu1 %v6672_v37  ;;  %2808 = vmatprep.subr.bf16.mxu0 %v6673_v14  ;;  %v6753_v37 = vld [vmem:[%s8051_s11 + $0x10e4] ss:$24 sps:$4 sm:$0xff]  }
 0x1ad   : > { %2849 = vmatprep.subr.bf16.mxu1 %v6675_v38  ;;  %v6756_v14 = vld [vmem:[%s8051_s11 + $0xaec] ss:$24 sps:$4 sm:$0xff]   ;;  %v6751_v38 = vld [vmem:[%s8051_s11 + $0x10e0] ss:$24 sps:$4 sm:$0xff]  }
 0x1af   : > { %2809 = vmatpush1.bf16.msra.mxu0 %v6677_v40  ;;  %v6754_v40 = vld [vmem:[%s8051_s11 + $0xae8] ss:$24 sps:$4 sm:$0xff]  }
 0x1b0   : > { %2850 = vmatpush1.bf16.msra.mxu1 %v6678_v41  ;;  %2810 = vmatprep.subr.bf16.mxu0 %v6679_v42  ;;  %v6759_v41 = vld [vmem:[%s8051_s11 + $0x1114] ss:$24 sps:$4 sm:$0xff]  }
 0x1b1   : > { %2851 = vmatprep.subr.bf16.mxu1 %v6681_v43  ;;  %v6762_v42 = vld [vmem:[%s8051_s11 + $0xb1c] ss:$24 sps:$4 sm:$0xff]   ;;  %v6757_v43 = vld [vmem:[%s8051_s11 + $0x1110] ss:$24 sps:$4 sm:$0xff]  }
 0x1b3   : > { %2811 = vmatpush1.bf16.msra.mxu0 %v6683_v45  ;;  %v6765_v45 = vld [vmem:[%s8051_s11 + $0x1144] ss:$24 sps:$4 sm:$0xff]  }
 0x1b4   : > { %2852 = vmatpush1.bf16.msra.mxu1 %v6684_v46  ;;  %2812 = vmatprep.subr.bf16.mxu0 %v6685_v47  ;;  %v6768_v46 = vld [vmem:[%s8051_s11 + $0xb4c] ss:$24 sps:$4 sm:$0xff]   ;;  %v6763_v47 = vld [vmem:[%s8051_s11 + $0x1140] ss:$24 sps:$4 sm:$0xff]  }
 0x1b5   : > { %2853 = vmatprep.subr.bf16.mxu1 %v6687_v48  ;;  %v6766_v48 = vld [vmem:[%s8051_s11 + $0xb48] ss:$24 sps:$4 sm:$0xff]  }
 0x1b7   : > { %2813 = vmatpush1.bf16.msra.mxu0 %v6689_v50  ;;  %v6771_v50 = vld [vmem:[%s8051_s11 + $0x1174] ss:$24 sps:$4 sm:$0xff]  }
 0x1b8   : > { %2854 = vmatpush1.bf16.msra.mxu1 %v6690_v52  ;;  %2864 = vmatprep.subr.bf16.mxu0 %v6693_v53  ;;  %v6774_v52 = vld [vmem:[%s8051_s11 + $0xb7c] ss:$24 sps:$4 sm:$0xff]   ;;  %v6769_v53 = vld [vmem:[%s8051_s11 + $0x1170] ss:$24 sps:$4 sm:$0xff]  }
 0x1b9   : > { %2905 = vmatprep.subr.bf16.mxu1 %v6696_v54  ;;  %v6772_v54 = vld [vmem:[%s8051_s11 + $0xb78] ss:$24 sps:$4 sm:$0xff]  }
 0x1ba   : > { %2815 = vmatmul.mubr.bf16.vlgmr.msra.gmra.mrb[0].mxu0 %v8206_v51 }
 0x1bb   : > { %2856 = vmatmul.mubr.bf16.vlgmr.msra.gmra.mrb[0].mxu1 %v8215_v56  ;;  %2865 = vmatpush1.bf16.msra.mxu0 %v6691_v57  ;;  %v6780_v57 = vld [vmem:[%s8051_s11 + $0xbac] ss:$24 sps:$4 sm:$0xff]  }
 0x1bc   : > { %2906 = vmatpush1.bf16.msra.mxu1 %v6694_v58  ;;  %2866 = vmatprep.subr.bf16.mxu0 %v6699_v59  ;;  %v6775_v58 = vld [vmem:[%s8051_s11 + $0x11a0] ss:$24 sps:$4 sm:$0xff]  }
 0x1bd   : > { %2907 = vmatprep.subr.bf16.mxu1 %v6702_v60  ;;  %2896 = vmatprep.mubr.bf16.mxu0 %v8222_v61  ;;  %v6778_v59 = vld [vmem:[%s8051_s11 + $0xba8] ss:$24 sps:$4 sm:$0xff]   ;;  %v6783_v60 = vld [vmem:[%s8051_s11 + $0x11d4] ss:$24 sps:$4 sm:$0xff]  }
 0x1be   : > { %2937 = vmatprep.mubr.bf16.mxu1 %v8182_v36 }
 0x1bf   : > { %2867 = vmatpush1.bf16.msra.mxu0 %v6697_v62  ;;  %v6786_v62 = vld [vmem:[%s8051_s11 + $0xbdc] ss:$24 sps:$4 sm:$0xff]  }
 0x1c0   : > { %2908 = vmatpush1.bf16.msra.mxu1 %v6700_v63  ;;  %2868 = vmatprep.subr.bf16.mxu0 %v6705_v1  ;;  %v6781_v63 = vld [vmem:[%s8051_s11 + $0x11d0] ss:$24 sps:$4 sm:$0xff]  }
 0x1c1   : > { %2909 = vmatprep.subr.bf16.mxu1 %v6708_v2  ;;  %v6784_v1 = vld [vmem:[%s8051_s11 + $0xbd8] ss:$24 sps:$4 sm:$0xff]   ;;  %v6790_v2 = vld [vmem:[%s8051_s11 + $0xc0c] ss:$24 sps:$4 sm:$0xff]  }
 0x1c3   : > { %2869 = vmatpush1.bf16.msra.mxu0 %v6703_v3  ;;  %v6793_v3 = vld [vmem:[%s8051_s11 + $0xf0c] ss:$24 sps:$4 sm:$0xff]  }
 0x1c4   : > { %2910 = vmatpush1.bf16.msra.mxu1 %v6706_v4  ;;  %2870 = vmatprep.subr.bf16.mxu0 %v6711_v8  ;;  %v8290_v4 = vrot.slane %v8202_v49, %v8171_v27  ;;  %v6788_v8 = vld [vmem:[%s8051_s11 + $0xc08] ss:$24 sps:$4 sm:$0xff]   ;;  %v6797_v49 = vld [vmem:[%s8051_s11 + $0xf38] ss:$24 sps:$4 sm:$0xff]  }
 0x1c5   : > { %2911 = vmatprep.subr.bf16.mxu1 %v6714_v9  ;;  %v6791_v9 = vld [vmem:[%s8051_s11 + $0xf08] ss:$24 sps:$4 sm:$0xff]  }
 0x1c7   : > { %2871 = vmatpush1.bf16.msra.mxu0 %v6709_v10  ;;  %v6796_v10 = vld [vmem:[%s8051_s11 + $0xc3c] ss:$24 sps:$4 sm:$0xff]  }
 0x1c8   : > { %2912 = vmatpush1.bf16.msra.mxu1 %v6712_v12  ;;  %2872 = vmatprep.subr.bf16.mxu0 %v6717_v13  ;;  %v6799_v12 = vld [vmem:[%s8051_s11 + $0xf3c] ss:$24 sps:$4 sm:$0xff]   ;;  %v6794_v13 = vld [vmem:[%s8051_s11 + $0xc38] ss:$24 sps:$4 sm:$0xff]  }
 0x1c9   : > { %2913 = vmatprep.subr.bf16.mxu1 %v6720_v15  ;;  %v6802_v15 = vld [vmem:[%s8051_s11 + $0xc6c] ss:$24 sps:$4 sm:$0xff]  }
 0x1cb   : > { %2873 = vmatpush1.bf16.msra.mxu0 %v6715_v0  ;;  %v6805_v0 = vld [vmem:[%s8051_s11 + $0xf6c] ss:$24 sps:$4 sm:$0xff]  }
 0x1cc   : > { %2914 = vmatpush1.bf16.msra.mxu1 %v6718_v16  ;;  %2874 = vmatprep.subr.bf16.mxu0 %v6723_v6  ;;  %v6800_v16 = vld [vmem:[%s8051_s11 + $0xc68] ss:$24 sps:$4 sm:$0xff]  }
 0x1cd   : > { %2915 = vmatprep.subr.bf16.mxu1 %v6726_v18  ;;  %v6803_v6 = vld [vmem:[%s8051_s11 + $0xf68] ss:$24 sps:$4 sm:$0xff]   ;;  %v6808_v18 = vld [vmem:[%s8051_s11 + $0xc9c] ss:$24 sps:$4 sm:$0xff]  }
 0x1cf   : > { %2875 = vmatpush1.bf16.msra.mxu0 %v6721_v19  ;;  %v6811_v19 = vld [vmem:[%s8051_s11 + $0xf9c] ss:$24 sps:$4 sm:$0xff]  }
 0x1d0   : > { %2916 = vmatpush1.bf16.msra.mxu1 %v6724_v20  ;;  %2876 = vmatprep.subr.bf16.mxu0 %v6729_v21  ;;  %v6806_v20 = vld [vmem:[%s8051_s11 + $0xc98] ss:$24 sps:$4 sm:$0xff]  }
 0x1d1   : > { %2917 = vmatprep.subr.bf16.mxu1 %v6732_v23  ;;  %v6809_v21 = vld [vmem:[%s8051_s11 + $0xf98] ss:$24 sps:$4 sm:$0xff]   ;;  %v6814_v23 = vld [vmem:[%s8051_s11 + $0xccc] ss:$24 sps:$4 sm:$0xff]  }
 0x1d3   : > { %2877 = vmatpush1.bf16.msra.mxu0 %v6727_v24  ;;  %v6817_v24 = vld [vmem:[%s8051_s11 + $0xfcc] ss:$24 sps:$4 sm:$0xff]  }
 0x1d4   : > { %2918 = vmatpush1.bf16.msra.mxu1 %v6730_v25  ;;  %2878 = vmatprep.subr.bf16.mxu0 %v6735_v26  ;;  %v6812_v25 = vld [vmem:[%s8051_s11 + $0xcc8] ss:$24 sps:$4 sm:$0xff]  }
 0x1d5   : > { %2919 = vmatprep.subr.bf16.mxu1 %v6738_v5  ;;  %v6815_v26 = vld [vmem:[%s8051_s11 + $0xfc8] ss:$24 sps:$4 sm:$0xff]   ;;  %v6820_v5 = vld [vmem:[%s8051_s11 + $0xcfc] ss:$24 sps:$4 sm:$0xff]  }
 0x1d7   : > { %2879 = vmatpush1.bf16.msra.mxu0 %v6733_v7  ;;  %v6823_v7 = vld [vmem:[%s8051_s11 + $0xffc] ss:$24 sps:$4 sm:$0xff]  }
 0x1d8   : > { %2920 = vmatpush1.bf16.msra.mxu1 %v6736_v28  ;;  %2880 = vmatprep.subr.bf16.mxu0 %v6741_v11  ;;  %v6818_v28 = vld [vmem:[%s8051_s11 + $0xcf8] ss:$24 sps:$4 sm:$0xff]  }
 0x1d9   : > { %2921 = vmatprep.subr.bf16.mxu1 %v6744_v29  ;;  %v6821_v11 = vld [vmem:[%s8051_s11 + $0xff8] ss:$24 sps:$4 sm:$0xff]   ;;  %v6826_v29 = vld [vmem:[%s8051_s11 + $0xd2c] ss:$24 sps:$4 sm:$0xff]  }
 0x1db   : > { %2881 = vmatpush1.bf16.msra.mxu0 %v6739_v30  ;;  %v6829_v30 = vld [vmem:[%s8051_s11 + $0x102c] ss:$24 sps:$4 sm:$0xff]  }
 0x1dc   : > { %2922 = vmatpush1.bf16.msra.mxu1 %v6742_v31  ;;  %2882 = vmatprep.subr.bf16.mxu0 %v6747_v32  ;;  %v6824_v31 = vld [vmem:[%s8051_s11 + $0xd28] ss:$24 sps:$4 sm:$0xff]  }
 0x1dd   : > { %2923 = vmatprep.subr.bf16.mxu1 %v6750_v33  ;;  %v6827_v32 = vld [vmem:[%s8051_s11 + $0x1028] ss:$24 sps:$4 sm:$0xff]   ;;  %v6832_v33 = vld [vmem:[%s8051_s11 + $0xd5c] ss:$24 sps:$4 sm:$0xff]  }
 0x1df   : > { %2883 = vmatpush1.bf16.msra.mxu0 %v6745_v34  ;;  %v6835_v34 = vld [vmem:[%s8051_s11 + $0x105c] ss:$24 sps:$4 sm:$0xff]  }
 0x1e0   : > { %2924 = vmatpush1.bf16.msra.mxu1 %v6748_v35  ;;  %2884 = vmatprep.subr.bf16.mxu0 %v6753_v37  ;;  %v6830_v35 = vld [vmem:[%s8051_s11 + $0xd58] ss:$24 sps:$4 sm:$0xff]  }
 0x1e1   : > { %2925 = vmatprep.subr.bf16.mxu1 %v6756_v14  ;;  %v6833_v37 = vld [vmem:[%s8051_s11 + $0x1058] ss:$24 sps:$4 sm:$0xff]   ;;  %v6838_v14 = vld [vmem:[%s8051_s11 + $0xd8c] ss:$24 sps:$4 sm:$0xff]  }
 0x1e3   : > { %2885 = vmatpush1.bf16.msra.mxu0 %v6751_v38  ;;  %v6841_v38 = vld [vmem:[%s8051_s11 + $0x108c] ss:$24 sps:$4 sm:$0xff]  }
 0x1e4   : > { %2926 = vmatpush1.bf16.msra.mxu1 %v6754_v40  ;;  %2886 = vmatprep.subr.bf16.mxu0 %v6759_v41  ;;  %v6836_v40 = vld [vmem:[%s8051_s11 + $0xd88] ss:$24 sps:$4 sm:$0xff]  }
 0x1e5   : > { %2927 = vmatprep.subr.bf16.mxu1 %v6762_v42  ;;  %v6839_v41 = vld [vmem:[%s8051_s11 + $0x1088] ss:$24 sps:$4 sm:$0xff]   ;;  %v6844_v42 = vld [vmem:[%s8051_s11 + $0xdbc] ss:$24 sps:$4 sm:$0xff]  }
 0x1e7   : > { %2887 = vmatpush1.bf16.msra.mxu0 %v6757_v43  ;;  %v6847_v43 = vld [vmem:[%s8051_s11 + $0x10bc] ss:$24 sps:$4 sm:$0xff]  }
 0x1e8   : > { %2928 = vmatpush1.bf16.msra.mxu1 %v6760_v44  ;;  %2888 = vmatprep.subr.bf16.mxu0 %v6765_v45  ;;  %v6842_v44 = vld [vmem:[%s8051_s11 + $0xdb8] ss:$24 sps:$4 sm:$0xff]  }
 0x1e9   : > { %2929 = vmatprep.subr.bf16.mxu1 %v6768_v46  ;;  %v6845_v45 = vld [vmem:[%s8051_s11 + $0x10b8] ss:$24 sps:$4 sm:$0xff]   ;;  %v6850_v46 = vld [vmem:[%s8051_s11 + $0xdec] ss:$24 sps:$4 sm:$0xff]  }
 0x1eb   : > { %2889 = vmatpush1.bf16.msra.mxu0 %v6763_v47  ;;  %v6853_v47 = vld [vmem:[%s8051_s11 + $0x10ec] ss:$24 sps:$4 sm:$0xff]  }
 0x1ec   : > { %2930 = vmatpush1.bf16.msra.mxu1 %v6766_v48  ;;  %2890 = vmatprep.subr.bf16.mxu0 %v6771_v50  ;;  %v6848_v48 = vld [vmem:[%s8051_s11 + $0xde8] ss:$24 sps:$4 sm:$0xff]  }
 0x1ed   : > { %2931 = vmatprep.subr.bf16.mxu1 %v6774_v52  ;;  %v6851_v50 = vld [vmem:[%s8051_s11 + $0x10e8] ss:$24 sps:$4 sm:$0xff]   ;;  %v6856_v52 = vld [vmem:[%s8051_s11 + $0xe1c] ss:$24 sps:$4 sm:$0xff]  }
 0x1ef   : > { %2891 = vmatpush1.bf16.msra.mxu0 %v6769_v53  ;;  %v6859_v53 = vld [vmem:[%s8051_s11 + $0x111c] ss:$24 sps:$4 sm:$0xff]  }
 0x1f0   : > { %2932 = vmatpush1.bf16.msra.mxu1 %v6772_v54  ;;  %2892 = vmatprep.subr.bf16.mxu0 %v6777_v55  ;;  %v6854_v54 = vld [vmem:[%s8051_s11 + $0xe18] ss:$24 sps:$4 sm:$0xff]  }
 0x1f1   : > { %2933 = vmatprep.subr.bf16.mxu1 %v6780_v57  ;;  %v6857_v55 = vld [vmem:[%s8051_s11 + $0x1118] ss:$24 sps:$4 sm:$0xff]   ;;  %v6862_v57 = vld [vmem:[%s8051_s11 + $0xe4c] ss:$24 sps:$4 sm:$0xff]  }
 0x1f3   : > { %2893 = vmatpush1.bf16.msra.mxu0 %v6775_v58  ;;  %v6865_v58 = vld [vmem:[%s8051_s11 + $0x114c] ss:$24 sps:$4 sm:$0xff]  }
 0x1f4   : > { %2934 = vmatpush1.bf16.msra.mxu1 %v6778_v59  ;;  %2894 = vmatprep.subr.bf16.mxu0 %v6783_v60  ;;  %v6860_v59 = vld [vmem:[%s8051_s11 + $0xe48] ss:$24 sps:$4 sm:$0xff]  }
 0x1f5   : > { %2935 = vmatprep.subr.bf16.mxu1 %v6786_v62  ;;  %v6863_v60 = vld [vmem:[%s8051_s11 + $0x1148] ss:$24 sps:$4 sm:$0xff]   ;;  %v6868_v62 = vld [vmem:[%s8051_s11 + $0xe7c] ss:$24 sps:$4 sm:$0xff]  }
 0x1f7   : > { %2895 = vmatpush1.bf16.msra.mxu0 %v6781_v63  ;;  %v6871_v63 = vld [vmem:[%s8051_s11 + $0x117c] ss:$24 sps:$4 sm:$0xff]  }
 0x1f8   : > { %2936 = vmatpush1.bf16.msra.mxu1 %v6784_v1  ;;  %2946 = vmatprep.subr.bf16.mxu0 %v6790_v2  ;;  %v6866_v1 = vld [vmem:[%s8051_s11 + $0xe78] ss:$24 sps:$4 sm:$0xff]  }
 0x1f9   : > { %2987 = vmatprep.subr.bf16.mxu1 %v6793_v3  ;;  %v6869_v2 = vld [vmem:[%s8051_s11 + $0x1178] ss:$24 sps:$4 sm:$0xff]   ;;  %v6874_v3 = vld [vmem:[%s8051_s11 + $0xeac] ss:$24 sps:$4 sm:$0xff]  }
 0x1fa   : > { %2897 = vmatmul.mubr.bf16.vlgmr.msra.gmra.mrb[4].mxu0 %v8290_v4 }
 0x1fb   : > { %2938 = vmatmul.mubr.bf16.vlgmr.msra.gmra.mrb[4].mxu1 %v8206_v51  ;;  %2947 = vmatpush1.bf16.msra.mxu0 %v6788_v8  ;;  %v6877_v8 = vld [vmem:[%s8051_s11 + $0x11ac] ss:$24 sps:$4 sm:$0xff]  }
 0x1fc   : > { %2988 = vmatpush1.bf16.msra.mxu1 %v6791_v9  ;;  %2948 = vmatprep.subr.bf16.mxu0 %v6796_v10  ;;  %v6872_v9 = vld [vmem:[%s8051_s11 + $0xea8] ss:$24 sps:$4 sm:$0xff]  }
 0x1fd   : > { %2989 = vmatprep.subr.bf16.mxu1 %v6799_v12  ;;  %2978 = vmatprep.mubr.bf16.mxu0 %v8189_v39  ;;  %v6875_v10 = vld [vmem:[%s8051_s11 + $0x11a8] ss:$24 sps:$4 sm:$0xff]   ;;  %v6880_v12 = vld [vmem:[%s8051_s11 + $0xedc] ss:$24 sps:$4 sm:$0xff]  }
 0x1fe   : > { %3019 = vmatprep.mubr.bf16.mxu1 %v8222_v61 }
 0x1ff   : > { %2949 = vmatpush1.bf16.msra.mxu0 %v6794_v13  ;;  %v6883_v13 = vld [vmem:[%s8051_s11 + $0x11dc] ss:$24 sps:$4 sm:$0xff]  }
 0x200   : > { %2990 = vmatpush1.bf16.msra.mxu1 %v6797_v49  ;;  %2950 = vmatprep.subr.bf16.mxu0 %v6802_v15  ;;  %v6878_v49 = vld [vmem:[%s8051_s11 + $0xed8] ss:$24 sps:$4 sm:$0xff]  }
 0x201   : > { %2991 = vmatprep.subr.bf16.mxu1 %v6805_v0  ;;  %v6881_v15 = vld [vmem:[%s8051_s11 + $0x11d8] ss:$24 sps:$4 sm:$0xff]   ;;  %v6886_v0 = vld [vmem:[%s8051_s11 + $0x914] ss:$24 sps:$4 sm:$0xff]  }
 0x203   : > { %2951 = vmatpush1.bf16.msra.mxu0 %v6800_v16  ;;  %v6889_v16 = vld [vmem:[%s8051_s11 + $0xc14] ss:$24 sps:$4 sm:$0xff]  }
 0x204   : > { %2992 = vmatpush1.bf16.msra.mxu1 %v6803_v6  ;;  %2952 = vmatprep.subr.bf16.mxu0 %v6808_v18  ;;  %v6884_v6 = vld [vmem:[%s8051_s11 + $0x910] ss:$24 sps:$4 sm:$0xff]  }
 0x205   : > { %2993 = vmatprep.subr.bf16.mxu1 %v6811_v19  ;;  %v6887_v18 = vld [vmem:[%s8051_s11 + $0xc10] ss:$24 sps:$4 sm:$0xff]   ;;  %v6892_v19 = vld [vmem:[%s8051_s11 + $0x944] ss:$24 sps:$4 sm:$0xff]  }
 0x207   : > { %2953 = vmatpush1.bf16.msra.mxu0 %v6806_v20  ;;  %v6895_v20 = vld [vmem:[%s8051_s11 + $0xc44] ss:$24 sps:$4 sm:$0xff]  }
 0x208   : > { %2994 = vmatpush1.bf16.msra.mxu1 %v6809_v21  ;;  %2954 = vmatprep.subr.bf16.mxu0 %v6814_v23  ;;  %v6890_v21 = vld [vmem:[%s8051_s11 + $0x940] ss:$24 sps:$4 sm:$0xff]  }
 0x209   : > { %2995 = vmatprep.subr.bf16.mxu1 %v6817_v24  ;;  %v6893_v23 = vld [vmem:[%s8051_s11 + $0xc40] ss:$24 sps:$4 sm:$0xff]   ;;  %v6898_v24 = vld [vmem:[%s8051_s11 + $0x974] ss:$24 sps:$4 sm:$0xff]  }
 0x20b   : > { %2955 = vmatpush1.bf16.msra.mxu0 %v6812_v25  ;;  %v6901_v25 = vld [vmem:[%s8051_s11 + $0xc74] ss:$24 sps:$4 sm:$0xff]  }
 0x20c   : > { %2996 = vmatpush1.bf16.msra.mxu1 %v6815_v26  ;;  %2956 = vmatprep.subr.bf16.mxu0 %v6820_v5  ;;  %v6896_v26 = vld [vmem:[%s8051_s11 + $0x970] ss:$24 sps:$4 sm:$0xff]  }
 0x20d   : > { %2997 = vmatprep.subr.bf16.mxu1 %v6823_v7  ;;  %v6899_v5 = vld [vmem:[%s8051_s11 + $0xc70] ss:$24 sps:$4 sm:$0xff]   ;;  %v6904_v7 = vld [vmem:[%s8051_s11 + $0x9a4] ss:$24 sps:$4 sm:$0xff]  }
 0x20f   : > { %2957 = vmatpush1.bf16.msra.mxu0 %v6818_v28  ;;  %v6907_v28 = vld [vmem:[%s8051_s11 + $0xca4] ss:$24 sps:$4 sm:$0xff]  }
 0x210   : > { %2998 = vmatpush1.bf16.msra.mxu1 %v6821_v11  ;;  %2958 = vmatprep.subr.bf16.mxu0 %v6826_v29  ;;  %v6902_v11 = vld [vmem:[%s8051_s11 + $0x9a0] ss:$24 sps:$4 sm:$0xff]   ;;  %v6913_v29 = vld [vmem:[%s8051_s11 + $0xcd4] ss:$24 sps:$4 sm:$0xff]  }
 0x211   : > { %2999 = vmatprep.subr.bf16.mxu1 %v6829_v30  ;;  %v6908_v30 = vld [vmem:[%s8051_s11 + $0x9d0] ss:$24 sps:$4 sm:$0xff]  }
 0x213   : > { %2959 = vmatpush1.bf16.msra.mxu0 %v6824_v31  ;;  %v6911_v31 = vld [vmem:[%s8051_s11 + $0xcd0] ss:$24 sps:$4 sm:$0xff]  }
 0x214   : > { %3000 = vmatpush1.bf16.msra.mxu1 %v6827_v32  ;;  %2960 = vmatprep.subr.bf16.mxu0 %v6832_v33  ;;  %v6916_v32 = vld [vmem:[%s8051_s11 + $0xa04] ss:$24 sps:$4 sm:$0xff]  }
 0x215   : > { %3001 = vmatprep.subr.bf16.mxu1 %v6835_v34  ;;  %v6919_v33 = vld [vmem:[%s8051_s11 + $0xd04] ss:$24 sps:$4 sm:$0xff]   ;;  %v6914_v34 = vld [vmem:[%s8051_s11 + $0xa00] ss:$24 sps:$4 sm:$0xff]  }
 0x217   : > { %2961 = vmatpush1.bf16.msra.mxu0 %v6830_v35  ;;  %v6917_v35 = vld [vmem:[%s8051_s11 + $0xd00] ss:$24 sps:$4 sm:$0xff]  }
 0x218   : > { %3002 = vmatpush1.bf16.msra.mxu1 %v6833_v37  ;;  %2962 = vmatprep.subr.bf16.mxu0 %v6838_v14  ;;  %v6922_v37 = vld [vmem:[%s8051_s11 + $0xa34] ss:$24 sps:$4 sm:$0xff]  }
 0x219   : > { %3003 = vmatprep.subr.bf16.mxu1 %v6841_v38  ;;  %v6925_v14 = vld [vmem:[%s8051_s11 + $0xd34] ss:$24 sps:$4 sm:$0xff]   ;;  %v6920_v38 = vld [vmem:[%s8051_s11 + $0xa30] ss:$24 sps:$4 sm:$0xff]  }
 0x21b   : > { %2963 = vmatpush1.bf16.msra.mxu0 %v6836_v40  ;;  %v6923_v40 = vld [vmem:[%s8051_s11 + $0xd30] ss:$24 sps:$4 sm:$0xff]  }
 0x21c   : > { %3004 = vmatpush1.bf16.msra.mxu1 %v6839_v41  ;;  %2964 = vmatprep.subr.bf16.mxu0 %v6844_v42  ;;  %v6928_v41 = vld [vmem:[%s8051_s11 + $0xa64] ss:$24 sps:$4 sm:$0xff]  }
 0x21d   : > { %3005 = vmatprep.subr.bf16.mxu1 %v6847_v43  ;;  %v6931_v42 = vld [vmem:[%s8051_s11 + $0xd64] ss:$24 sps:$4 sm:$0xff]   ;;  %v6926_v43 = vld [vmem:[%s8051_s11 + $0xa60] ss:$24 sps:$4 sm:$0xff]  }
 0x21f   : > { %2965 = vmatpush1.bf16.msra.mxu0 %v6842_v44  ;;  %v6929_v44 = vld [vmem:[%s8051_s11 + $0xd60] ss:$24 sps:$4 sm:$0xff]  }
 0x220   : > { %3006 = vmatpush1.bf16.msra.mxu1 %v6845_v45  ;;  %2966 = vmatprep.subr.bf16.mxu0 %v6850_v46  ;;  %v6934_v45 = vld [vmem:[%s8051_s11 + $0xa94] ss:$24 sps:$4 sm:$0xff]  }
 0x221   : > { %3007 = vmatprep.subr.bf16.mxu1 %v6853_v47  ;;  %v6937_v46 = vld [vmem:[%s8051_s11 + $0xd94] ss:$24 sps:$4 sm:$0xff]   ;;  %v6932_v47 = vld [vmem:[%s8051_s11 + $0xa90] ss:$24 sps:$4 sm:$0xff]  }
 0x223   : > { %2967 = vmatpush1.bf16.msra.mxu0 %v6848_v48  ;;  %v6935_v48 = vld [vmem:[%s8051_s11 + $0xd90] ss:$24 sps:$4 sm:$0xff]  }
 0x224   : > { %3008 = vmatpush1.bf16.msra.mxu1 %v6851_v50  ;;  %2968 = vmatprep.subr.bf16.mxu0 %v6856_v52  ;;  %v6940_v50 = vld [vmem:[%s8051_s11 + $0xac4] ss:$24 sps:$4 sm:$0xff]  }
 0x225   : > { %3009 = vmatprep.subr.bf16.mxu1 %v6859_v53  ;;  %v6943_v52 = vld [vmem:[%s8051_s11 + $0xdc4] ss:$24 sps:$4 sm:$0xff]   ;;  %v6938_v53 = vld [vmem:[%s8051_s11 + $0xac0] ss:$24 sps:$4 sm:$0xff]  }
 0x227   : > { %2969 = vmatpush1.bf16.msra.mxu0 %v6854_v54  ;;  %v6941_v54 = vld [vmem:[%s8051_s11 + $0xdc0] ss:$24 sps:$4 sm:$0xff]  }
 0x228   : > { %3010 = vmatpush1.bf16.msra.mxu1 %v6857_v55  ;;  %2970 = vmatprep.subr.bf16.mxu0 %v6862_v57  ;;  %v6946_v55 = vld [vmem:[%s8051_s11 + $0xaf4] ss:$24 sps:$4 sm:$0xff]  }
 0x229   : > { %3011 = vmatprep.subr.bf16.mxu1 %v6865_v58  ;;  %v6949_v57 = vld [vmem:[%s8051_s11 + $0xdf4] ss:$24 sps:$4 sm:$0xff]   ;;  %v6944_v58 = vld [vmem:[%s8051_s11 + $0xaf0] ss:$24 sps:$4 sm:$0xff]  }
 0x22b   : > { %2971 = vmatpush1.bf16.msra.mxu0 %v6860_v59  ;;  %v6947_v59 = vld [vmem:[%s8051_s11 + $0xdf0] ss:$24 sps:$4 sm:$0xff]  }
 0x22c   : > { %3012 = vmatpush1.bf16.msra.mxu1 %v6863_v60  ;;  %2972 = vmatprep.subr.bf16.mxu0 %v6868_v62  ;;  %v6952_v60 = vld [vmem:[%s8051_s11 + $0xb24] ss:$24 sps:$4 sm:$0xff]  }
 0x22d   : > { %3013 = vmatprep.subr.bf16.mxu1 %v6871_v63  ;;  %v6955_v62 = vld [vmem:[%s8051_s11 + $0xe24] ss:$24 sps:$4 sm:$0xff]   ;;  %v6950_v63 = vld [vmem:[%s8051_s11 + $0xb20] ss:$24 sps:$4 sm:$0xff]  }
 0x22f   : > { %2973 = vmatpush1.bf16.msra.mxu0 %v6866_v1  ;;  %v6953_v1 = vld [vmem:[%s8051_s11 + $0xe20] ss:$24 sps:$4 sm:$0xff]  }
 0x230   : > { %3014 = vmatpush1.bf16.msra.mxu1 %v6869_v2  ;;  %2974 = vmatprep.subr.bf16.mxu0 %v6874_v3  ;;  %v6958_v2 = vld [vmem:[%s8051_s11 + $0xb54] ss:$24 sps:$4 sm:$0xff]  }
 0x231   : > { %3015 = vmatprep.subr.bf16.mxu1 %v6877_v8  ;;  %v6961_v3 = vld [vmem:[%s8051_s11 + $0xe54] ss:$24 sps:$4 sm:$0xff]   ;;  %v6956_v8 = vld [vmem:[%s8051_s11 + $0xb50] ss:$24 sps:$4 sm:$0xff]  }
 0x233   : > { %2975 = vmatpush1.bf16.msra.mxu0 %v6872_v9  ;;  %v6959_v9 = vld [vmem:[%s8051_s11 + $0xe50] ss:$24 sps:$4 sm:$0xff]  }
 0x234   : > { %3016 = vmatpush1.bf16.msra.mxu1 %v6875_v10  ;;  %2976 = vmatprep.subr.bf16.mxu0 %v6880_v12  ;;  %v6964_v10 = vld [vmem:[%s8051_s11 + $0xb84] ss:$24 sps:$4 sm:$0xff]  }
 0x235   : > { %3017 = vmatprep.subr.bf16.mxu1 %v6883_v13  ;;  %v6967_v12 = vld [vmem:[%s8051_s11 + $0xe84] ss:$24 sps:$4 sm:$0xff]   ;;  %v6962_v13 = vld [vmem:[%s8051_s11 + $0xb80] ss:$24 sps:$4 sm:$0xff]  }
 0x237   : > { %2977 = vmatpush1.bf16.msra.mxu0 %v6878_v49  ;;  %v6965_v49 = vld [vmem:[%s8051_s11 + $0xe80] ss:$24 sps:$4 sm:$0xff]  }
 0x238   : > { %3018 = vmatpush1.bf16.msra.mxu1 %v6881_v15  ;;  %3028 = vmatprep.subr.bf16.mxu0 %v6886_v0  ;;  %v6970_v15 = vld [vmem:[%s8051_s11 + $0xbb4] ss:$24 sps:$4 sm:$0xff]  }
 0x239   : > { %3069 = vmatprep.subr.bf16.mxu1 %v6889_v16  ;;  %v6973_v0 = vld [vmem:[%s8051_s11 + $0xeb4] ss:$24 sps:$4 sm:$0xff]   ;;  %v8420_v16 = vld [vmem:[#allocation2] sm:$0x3f] }
 0x23a   : > { %2979 = vmatmul.mubr.bf16.vlgmr.msra.gmra.mrb[8].mxu0 %v8215_v56 }
 0x23b   : > { %3020 = vmatmul.mubr.bf16.vlgmr.msra.gmra.mrb[8].mxu1 %v8290_v4  ;;  %3029 = vmatpush1.bf16.msra.mxu0 %v6884_v6  ;;  %v6968_v6 = vld [vmem:[%s8051_s11 + $0xbb0] ss:$24 sps:$4 sm:$0xff]  }
 0x23c   : > { %3070 = vmatpush1.bf16.msra.mxu1 %v6887_v18  ;;  %3030 = vmatprep.subr.bf16.mxu0 %v6892_v19  ;;  %v6971_v18 = vld [vmem:[%s8051_s11 + $0xeb0] ss:$24 sps:$4 sm:$0xff]   ;;  %v6976_v19 = vld [vmem:[%s8051_s11 + $0xbe4] ss:$24 sps:$4 sm:$0xff]  }
 0x23d   : > { %3071 = vmatprep.subr.bf16.mxu1 %v6895_v20  ;;  %3060 = vmatprep.mubr.bf16.mxu0 %v8182_v36  ;;  %v6905_v36 = vld [vmem:[%s8051_s11 + $0xca0] ss:$24 sps:$4 sm:$0xff]   ;;  %v6979_v20 = vld [vmem:[%s8051_s11 + $0xee4] ss:$24 sps:$4 sm:$0xff]  }
 0x23e   : > { %3101 = vmatprep.mubr.bf16.mxu1 %v8189_v39  ;;  %v6910_v39 = vld [vmem:[%s8051_s11 + $0x9d4] ss:$24 sps:$4 sm:$0xff]  }
 0x23f   : > { %3031 = vmatpush1.bf16.msra.mxu0 %v6890_v21  ;;  %v8428_v21 = vrot.slane %v8420_v16, %v8171_v27 }
 0x240   : > { %3072 = vmatpush1.bf16.msra.mxu1 %v6893_v23  ;;  %3032 = vmatprep.subr.bf16.mxu0 %v6898_v24  ;;  %v6974_v23 = vld [vmem:[%s8051_s11 + $0xbe0] ss:$24 sps:$4 sm:$0xff]  }
 0x241   : > { %3073 = vmatprep.subr.bf16.mxu1 %v6901_v25  ;;  %v6977_v24 = vld [vmem:[%s8051_s11 + $0xee0] ss:$24 sps:$4 sm:$0xff]   ;;  %v6982_v25 = vld [vmem:[%s8051_s11 + $0xf14] ss:$24 sps:$4 sm:$0xff]  }
 0x243   : > { %3033 = vmatpush1.bf16.msra.mxu0 %v6896_v26  ;;  %v6985_v26 = vld [vmem:[%s8051_s11 + $0x4] ss:$24 sps:$4 sm:$0xff]  }
 0x244   : > { %3074 = vmatpush1.bf16.msra.mxu1 %v6899_v5  ;;  %3034 = vmatprep.subr.bf16.mxu0 %v6904_v7  ;;  %v3167_v5 = vcombine.high %v8428_v21, %v8428_v21  ;;  %v6980_v7 = vld [vmem:[%s8051_s11 + $0xf10] ss:$24 sps:$4 sm:$0xff]  }
 0x245   : > { %3075 = vmatprep.subr.bf16.mxu1 %v6907_v28  ;;  %v6983_v28 = vld [vmem:[%s8051_s11] ss:$24 sps:$4 sm:$0xff]  }
 0x247   : > { %3035 = vmatpush1.bf16.msra.mxu0 %v6902_v11  ;;  %v6988_v11 = vld [vmem:[%s8051_s11 + $0xf44] ss:$24 sps:$4 sm:$0xff]  }
 0x248   : > { %3076 = vmatpush1.bf16.msra.mxu1 %v6905_v36  ;;  %3036 = vmatprep.subr.bf16.mxu0 %v6910_v39  ;;  %v6991_v36 = vld [vmem:[%s8051_s11 + $0x34] ss:$24 sps:$4 sm:$0xff]   ;;  %v8441_v39 = vrot.slane %v3167_v5, %v8171_v27 }
 0x249   : > { %3077 = vmatprep.subr.bf16.mxu1 %v6913_v29  ;;  %v6986_v29 = vld [vmem:[%s8051_s11 + $0xf40] ss:$24 sps:$4 sm:$0xff]   ;;  %v7054_v5 = vld [vmem:[%s8051_s11 + $0x1154] ss:$24 sps:$4 sm:$0xff]  }
 0x24b   : > { %3037 = vmatpush1.bf16.msra.mxu0 %v6908_v30  ;;  %v6989_v30 = vld [vmem:[%s8051_s11 + $0x30] ss:$24 sps:$4 sm:$0xff]  }
 0x24c   : > { %3078 = vmatpush1.bf16.msra.mxu1 %v6911_v31  ;;  %3038 = vmatprep.subr.bf16.mxu0 %v6916_v32  ;;  %v6994_v31 = vld [vmem:[%s8051_s11 + $0xf74] ss:$24 sps:$4 sm:$0xff]   ;;  %v6997_v32 = vld [vmem:[%s8051_s11 + $0x64] ss:$24 sps:$4 sm:$0xff]  }
 0x24d   : > { %3079 = vmatprep.subr.bf16.mxu1 %v6919_v33  ;;  %v7000_v33 = vld [vmem:[%s8051_s11 + $0xfa4] ss:$24 sps:$4 sm:$0xff]  }
 0x24f   : > { %3039 = vmatpush1.bf16.msra.mxu0 %v6914_v34  ;;  %v7003_v34 = vld [vmem:[%s8051_s11 + $0x94] ss:$24 sps:$4 sm:$0xff]  }
 0x250   : > { %3080 = vmatpush1.bf16.msra.mxu1 %v6917_v35  ;;  %3040 = vmatprep.subr.bf16.mxu0 %v6922_v37  ;;  %v7001_v35 = vld [vmem:[%s8051_s11 + $0x90] ss:$24 sps:$4 sm:$0xff]   ;;  %v7006_v37 = vld [vmem:[%s8051_s11 + $0xfd4] ss:$24 sps:$4 sm:$0xff]  }
 0x251   : > { %3081 = vmatprep.subr.bf16.mxu1 %v6925_v14  ;;  %v7009_v14 = vld [vmem:[%s8051_s11 + $0xc4] ss:$24 sps:$4 sm:$0xff]  }
 0x253   : > { %3041 = vmatpush1.bf16.msra.mxu0 %v6920_v38  ;;  %v7004_v38 = vld [vmem:[%s8051_s11 + $0xfd0] ss:$24 sps:$4 sm:$0xff]  }
 0x254   : > { %3082 = vmatpush1.bf16.msra.mxu1 %v6923_v40  ;;  %3042 = vmatprep.subr.bf16.mxu0 %v6928_v41  ;;  %v7007_v40 = vld [vmem:[%s8051_s11 + $0xc0] ss:$24 sps:$4 sm:$0xff]   ;;  %v7012_v41 = vld [vmem:[%s8051_s11 + $0x1004] ss:$24 sps:$4 sm:$0xff]  }
 0x255   : > { %3083 = vmatprep.subr.bf16.mxu1 %v6931_v42  ;;  %v7015_v42 = vld [vmem:[%s8051_s11 + $0xf4] ss:$24 sps:$4 sm:$0xff]  }
 0x257   : > { %3043 = vmatpush1.bf16.msra.mxu0 %v6926_v43  ;;  %v7010_v43 = vld [vmem:[%s8051_s11 + $0x1000] ss:$24 sps:$4 sm:$0xff]  }
 0x258   : > { %3084 = vmatpush1.bf16.msra.mxu1 %v6929_v44  ;;  %3044 = vmatprep.subr.bf16.mxu0 %v6934_v45  ;;  %v7013_v44 = vld [vmem:[%s8051_s11 + $0xf0] ss:$24 sps:$4 sm:$0xff]   ;;  %v7018_v45 = vld [vmem:[%s8051_s11 + $0x1034] ss:$24 sps:$4 sm:$0xff]  }
 0x259   : > { %3085 = vmatprep.subr.bf16.mxu1 %v6937_v46  ;;  %v7021_v46 = vld [vmem:[%s8051_s11 + $0x124] ss:$24 sps:$4 sm:$0xff]  }
 0x25b   : > { %3045 = vmatpush1.bf16.msra.mxu0 %v6932_v47 }
 0x25c   : > { %3086 = vmatpush1.bf16.msra.mxu1 %v6935_v48  ;;  %3046 = vmatprep.subr.bf16.mxu0 %v6940_v50  ;;  %v7016_v50 = vld [vmem:[%s8051_s11 + $0x1030] ss:$24 sps:$4 sm:$0xff]  }
 0x25d   : > { %3087 = vmatprep.subr.bf16.mxu1 %v6943_v52  ;;  %v7019_v52 = vld [vmem:[%s8051_s11 + $0x120] ss:$24 sps:$4 sm:$0xff]  }
 0x25f   : > { %3047 = vmatpush1.bf16.msra.mxu0 %v6938_v53 }
 0x260   : > { %3088 = vmatpush1.bf16.msra.mxu1 %v6941_v54  ;;  %3048 = vmatprep.subr.bf16.mxu0 %v6946_v55 }
 0x261   : > { %3089 = vmatprep.subr.bf16.mxu1 %v6949_v57 }
 0x263   : > { %3049 = vmatpush1.bf16.msra.mxu0 %v6944_v58 }
 0x264   : > { %3090 = vmatpush1.bf16.msra.mxu1 %v6947_v59  ;;  %3050 = vmatprep.subr.bf16.mxu0 %v6952_v60 }
 0x265   : > { %3091 = vmatprep.subr.bf16.mxu1 %v6955_v62 }
 0x267   : > { %3051 = vmatpush1.bf16.msra.mxu0 %v6950_v63  ;;  %v7024_v63 = vld [vmem:[%s8051_s11 + $0x1064] ss:$24 sps:$4 sm:$0xff]  }
 0x268   : > { %3092 = vmatpush1.bf16.msra.mxu1 %v6953_v1  ;;  %3052 = vmatprep.subr.bf16.mxu0 %v6958_v2  ;;  %v7027_v1 = vld [vmem:[%s8051_s11 + $0x154] ss:$24 sps:$4 sm:$0xff]   ;;  %v7022_v2 = vld [vmem:[%s8051_s11 + $0x1060] ss:$24 sps:$4 sm:$0xff]  }
 0x269   : > { %3093 = vmatprep.subr.bf16.mxu1 %v6961_v3  ;;  %v7025_v3 = vld [vmem:[%s8051_s11 + $0x150] ss:$24 sps:$4 sm:$0xff]  }
 0x26b   : > { %3053 = vmatpush1.bf16.msra.mxu0 %v6956_v8  ;;  %v7030_v8 = vld [vmem:[%s8051_s11 + $0x1094] ss:$24 sps:$4 sm:$0xff]  }
 0x26c   : > { %3094 = vmatpush1.bf16.msra.mxu1 %v6959_v9  ;;  %3054 = vmatprep.subr.bf16.mxu0 %v6964_v10  ;;  %v7033_v9 = vld [vmem:[%s8051_s11 + $0x184] ss:$24 sps:$4 sm:$0xff]   ;;  %v7028_v10 = vld [vmem:[%s8051_s11 + $0x1090] ss:$24 sps:$4 sm:$0xff]  }
 0x26d   : > { %3095 = vmatprep.subr.bf16.mxu1 %v6967_v12  ;;  %v7031_v12 = vld [vmem:[%s8051_s11 + $0x180] ss:$24 sps:$4 sm:$0xff]  }
 0x26f   : > { %3055 = vmatpush1.bf16.msra.mxu0 %v6962_v13  ;;  %v7036_v13 = vld [vmem:[%s8051_s11 + $0x10c4] ss:$24 sps:$4 sm:$0xff]  }
 0x270   : > { %3096 = vmatpush1.bf16.msra.mxu1 %v6965_v49  ;;  %3056 = vmatprep.subr.bf16.mxu0 %v6970_v15  ;;  %v7039_v49 = vld [vmem:[%s8051_s11 + $0x1b4] ss:$24 sps:$4 sm:$0xff]   ;;  %v7034_v15 = vld [vmem:[%s8051_s11 + $0x10c0] ss:$24 sps:$4 sm:$0xff]  }
 0x271   : > { %3097 = vmatprep.subr.bf16.mxu1 %v6973_v0  ;;  %v7037_v0 = vld [vmem:[%s8051_s11 + $0x1b0] ss:$24 sps:$4 sm:$0xff]  }
 0x273   : > { %3057 = vmatpush1.bf16.msra.mxu0 %v6968_v6  ;;  %v7042_v6 = vld [vmem:[%s8051_s11 + $0x10f4] ss:$24 sps:$4 sm:$0xff]  }
 0x274   : > { %3098 = vmatpush1.bf16.msra.mxu1 %v6971_v18  ;;  %3058 = vmatprep.subr.bf16.mxu0 %v6976_v19  ;;  %v7045_v18 = vld [vmem:[%s8051_s11 + $0x1e4] ss:$24 sps:$4 sm:$0xff]   ;;  %v7040_v19 = vld [vmem:[%s8051_s11 + $0x10f0] ss:$24 sps:$4 sm:$0xff]  }
 0x275   : > { %3099 = vmatprep.subr.bf16.mxu1 %v6979_v20  ;;  %v7043_v20 = vld [vmem:[%s8051_s11 + $0x1e0] ss:$24 sps:$4 sm:$0xff]  }
 0x277   : > { %3059 = vmatpush1.bf16.msra.mxu0 %v6974_v23  ;;  %v7048_v23 = vld [vmem:[%s8051_s11 + $0x1124] ss:$24 sps:$4 sm:$0xff]  }
 0x278   : > { %3100 = vmatpush1.bf16.msra.mxu1 %v6977_v24  ;;  %3110 = vmatprep.subr.bf16.mxu0 %v6982_v25  ;;  %v7051_v24 = vld [vmem:[%s8051_s11 + $0x214] ss:$24 sps:$4 sm:$0xff]   ;;  %v7046_v25 = vld [vmem:[%s8051_s11 + $0x1120] ss:$24 sps:$4 sm:$0xff]  }
 0x279   : > { %4645 = vmatprep.subr.bf16.mxu1 %v6985_v26  ;;  %v7049_v26 = vld [vmem:[%s8051_s11 + $0x210] ss:$24 sps:$4 sm:$0xff]  }
 0x27a   : > { %3061 = vmatmul.mubr.bf16.vlgmr.msra.gmra.mrb[12].mxu0 %v8206_v51  ;;  %v6992_v51 = vld [vmem:[%s8051_s11 + $0xf70] ss:$24 sps:$4 sm:$0xff]  }
 0x27b   : > { %3102 = vmatmul.mubr.bf16.vlgmr.msra.gmra.mrb[12].mxu1 %v8215_v56  ;;  %3111 = vmatpush1.bf16.msra.mxu0 %v6980_v7  ;;  %v6995_v56 = vld [vmem:[%s8051_s11 + $0x60] ss:$24 sps:$4 sm:$0xff]   ;;  %v7057_v7 = vld [vmem:[%s8051_s11 + $0x244] ss:$24 sps:$4 sm:$0xff]  }
 0x27c   : > { %4646 = vmatpush1.bf16.msra.mxu1 %v6983_v28  ;;  %3112 = vmatprep.subr.bf16.mxu0 %v6988_v11  ;;  %v7052_v28 = vld [vmem:[%s8051_s11 + $0x1150] ss:$24 sps:$4 sm:$0xff]   ;;  %v7055_v11 = vld [vmem:[%s8051_s11 + $0x240] ss:$24 sps:$4 sm:$0xff]  }
 0x27d   : > { %4647 = vmatprep.subr.bf16.mxu1 %v6991_v36  ;;  %3142 = vmatprep.mubr.bf16.mxu0 %v8222_v61  ;;  %v6998_v61 = vld [vmem:[%s8051_s11 + $0xfa0] ss:$24 sps:$4 sm:$0xff]   ;;  %v7060_v36 = vld [vmem:[%s8051_s11 + $0x1184] ss:$24 sps:$4 sm:$0xff]  }
 0x27e   : > { %4677 = vmatprep.mubr.bf16.mxu1 %v8441_v39 }
 0x27f   : > { %3113 = vmatpush1.bf16.msra.mxu0 %v6986_v29  ;;  %v7063_v29 = vld [vmem:[%s8051_s11 + $0x274] ss:$24 sps:$4 sm:$0xff]  }
 0x280   : > { %4648 = vmatpush1.bf16.msra.mxu1 %v6989_v30  ;;  %3114 = vmatprep.subr.bf16.mxu0 %v6994_v31  ;;  %v7058_v30 = vld [vmem:[%s8051_s11 + $0x1180] ss:$24 sps:$4 sm:$0xff]   ;;  %v7061_v31 = vld [vmem:[%s8051_s11 + $0x270] ss:$24 sps:$4 sm:$0xff]  }
 0x281   : > { %4649 = vmatprep.subr.bf16.mxu1 %v6997_v32  ;;  %v7066_v32 = vld [vmem:[%s8051_s11 + $0x11b4] ss:$24 sps:$4 sm:$0xff]  }
 0x283   : > { %3115 = vmatpush1.bf16.msra.mxu0 %v6992_v51  ;;  %v7069_v51 = vld [vmem:[%s8051_s11 + $0x2a4] ss:$24 sps:$4 sm:$0xff]  }
 0x284   : > { %4650 = vmatpush1.bf16.msra.mxu1 %v6995_v56  ;;  %3116 = vmatprep.subr.bf16.mxu0 %v7000_v33  ;;  %v3152_v56 = vcombine.high %v8420_v16, %v8420_v16  ;;  %v7064_v33 = vld [vmem:[%s8051_s11 + $0x11b0] ss:$24 sps:$4 sm:$0xff]   ;;  %v7070_v16 = vld [vmem:[%s8051_s11 + $0x11e0] ss:$24 sps:$4 sm:$0xff]  }
 0x285   : > { %4651 = vmatprep.subr.bf16.mxu1 %v7003_v34  ;;  %v7067_v34 = vld [vmem:[%s8051_s11 + $0x2a0] ss:$24 sps:$4 sm:$0xff]  }
 0x287   : > { %3117 = vmatpush1.bf16.msra.mxu0 %v6998_v61  ;;  %v7072_v61 = vld [vmem:[%s8051_s11 + $0x11e4] ss:$24 sps:$4 sm:$0xff]  }
 0x288   : > { %4652 = vmatpush1.bf16.msra.mxu1 %v7001_v35  ;;  %3118 = vmatprep.subr.bf16.mxu0 %v7006_v37  ;;  %v7075_v35 = vld [vmem:[%s8051_s11 + $0x2d4] ss:$24 sps:$4 sm:$0xff]   ;;  %v8510_v37 = vrot.slane %v3152_v56, %v8171_v27  ;;  %v7130_v56 = vld [vmem:[%s8051_s11 + $0x4b0] ss:$24 sps:$4 sm:$0xff]  }
 0x289   : > { %4653 = vmatprep.subr.bf16.mxu1 %v7009_v14  ;;  %v7073_v14 = vld [vmem:[%s8051_s11 + $0x2d0] ss:$24 sps:$4 sm:$0xff]  }
 0x28b   : > { %3119 = vmatpush1.bf16.msra.mxu0 %v7004_v38  ;;  %v7078_v38 = vld [vmem:[%s8051_s11 + $0x304] ss:$24 sps:$4 sm:$0xff]  }
 0x28c   : > { %4654 = vmatpush1.bf16.msra.mxu1 %v7007_v40  ;;  %3120 = vmatprep.subr.bf16.mxu0 %v7012_v41  ;;  %v7081_v40 = vld [vmem:[%s8051_s11 + $0x604] ss:$24 sps:$4 sm:$0xff]   ;;  %v7076_v41 = vld [vmem:[%s8051_s11 + $0x300] ss:$24 sps:$4 sm:$0xff]  }
 0x28d   : > { %4655 = vmatprep.subr.bf16.mxu1 %v7015_v42  ;;  %v2816_v47 = vpop.f32.mrb[0].mxu0  ;;  %v7079_v42 = vld [vmem:[%s8051_s11 + $0x600] ss:$24 sps:$4 sm:$0xff]  }
 0x28e   : > { %v2857_v48 = vpop.f32.mrb[0].mxu1  ;;  %v2818_v54 = vpop.f32.mrb[1].mxu0 }
 0x28f   : > { %v8469_v53 = vadd.f32 %v2857_v48, %v2816_v47  ;;  %v2859_v55 = vpop.f32.mrb[1].mxu1  ;;  %v2820_v58 = vpop.f32.mrb[2].mxu0  ;;  %3121 = vmatpush1.bf16.msra.mxu0 %v7010_v43  ;;  %v3168_v43 = vcombine.high %v8510_v37, %v8510_v37  ;;  %v8528_v47 = vcombine.high %v8441_v39, %v8441_v39 }
 0x290   : > { %v8471_v57 = vadd.f32 %v2859_v55, %v2818_v54  ;;  %v2861_v59 = vpop.f32.mrb[2].mxu1  ;;  %4656 = vmatpush1.bf16.msra.mxu1 %v7013_v44  ;;  %v2821_v60 = vpop.f32.mrb[3].mxu0  ;;  %3122 = vmatprep.subr.bf16.mxu0 %v7018_v45  ;;  %v8522_v44 = vrot.slane %v8428_v21, %v8171_v27  ;;  %v7084_v45 = vld [vmem:[%s8051_s11 + $0x334] ss:$24 sps:$4 sm:$0xff]   ;;  %v7082_v21 = vld [vmem:[%s8051_s11 + $0x330] ss:$24 sps:$4 sm:$0xff]  }
 0x291   : > { %v2862_v62 = vpop.f32.mrb[3].mxu1  ;;  %4657 = vmatprep.subr.bf16.mxu1 %v7021_v46  ;;  %v7087_v46 = vld [vmem:[%s8051_s11 + $0x634] ss:$24 sps:$4 sm:$0xff]   ;;  %v8531_v48 = vrot.slane %v3168_v43, %v8171_v27  ;;  %v7093_v54 = vld [vmem:[%s8051_s11 + $0x664] ss:$24 sps:$4 sm:$0xff]  }
 0x292   : > { %v7091_v55 = vld [vmem:[%s8051_s11 + $0x660] ss:$24 sps:$4 sm:$0xff]   ;;  %v7096_v58 = vld [vmem:[%s8051_s11 + $0x394] ss:$24 sps:$4 sm:$0xff]   ;;  %v7094_v60 = vld [vmem:[%s8051_s11 + $0x390] ss:$24 sps:$4 sm:$0xff]  }
 0x293   : > { %3123 = vmatpush1.bf16.msra.mxu0 %v7016_v50  ;;  %v7085_v50 = vld [vmem:[%s8051_s11 + $0x630] ss:$24 sps:$4 sm:$0xff]   ;;  %v7099_v59 = vld [vmem:[%s8051_s11 + $0x694] ss:$24 sps:$4 sm:$0xff]   ;;  %v7153_v43 = vld [vmem:[%s8051_s11 + $0x844] ss:$24 sps:$4 sm:$0xff]  }
 0x294   : > { %4658 = vmatpush1.bf16.msra.mxu1 %v7019_v52  ;;  %3124 = vmatprep.subr.bf16.mxu0 %v7024_v63  ;;  %v7090_v52 = vld [vmem:[%s8051_s11 + $0x364] ss:$24 sps:$4 sm:$0xff]   ;;  %v7097_v62 = vld [vmem:[%s8051_s11 + $0x690] ss:$24 sps:$4 sm:$0xff]  }
 0x295   : > { %4659 = vmatprep.subr.bf16.mxu1 %v7027_v1  ;;  %v7102_v63 = vld [vmem:[%s8051_s11 + $0x3c4] ss:$24 sps:$4 sm:$0xff]  }
 0x296   : > { %v7105_v1 = vld [vmem:[%s8051_s11 + $0x6c4] ss:$24 sps:$4 sm:$0xff]  }
 0x297   : > { %3125 = vmatpush1.bf16.msra.mxu0 %v7022_v2  ;;  %v7100_v2 = vld [vmem:[%s8051_s11 + $0x3c0] ss:$24 sps:$4 sm:$0xff]  }
 0x298   : > { %4660 = vmatpush1.bf16.msra.mxu1 %v7025_v3  ;;  %3126 = vmatprep.subr.bf16.mxu0 %v7030_v8  ;;  %v7103_v3 = vld [vmem:[%s8051_s11 + $0x6c0] ss:$24 sps:$4 sm:$0xff]   ;;  %v7108_v8 = vld [vmem:[%s8051_s11 + $0x3f4] ss:$24 sps:$4 sm:$0xff]  }
 0x299   : > { %4661 = vmatprep.subr.bf16.mxu1 %v7033_v9  ;;  %v7111_v9 = vld [vmem:[%s8051_s11 + $0x6f4] ss:$24 sps:$4 sm:$0xff]  }
 0x29b   : > { %3127 = vmatpush1.bf16.msra.mxu0 %v7028_v10  ;;  %v7106_v10 = vld [vmem:[%s8051_s11 + $0x3f0] ss:$24 sps:$4 sm:$0xff]  }
 0x29c   : > { %4662 = vmatpush1.bf16.msra.mxu1 %v7031_v12  ;;  %3128 = vmatprep.subr.bf16.mxu0 %v7036_v13  ;;  %v7109_v12 = vld [vmem:[%s8051_s11 + $0x6f0] ss:$24 sps:$4 sm:$0xff]   ;;  %v7114_v13 = vld [vmem:[%s8051_s11 + $0x424] ss:$24 sps:$4 sm:$0xff]  }
 0x29d   : > { %4663 = vmatprep.subr.bf16.mxu1 %v7039_v49  ;;  %v7117_v49 = vld [vmem:[%s8051_s11 + $0x724] ss:$24 sps:$4 sm:$0xff]  }
 0x29f   : > { %3129 = vmatpush1.bf16.msra.mxu0 %v7034_v15 }
 0x2a0   : > { %4664 = vmatpush1.bf16.msra.mxu1 %v7037_v0  ;;  %3130 = vmatprep.subr.bf16.mxu0 %v7042_v6  ;;  %v7112_v6 = vld [vmem:[%s8051_s11 + $0x420] ss:$24 sps:$4 sm:$0xff]  }
 0x2a1   : > { %4665 = vmatprep.subr.bf16.mxu1 %v7045_v18  ;;  %v7115_v18 = vld [vmem:[%s8051_s11 + $0x720] ss:$24 sps:$4 sm:$0xff]  }
 0x2a3   : > { %3131 = vmatpush1.bf16.msra.mxu0 %v7040_v19 }
 0x2a4   : > { %4666 = vmatpush1.bf16.msra.mxu1 %v7043_v20  ;;  %3132 = vmatprep.subr.bf16.mxu0 %v7048_v23 }
 0x2a5   : > { %4667 = vmatprep.subr.bf16.mxu1 %v7051_v24 }
 0x2a7   : > { %3133 = vmatpush1.bf16.msra.mxu0 %v7046_v25 }
 0x2a8   : > { %4668 = vmatpush1.bf16.msra.mxu1 %v7049_v26  ;;  %3134 = vmatprep.subr.bf16.mxu0 %v7054_v5 }
 0x2a9   : > { %4669 = vmatprep.subr.bf16.mxu1 %v7057_v7 }
 0x2ab   : > { %3135 = vmatpush1.bf16.msra.mxu0 %v7052_v28  ;;  %v7123_v28 = vld [vmem:[%s8051_s11 + $0x754] ss:$24 sps:$4 sm:$0xff]  }
 0x2ac   : > { %4670 = vmatpush1.bf16.msra.mxu1 %v7055_v11  ;;  %3136 = vmatprep.subr.bf16.mxu0 %v7060_v36  ;;  %v7121_v11 = vld [vmem:[%s8051_s11 + $0x750] ss:$24 sps:$4 sm:$0xff]   ;;  %v7126_v36 = vld [vmem:[%s8051_s11 + $0x484] ss:$24 sps:$4 sm:$0xff]  }
 0x2ad   : > { %4671 = vmatprep.subr.bf16.mxu1 %v7063_v29  ;;  %v7129_v29 = vld [vmem:[%s8051_s11 + $0x784] ss:$24 sps:$4 sm:$0xff]  }
 0x2af   : > { %3137 = vmatpush1.bf16.msra.mxu0 %v7058_v30  ;;  %v7124_v30 = vld [vmem:[%s8051_s11 + $0x480] ss:$24 sps:$4 sm:$0xff]  }
 0x2b0   : > { %4672 = vmatpush1.bf16.msra.mxu1 %v7061_v31  ;;  %3138 = vmatprep.subr.bf16.mxu0 %v7066_v32  ;;  %v7127_v31 = vld [vmem:[%s8051_s11 + $0x780] ss:$24 sps:$4 sm:$0xff]   ;;  %v7132_v32 = vld [vmem:[%s8051_s11 + $0x4b4] ss:$24 sps:$4 sm:$0xff]  }
 0x2b1   : > { %4673 = vmatprep.subr.bf16.mxu1 %v7069_v51  ;;  %v7135_v51 = vld [vmem:[%s8051_s11 + $0x7b4] ss:$24 sps:$4 sm:$0xff]  }
 0x2b3   : > { %3139 = vmatpush1.bf16.msra.mxu0 %v7064_v33  ;;  %v7133_v33 = vld [vmem:[%s8051_s11 + $0x7b0] ss:$24 sps:$4 sm:$0xff]  }
 0x2b4   : > { %4674 = vmatpush1.bf16.msra.mxu1 %v7067_v34  ;;  %3140 = vmatprep.subr.bf16.mxu0 %v7072_v61  ;;  %v7138_v34 = vld [vmem:[%s8051_s11 + $0x4e4] ss:$24 sps:$4 sm:$0xff]  }
 0x2b5   : > { %4675 = vmatprep.subr.bf16.mxu1 %v7075_v35  ;;  %v7141_v61 = vld [vmem:[%s8051_s11 + $0x7e4] ss:$24 sps:$4 sm:$0xff]   ;;  %v7136_v35 = vld [vmem:[%s8051_s11 + $0x4e0] ss:$24 sps:$4 sm:$0xff]  }
 0x2b7   : > { %3141 = vmatpush1.bf16.msra.mxu0 %v7070_v16  ;;  %v7139_v16 = vld [vmem:[%s8051_s11 + $0x7e0] ss:$24 sps:$4 sm:$0xff]  }
 0x2b8   : > { %4676 = vmatpush1.bf16.msra.mxu1 %v7073_v14  ;;  %4686 = vmatprep.subr.bf16.mxu0 %v7078_v38  ;;  %v7144_v14 = vld [vmem:[%s8051_s11 + $0x514] ss:$24 sps:$4 sm:$0xff]  }
 0x2b9   : > { %4727 = vmatprep.subr.bf16.mxu1 %v7081_v40  ;;  %v7147_v38 = vld [vmem:[%s8051_s11 + $0x814] ss:$24 sps:$4 sm:$0xff]   ;;  %v7142_v40 = vld [vmem:[%s8051_s11 + $0x510] ss:$24 sps:$4 sm:$0xff]  }
 0x2ba   : > { %3143 = vmatmul.mubr.bf16.vlgmr.msra.gmra.mrb[16].mxu0 %v8290_v4  ;;  %v7088_v4 = vld [vmem:[%s8051_s11 + $0x360] ss:$24 sps:$4 sm:$0xff]  }
 0x2bb   : > { %4678 = vmatmul.mubr.bf16.vlgmr.msra.gmra.mrb[16].mxu1 %v8522_v44  ;;  %4687 = vmatpush1.bf16.msra.mxu0 %v7076_v41  ;;  %v7145_v41 = vld [vmem:[%s8051_s11 + $0x810] ss:$24 sps:$4 sm:$0xff]  }
 0x2bc   : > { %4728 = vmatpush1.bf16.msra.mxu1 %v7079_v42  ;;  %4688 = vmatprep.subr.bf16.mxu0 %v7084_v45  ;;  %v7150_v42 = vld [vmem:[%s8051_s11 + $0x544] ss:$24 sps:$4 sm:$0xff]   ;;  %v7148_v45 = vld [vmem:[%s8051_s11 + $0x540] ss:$24 sps:$4 sm:$0xff]  }
 0x2bd   : > { %4729 = vmatprep.subr.bf16.mxu1 %v7087_v46  ;;  %4718 = vmatprep.mubr.bf16.mxu0 %v8528_v47  ;;  %v7151_v46 = vld [vmem:[%s8051_s11 + $0x840] ss:$24 sps:$4 sm:$0xff]  }
 0x2be   : > { %4759 = vmatprep.mubr.bf16.mxu1 %v8531_v48 }
 0x2bf   : > { %4689 = vmatpush1.bf16.msra.mxu0 %v7082_v21  ;;  %v7156_v21 = vld [vmem:[%s8051_s11 + $0x574] ss:$24 sps:$4 sm:$0xff]  }
 0x2c0   : > { %4730 = vmatpush1.bf16.msra.mxu1 %v7085_v50  ;;  %4690 = vmatprep.subr.bf16.mxu0 %v7090_v52  ;;  %v7159_v50 = vld [vmem:[%s8051_s11 + $0x874] ss:$24 sps:$4 sm:$0xff]   ;;  %v7154_v52 = vld [vmem:[%s8051_s11 + $0x570] ss:$24 sps:$4 sm:$0xff]  }
 0x2c1   : > { %4731 = vmatprep.subr.bf16.mxu1 %v7093_v54  ;;  %v7157_v54 = vld [vmem:[%s8051_s11 + $0x870] ss:$24 sps:$4 sm:$0xff]  }
 0x2c3   : > { %4691 = vmatpush1.bf16.msra.mxu0 %v7088_v4  ;;  %v7162_v4 = vld [vmem:[%s8051_s11 + $0x5a4] ss:$24 sps:$4 sm:$0xff]  }
 0x2c4   : > { %4732 = vmatpush1.bf16.msra.mxu1 %v7091_v55  ;;  %4692 = vmatprep.subr.bf16.mxu0 %v7096_v58  ;;  %v7165_v55 = vld [vmem:[%s8051_s11 + $0x8a4] ss:$24 sps:$4 sm:$0xff]   ;;  %v7160_v58 = vld [vmem:[%s8051_s11 + $0x5a0] ss:$24 sps:$4 sm:$0xff]  }
 0x2c5   : > { %4733 = vmatprep.subr.bf16.mxu1 %v7099_v59  ;;  %v7163_v59 = vld [vmem:[%s8051_s11 + $0x8a0] ss:$24 sps:$4 sm:$0xff]  }
 0x2c7   : > { %4693 = vmatpush1.bf16.msra.mxu0 %v7094_v60  ;;  %v7168_v60 = vld [vmem:[%s8051_s11 + $0x5d4] ss:$24 sps:$4 sm:$0xff]  }
 0x2c8   : > { %4734 = vmatpush1.bf16.msra.mxu1 %v7097_v62  ;;  %4694 = vmatprep.subr.bf16.mxu0 %v7102_v63  ;;  %v7171_v62 = vld [vmem:[%s8051_s11 + $0x8d4] ss:$24 sps:$4 sm:$0xff]   ;;  %v7166_v63 = vld [vmem:[%s8051_s11 + $0x5d0] ss:$24 sps:$4 sm:$0xff]  }
 0x2c9   : > { %4735 = vmatprep.subr.bf16.mxu1 %v7105_v1  ;;  %v7169_v1 = vld [vmem:[%s8051_s11 + $0x8d0] ss:$24 sps:$4 sm:$0xff]  }
 0x2cb   : > { %4695 = vmatpush1.bf16.msra.mxu0 %v7100_v2  ;;  %v7175_v2 = vld [vmem:[%s8051_s11 + $0xc] ss:$24 sps:$4 sm:$0xff]  }
 0x2cc   : > { %4736 = vmatpush1.bf16.msra.mxu1 %v7103_v3  ;;  %4696 = vmatprep.subr.bf16.mxu0 %v7108_v8  ;;  %v7178_v3 = vld [vmem:[%s8051_s11 + $0x30c] ss:$24 sps:$4 sm:$0xff]   ;;  %v7173_v8 = vld [vmem:[%s8051_s11 + $0x8] ss:$24 sps:$4 sm:$0xff]  }
 0x2cd   : > { %4737 = vmatprep.subr.bf16.mxu1 %v7111_v9  ;;  %v2898_v15 = vpop.f32.mrb[4].mxu0  ;;  %v7176_v9 = vld [vmem:[%s8051_s11 + $0x308] ss:$24 sps:$4 sm:$0xff]  }
 0x2ce   : > { %v8557_v0 = vpop.f32.mrb[4].mxu1  ;;  %v8562_v19 = vadd.f32 %v2898_v15, %v8469_v53  ;;  %v2900_v20 = vpop.f32.mrb[5].mxu0  ;;  %v7120_v53 = vld [vmem:[%s8051_s11 + $0x454] ss:$24 sps:$4 sm:$0xff]   ;;  %v7179_v15 = vld [vmem:[%s8051_s11 + $0x38] ss:$24 sps:$4 sm:$0xff]  }
 0x2cf   : > { %v8564_v23 = vpop.f32.mrb[5].mxu1  ;;  %v8567_v24 = vadd.f32 %v2900_v20, %v8471_v57  ;;  %v2902_v25 = vpop.f32.mrb[6].mxu0  ;;  %4697 = vmatpush1.bf16.msra.mxu0 %v7106_v10  ;;  %v7118_v57 = vld [vmem:[%s8051_s11 + $0x450] ss:$24 sps:$4 sm:$0xff]   ;;  %v8611_v10 = vcombine.high %v8522_v44, %v8522_v44 }
 0x2d0   : > { %v2943_v26 = vpop.f32.mrb[6].mxu1  ;;  %4738 = vmatpush1.bf16.msra.mxu1 %v7109_v12  ;;  %v2903_v5 = vpop.f32.mrb[7].mxu0  ;;  %4698 = vmatprep.subr.bf16.mxu0 %v7114_v13  ;;  %v8615_v12 = vrot.slane %v8510_v37, %v8171_v27  ;;  %v7181_v13 = vld [vmem:[%s8051_s11 + $0x3c] ss:$24 sps:$4 sm:$0xff]   ;;  %v7182_v27 = vld [vmem:[%s8051_s11 + $0x338] ss:$24 sps:$4 sm:$0xff]  }
 0x2d1   : > { %v2944_v7 = vpop.f32.mrb[7].mxu1  ;;  %4739 = vmatprep.subr.bf16.mxu1 %v7117_v49  ;;  %v7184_v49 = vld [vmem:[%s8051_s11 + $0x33c] ss:$24 sps:$4 sm:$0xff]   ;;  %v7187_v37 = vld [vmem:[%s8051_s11 + $0x6c] ss:$24 sps:$4 sm:$0xff]  }
 0x2d2   : > { %v7188_v20 = vld [vmem:[%s8051_s11 + $0x368] ss:$24 sps:$4 sm:$0xff]   ;;  %v7193_v25 = vld [vmem:[%s8051_s11 + $0x9c] ss:$24 sps:$4 sm:$0xff]   ;;  %v7191_v5 = vld [vmem:[%s8051_s11 + $0x98] ss:$24 sps:$4 sm:$0xff]  }
 0x2d3   : > { %4699 = vmatpush1.bf16.msra.mxu0 %v7112_v6  ;;  %v7190_v6 = vld [vmem:[%s8051_s11 + $0x36c] ss:$24 sps:$4 sm:$0xff]   ;;  %v7196_v26 = vld [vmem:[%s8051_s11 + $0x39c] ss:$24 sps:$4 sm:$0xff]   ;;  %v7194_v7 = vld [vmem:[%s8051_s11 + $0x398] ss:$24 sps:$4 sm:$0xff]  }
 0x2d4   : > { %4740 = vmatpush1.bf16.msra.mxu1 %v7115_v18  ;;  %4700 = vmatprep.subr.bf16.mxu0 %v7120_v53  ;;  %v7185_v18 = vld [vmem:[%s8051_s11 + $0x68] ss:$24 sps:$4 sm:$0xff]   ;;  %v7199_v53 = vld [vmem:[%s8051_s11 + $0xcc] ss:$24 sps:$4 sm:$0xff]  }
 0x2d5   : > { %4741 = vmatprep.subr.bf16.mxu1 %v7123_v28  ;;  %v7202_v28 = vld [vmem:[%s8051_s11 + $0x3cc] ss:$24 sps:$4 sm:$0xff]  }
 0x2d7   : > { %4701 = vmatpush1.bf16.msra.mxu0 %v7118_v57  ;;  %v7197_v57 = vld [vmem:[%s8051_s11 + $0xc8] ss:$24 sps:$4 sm:$0xff]  }
 0x2d8   : > { %4742 = vmatpush1.bf16.msra.mxu1 %v7121_v11  ;;  %4702 = vmatprep.subr.bf16.mxu0 %v7126_v36  ;;  %v7200_v11 = vld [vmem:[%s8051_s11 + $0x3c8] ss:$24 sps:$4 sm:$0xff]   ;;  %v7205_v36 = vld [vmem:[%s8051_s11 + $0xfc] ss:$24 sps:$4 sm:$0xff]  }
 0x2d9   : > { %4743 = vmatprep.subr.bf16.mxu1 %v7129_v29  ;;  %v7208_v29 = vld [vmem:[%s8051_s11 + $0x3fc] ss:$24 sps:$4 sm:$0xff]  }
 0x2db   : > { %4703 = vmatpush1.bf16.msra.mxu0 %v7124_v30  ;;  %v7203_v30 = vld [vmem:[%s8051_s11 + $0xf8] ss:$24 sps:$4 sm:$0xff]  }
 0x2dc   : > { %4744 = vmatpush1.bf16.msra.mxu1 %v7127_v31  ;;  %4704 = vmatprep.subr.bf16.mxu0 %v7132_v32  ;;  %v7206_v31 = vld [vmem:[%s8051_s11 + $0x3f8] ss:$24 sps:$4 sm:$0xff]   ;;  %v7211_v32 = vld [vmem:[%s8051_s11 + $0x12c] ss:$24 sps:$4 sm:$0xff]  }
 0x2dd   : > { %4745 = vmatprep.subr.bf16.mxu1 %v7135_v51  ;;  %v7214_v51 = vld [vmem:[%s8051_s11 + $0x42c] ss:$24 sps:$4 sm:$0xff]  }
 0x2df   : > { %4705 = vmatpush1.bf16.msra.mxu0 %v7130_v56 }
 0x2e0   : > { %4746 = vmatpush1.bf16.msra.mxu1 %v7133_v33  ;;  %4706 = vmatprep.subr.bf16.mxu0 %v7138_v34 }
 0x2e1   : > { %4747 = vmatprep.subr.bf16.mxu1 %v7141_v61 }
 0x2e3   : > { %4707 = vmatpush1.bf16.msra.mxu0 %v7136_v35 }
 0x2e4   : > { %4748 = vmatpush1.bf16.msra.mxu1 %v7139_v16  ;;  %4708 = vmatprep.subr.bf16.mxu0 %v7144_v14 }
 0x2e5   : > { %4749 = vmatprep.subr.bf16.mxu1 %v7147_v38 }
 0x2e7   : > { %4709 = vmatpush1.bf16.msra.mxu0 %v7142_v40  ;;  %v7209_v40 = vld [vmem:[%s8051_s11 + $0x128] ss:$24 sps:$4 sm:$0xff]  }
 0x2e8   : > { %4750 = vmatpush1.bf16.msra.mxu1 %v7145_v41  ;;  %4710 = vmatprep.subr.bf16.mxu0 %v7150_v42  ;;  %v7212_v41 = vld [vmem:[%s8051_s11 + $0x428] ss:$24 sps:$4 sm:$0xff]  }
 0x2e9   : > { %4751 = vmatprep.subr.bf16.mxu1 %v7153_v43 }
 0x2eb   : > { %4711 = vmatpush1.bf16.msra.mxu0 %v7148_v45 }
 0x2ec   : > { %4752 = vmatpush1.bf16.msra.mxu1 %v7151_v46  ;;  %4712 = vmatprep.subr.bf16.mxu0 %v7156_v21  ;;  %v7215_v21 = vld [vmem:[%s8051_s11 + $0x158] ss:$24 sps:$4 sm:$0xff]  }
 0x2ed   : > { %4753 = vmatprep.subr.bf16.mxu1 %v7159_v50  ;;  %v7218_v50 = vld [vmem:[%s8051_s11 + $0x458] ss:$24 sps:$4 sm:$0xff]  }
 0x2ef   : > { %4713 = vmatpush1.bf16.msra.mxu0 %v7154_v52  ;;  %v7223_v52 = vld [vmem:[%s8051_s11 + $0x18c] ss:$24 sps:$4 sm:$0xff]  }
 0x2f0   : > { %4754 = vmatpush1.bf16.msra.mxu1 %v7157_v54  ;;  %4714 = vmatprep.subr.bf16.mxu0 %v7162_v4  ;;  %v7226_v54 = vld [vmem:[%s8051_s11 + $0x48c] ss:$24 sps:$4 sm:$0xff]   ;;  %v7221_v4 = vld [vmem:[%s8051_s11 + $0x188] ss:$24 sps:$4 sm:$0xff]  }
 0x2f1   : > { %4755 = vmatprep.subr.bf16.mxu1 %v7165_v55  ;;  %v7224_v55 = vld [vmem:[%s8051_s11 + $0x488] ss:$24 sps:$4 sm:$0xff]  }
 0x2f3   : > { %4715 = vmatpush1.bf16.msra.mxu0 %v7160_v58  ;;  %v7229_v58 = vld [vmem:[%s8051_s11 + $0x1bc] ss:$24 sps:$4 sm:$0xff]  }
 0x2f4   : > { %4756 = vmatpush1.bf16.msra.mxu1 %v7163_v59  ;;  %4716 = vmatprep.subr.bf16.mxu0 %v7168_v60  ;;  %v7232_v59 = vld [vmem:[%s8051_s11 + $0x4bc] ss:$24 sps:$4 sm:$0xff]   ;;  %v7227_v60 = vld [vmem:[%s8051_s11 + $0x1b8] ss:$24 sps:$4 sm:$0xff]  }
 0x2f5   : > { %4757 = vmatprep.subr.bf16.mxu1 %v7171_v62  ;;  %v7230_v62 = vld [vmem:[%s8051_s11 + $0x4b8] ss:$24 sps:$4 sm:$0xff]  }
 0x2f7   : > { %4717 = vmatpush1.bf16.msra.mxu0 %v7166_v63  ;;  %v7235_v63 = vld [vmem:[%s8051_s11 + $0x1ec] ss:$24 sps:$4 sm:$0xff]  }
 0x2f8   : > { %4758 = vmatpush1.bf16.msra.mxu1 %v7169_v1  ;;  %4768 = vmatprep.subr.bf16.mxu0 %v7175_v2  ;;  %v7238_v1 = vld [vmem:[%s8051_s11 + $0x4ec] ss:$24 sps:$4 sm:$0xff]   ;;  %v7233_v2 = vld [vmem:[%s8051_s11 + $0x1e8] ss:$24 sps:$4 sm:$0xff]  }
 0x2f9   : > { %4809 = vmatprep.subr.bf16.mxu1 %v7178_v3  ;;  %v7236_v3 = vld [vmem:[%s8051_s11 + $0x4e8] ss:$24 sps:$4 sm:$0xff]  }
 0x2fa   : > { %4719 = vmatmul.mubr.bf16.vlgmr.msra.gmra.mrb[20].mxu0 %v8611_v10 }
 0x2fb   : > { %4760 = vmatmul.mubr.bf16.vlgmr.msra.gmra.mrb[20].mxu1 %v8615_v12  ;;  %4769 = vmatpush1.bf16.msra.mxu0 %v7173_v8  ;;  %v7241_v8 = vld [vmem:[%s8051_s11 + $0x21c] ss:$24 sps:$4 sm:$0xff]  }
 0x2fc   : > { %4810 = vmatpush1.bf16.msra.mxu1 %v7176_v9  ;;  %4770 = vmatprep.subr.bf16.mxu0 %v7181_v13  ;;  %v7244_v9 = vld [vmem:[%s8051_s11 + $0x51c] ss:$24 sps:$4 sm:$0xff]   ;;  %v7239_v13 = vld [vmem:[%s8051_s11 + $0x218] ss:$24 sps:$4 sm:$0xff]  }
 0x2fd   : > { %4811 = vmatprep.subr.bf16.mxu1 %v7184_v49  ;;  %4800 = vmatprep.mubr.bf16.mxu0 %v8441_v39  ;;  %v7242_v49 = vld [vmem:[%s8051_s11 + $0x518] ss:$24 sps:$4 sm:$0xff]  }
 0x2fe   : > { %4841 = vmatprep.mubr.bf16.mxu1 %v8528_v47 }
 0x2ff   : > { %4771 = vmatpush1.bf16.msra.mxu0 %v7179_v15  ;;  %v7247_v15 = vld [vmem:[%s8051_s11 + $0x24c] ss:$24 sps:$4 sm:$0xff]  }
 0x300   : > { %4812 = vmatpush1.bf16.msra.mxu1 %v7182_v27  ;;  %4772 = vmatprep.subr.bf16.mxu0 %v7187_v37  ;;  %v7250_v27 = vld [vmem:[%s8051_s11 + $0x54c] ss:$24 sps:$4 sm:$0xff]   ;;  %v7245_v37 = vld [vmem:[%s8051_s11 + $0x248] ss:$24 sps:$4 sm:$0xff]  }
 0x301   : > { %4813 = vmatprep.subr.bf16.mxu1 %v7190_v6  ;;  %v7248_v6 = vld [vmem:[%s8051_s11 + $0x548] ss:$24 sps:$4 sm:$0xff]  }
 0x303   : > { %4773 = vmatpush1.bf16.msra.mxu0 %v7185_v18  ;;  %v7253_v18 = vld [vmem:[%s8051_s11 + $0x27c] ss:$24 sps:$4 sm:$0xff]  }
 0x304   : > { %4814 = vmatpush1.bf16.msra.mxu1 %v7188_v20  ;;  %4774 = vmatprep.subr.bf16.mxu0 %v7193_v25  ;;  %v7256_v20 = vld [vmem:[%s8051_s11 + $0x57c] ss:$24 sps:$4 sm:$0xff]   ;;  %v7251_v25 = vld [vmem:[%s8051_s11 + $0x278] ss:$24 sps:$4 sm:$0xff]  }
 0x305   : > { %4815 = vmatprep.subr.bf16.mxu1 %v7196_v26  ;;  %v7254_v26 = vld [vmem:[%s8051_s11 + $0x578] ss:$24 sps:$4 sm:$0xff]  }
 0x307   : > { %4775 = vmatpush1.bf16.msra.mxu0 %v7191_v5  ;;  %v7259_v5 = vld [vmem:[%s8051_s11 + $0x2ac] ss:$24 sps:$4 sm:$0xff]  }
 0x308   : > { %4816 = vmatpush1.bf16.msra.mxu1 %v7194_v7  ;;  %4776 = vmatprep.subr.bf16.mxu0 %v7199_v53  ;;  %v7262_v7 = vld [vmem:[%s8051_s11 + $0x5ac] ss:$24 sps:$4 sm:$0xff]   ;;  %v7257_v53 = vld [vmem:[%s8051_s11 + $0x2a8] ss:$24 sps:$4 sm:$0xff]  }
 0x309   : > { %4817 = vmatprep.subr.bf16.mxu1 %v7202_v28  ;;  %v7260_v28 = vld [vmem:[%s8051_s11 + $0x5a8] ss:$24 sps:$4 sm:$0xff]  }
 0x30b   : > { %4777 = vmatpush1.bf16.msra.mxu0 %v7197_v57  ;;  %v7265_v57 = vld [vmem:[%s8051_s11 + $0x2dc] ss:$24 sps:$4 sm:$0xff]  }
 0x30c   : > { %4818 = vmatpush1.bf16.msra.mxu1 %v7200_v11  ;;  %4778 = vmatprep.subr.bf16.mxu0 %v7205_v36  ;;  %v7268_v11 = vld [vmem:[%s8051_s11 + $0x5dc] ss:$24 sps:$4 sm:$0xff]   ;;  %v7263_v36 = vld [vmem:[%s8051_s11 + $0x2d8] ss:$24 sps:$4 sm:$0xff]  }
 0x30d   : > { %4819 = vmatprep.subr.bf16.mxu1 %v7208_v29  ;;  %v2980_v56 = vpop.f32.mrb[8].mxu0  ;;  %v7266_v29 = vld [vmem:[%s8051_s11 + $0x5d8] ss:$24 sps:$4 sm:$0xff]  }
 0x30e   : > { %v3021_v33 = vpop.f32.mrb[8].mxu1  ;;  %v2981_v34 = vadd.f32 %v2980_v56, %v8557_v0  ;;  %v2982_v61 = vpop.f32.mrb[9].mxu0  ;;  %v7217_v0 = vld [vmem:[%s8051_s11 + $0x15c] ss:$24 sps:$4 sm:$0xff]  }
 0x30f   : > { %v3023_v35 = vpop.f32.mrb[9].mxu1  ;;  %v2983_v16 = vadd.f32 %v2982_v61, %v8564_v23  ;;  %v2984_v14 = vpop.f32.mrb[10].mxu0  ;;  %4779 = vmatpush1.bf16.msra.mxu0 %v7203_v30  ;;  %v7220_v23 = vld [vmem:[%s8051_s11 + $0x45c] ss:$24 sps:$4 sm:$0xff]   ;;  %v7271_v30 = vld [vmem:[%s8051_s11 + $0x60c] ss:$24 sps:$4 sm:$0xff]  }
 0x310   : > { %v3025_v38 = vpop.f32.mrb[10].mxu1  ;;  %4820 = vmatpush1.bf16.msra.mxu1 %v7206_v31  ;;  %v8647_v42 = vadd.f32 %v3021_v33, %v2981_v34  ;;  %v2985_v43 = vpop.f32.mrb[11].mxu0  ;;  %4780 = vmatprep.subr.bf16.mxu0 %v7211_v32  ;;  %v7274_v31 = vld [vmem:[%s8051_s11 + $0x14] ss:$24 sps:$4 sm:$0xff]   ;;  %v7269_v32 = vld [vmem:[%s8051_s11 + $0x608] ss:$24 sps:$4 sm:$0xff]  }
 0x311   : > { %v3026_v45 = vpop.f32.mrb[11].mxu1  ;;  %4821 = vmatprep.subr.bf16.mxu1 %v7214_v51  ;;  %v8651_v46 = vadd.f32 %v3023_v35, %v2983_v16  ;;  %v7272_v51 = vld [vmem:[%s8051_s11 + $0x10] ss:$24 sps:$4 sm:$0xff]   ;;  %v7277_v56 = vld [vmem:[%s8051_s11 + $0x63c] ss:$24 sps:$4 sm:$0xff]  }
 0x312   : > { %v7280_v33 = vld [vmem:[%s8051_s11 + $0x44] ss:$24 sps:$4 sm:$0xff]   ;;  %v7275_v34 = vld [vmem:[%s8051_s11 + $0x638] ss:$24 sps:$4 sm:$0xff]   ;;  %v7286_v16 = vld [vmem:[%s8051_s11 + $0x74] ss:$24 sps:$4 sm:$0xff]  }
 0x313   : > { %4781 = vmatpush1.bf16.msra.mxu0 %v7209_v40  ;;  %v7278_v61 = vld [vmem:[%s8051_s11 + $0x40] ss:$24 sps:$4 sm:$0xff]   ;;  %v7283_v35 = vld [vmem:[%s8051_s11 + $0x66c] ss:$24 sps:$4 sm:$0xff]   ;;  %v7284_v38 = vld [vmem:[%s8051_s11 + $0x70] ss:$24 sps:$4 sm:$0xff]  }
 0x314   : > { %4822 = vmatpush1.bf16.msra.mxu1 %v7212_v41  ;;  %4782 = vmatprep.subr.bf16.mxu0 %v7217_v0  ;;  %v7281_v14 = vld [vmem:[%s8051_s11 + $0x668] ss:$24 sps:$4 sm:$0xff]   ;;  %v7289_v40 = vld [vmem:[%s8051_s11 + $0x69c] ss:$24 sps:$4 sm:$0xff]   ;;  %v7287_v43 = vld [vmem:[%s8051_s11 + $0x698] ss:$24 sps:$4 sm:$0xff]  }
 0x315   : > { %4823 = vmatprep.subr.bf16.mxu1 %v7220_v23  ;;  %v7292_v41 = vld [vmem:[%s8051_s11 + $0xa4] ss:$24 sps:$4 sm:$0xff]   ;;  %v7290_v45 = vld [vmem:[%s8051_s11 + $0xa0] ss:$24 sps:$4 sm:$0xff]   ;;  %v7298_v0 = vld [vmem:[%s8051_s11 + $0xd4] ss:$24 sps:$4 sm:$0xff]  }
 0x316   : > { %v7293_v23 = vld [vmem:[%s8051_s11 + $0x6c8] ss:$24 sps:$4 sm:$0xff]  }
 0x317   : > { %4783 = vmatpush1.bf16.msra.mxu0 %v7215_v21  ;;  %v7296_v21 = vld [vmem:[%s8051_s11 + $0xd0] ss:$24 sps:$4 sm:$0xff]  }
 0x318   : > { %4824 = vmatpush1.bf16.msra.mxu1 %v7218_v50  ;;  %4784 = vmatprep.subr.bf16.mxu0 %v7223_v52  ;;  %v7301_v50 = vld [vmem:[%s8051_s11 + $0x6fc] ss:$24 sps:$4 sm:$0xff]  }
 0x319   : > { %4825 = vmatprep.subr.bf16.mxu1 %v7226_v54  ;;  %v7304_v52 = vld [vmem:[%s8051_s11 + $0x104] ss:$24 sps:$4 sm:$0xff]   ;;  %v7299_v54 = vld [vmem:[%s8051_s11 + $0x6f8] ss:$24 sps:$4 sm:$0xff]  }
 0x31b   : > { %4785 = vmatpush1.bf16.msra.mxu0 %v7221_v4  ;;  %v7302_v4 = vld [vmem:[%s8051_s11 + $0x100] ss:$24 sps:$4 sm:$0xff]  }
 0x31c   : > { %4826 = vmatpush1.bf16.msra.mxu1 %v7224_v55  ;;  %4786 = vmatprep.subr.bf16.mxu0 %v7229_v58  ;;  %v7307_v55 = vld [vmem:[%s8051_s11 + $0x72c] ss:$24 sps:$4 sm:$0xff]  }
 0x31d   : > { %4827 = vmatprep.subr.bf16.mxu1 %v7232_v59  ;;  %v7310_v58 = vld [vmem:[%s8051_s11 + $0x134] ss:$24 sps:$4 sm:$0xff]  }
 0x31f   : > { %4787 = vmatpush1.bf16.msra.mxu0 %v7227_v60 }
 0x320   : > { %4828 = vmatpush1.bf16.msra.mxu1 %v7230_v62  ;;  %4788 = vmatprep.subr.bf16.mxu0 %v7235_v63 }
 0x321   : > { %4829 = vmatprep.subr.bf16.mxu1 %v7238_v1 }
 0x323   : > { %4789 = vmatpush1.bf16.msra.mxu0 %v7233_v2 }
 0x324   : > { %4830 = vmatpush1.bf16.msra.mxu1 %v7236_v3  ;;  %4790 = vmatprep.subr.bf16.mxu0 %v7241_v8 }
 0x325   : > { %4831 = vmatprep.subr.bf16.mxu1 %v7244_v9  ;;  %v7305_v9 = vld [vmem:[%s8051_s11 + $0x728] ss:$24 sps:$4 sm:$0xff]  }
 0x327   : > { %4791 = vmatpush1.bf16.msra.mxu0 %v7239_v13  ;;  %v7308_v13 = vld [vmem:[%s8051_s11 + $0x130] ss:$24 sps:$4 sm:$0xff]  }
 0x328   : > { %4832 = vmatpush1.bf16.msra.mxu1 %v7242_v49  ;;  %4792 = vmatprep.subr.bf16.mxu0 %v7247_v15 }
 0x329   : > { %4833 = vmatprep.subr.bf16.mxu1 %v7250_v27  ;;  %v7313_v27 = vld [vmem:[%s8051_s11 + $0x75c] ss:$24 sps:$4 sm:$0xff]  }
 0x32b   : > { %4793 = vmatpush1.bf16.msra.mxu0 %v7245_v37  ;;  %v7316_v37 = vld [vmem:[%s8051_s11 + $0x164] ss:$24 sps:$4 sm:$0xff]  }
 0x32c   : > { %4834 = vmatpush1.bf16.msra.mxu1 %v7248_v6  ;;  %4794 = vmatprep.subr.bf16.mxu0 %v7253_v18  ;;  %v7311_v6 = vld [vmem:[%s8051_s11 + $0x758] ss:$24 sps:$4 sm:$0xff]  }
 0x32d   : > { %4835 = vmatprep.subr.bf16.mxu1 %v7256_v20  ;;  %v7314_v18 = vld [vmem:[%s8051_s11 + $0x160] ss:$24 sps:$4 sm:$0xff]   ;;  %v7319_v20 = vld [vmem:[%s8051_s11 + $0x78c] ss:$24 sps:$4 sm:$0xff]  }
 0x32f   : > { %4795 = vmatpush1.bf16.msra.mxu0 %v7251_v25  ;;  %v7322_v25 = vld [vmem:[%s8051_s11 + $0x194] ss:$24 sps:$4 sm:$0xff]  }
 0x330   : > { %4836 = vmatpush1.bf16.msra.mxu1 %v7254_v26  ;;  %4796 = vmatprep.subr.bf16.mxu0 %v7259_v5  ;;  %v7317_v26 = vld [vmem:[%s8051_s11 + $0x788] ss:$24 sps:$4 sm:$0xff]  }
 0x331   : > { %4837 = vmatprep.subr.bf16.mxu1 %v7262_v7  ;;  %v7320_v5 = vld [vmem:[%s8051_s11 + $0x190] ss:$24 sps:$4 sm:$0xff]   ;;  %v7325_v7 = vld [vmem:[%s8051_s11 + $0x7bc] ss:$24 sps:$4 sm:$0xff]  }
 0x333   : > { %4797 = vmatpush1.bf16.msra.mxu0 %v7257_v53  ;;  %v7328_v53 = vld [vmem:[%s8051_s11 + $0x1c4] ss:$24 sps:$4 sm:$0xff]  }
 0x334   : > { %4838 = vmatpush1.bf16.msra.mxu1 %v7260_v28  ;;  %4798 = vmatprep.subr.bf16.mxu0 %v7265_v57  ;;  %v7323_v28 = vld [vmem:[%s8051_s11 + $0x7b8] ss:$24 sps:$4 sm:$0xff]  }
 0x335   : > { %4839 = vmatprep.subr.bf16.mxu1 %v7268_v11  ;;  %v7326_v57 = vld [vmem:[%s8051_s11 + $0x1c0] ss:$24 sps:$4 sm:$0xff]   ;;  %v7331_v11 = vld [vmem:[%s8051_s11 + $0x7ec] ss:$24 sps:$4 sm:$0xff]  }
 0x337   : > { %4799 = vmatpush1.bf16.msra.mxu0 %v7263_v36  ;;  %v7334_v36 = vld [vmem:[%s8051_s11 + $0x1f4] ss:$24 sps:$4 sm:$0xff]  }
 0x338   : > { %4840 = vmatpush1.bf16.msra.mxu1 %v7266_v29  ;;  %4850 = vmatprep.subr.bf16.mxu0 %v7271_v30  ;;  %v7329_v29 = vld [vmem:[%s8051_s11 + $0x7e8] ss:$24 sps:$4 sm:$0xff]  }
 0x339   : > { %4891 = vmatprep.subr.bf16.mxu1 %v7274_v31  ;;  %v7332_v30 = vld [vmem:[%s8051_s11 + $0x1f0] ss:$24 sps:$4 sm:$0xff]   ;;  %v7337_v31 = vld [vmem:[%s8051_s11 + $0x81c] ss:$24 sps:$4 sm:$0xff]  }
 0x33a   : > { %4801 = vmatmul.mubr.bf16.vlgmr.msra.gmra.mrb[24].mxu0 %v8522_v44 }
 0x33b   : > { %4842 = vmatmul.mubr.bf16.vlgmr.msra.gmra.mrb[24].mxu1 %v8611_v10  ;;  %4851 = vmatpush1.bf16.msra.mxu0 %v7269_v32  ;;  %v7340_v32 = vld [vmem:[%s8051_s11 + $0x224] ss:$24 sps:$4 sm:$0xff]  }
 0x33c   : > { %4892 = vmatpush1.bf16.msra.mxu1 %v7272_v51  ;;  %4852 = vmatprep.subr.bf16.mxu0 %v7277_v56  ;;  %v7335_v51 = vld [vmem:[%s8051_s11 + $0x818] ss:$24 sps:$4 sm:$0xff]  }
 0x33d   : > { %4893 = vmatprep.subr.bf16.mxu1 %v7280_v33  ;;  %4882 = vmatprep.mubr.bf16.mxu0 %v8531_v48  ;;  %v7338_v56 = vld [vmem:[%s8051_s11 + $0x220] ss:$24 sps:$4 sm:$0xff]   ;;  %v7343_v33 = vld [vmem:[%s8051_s11 + $0x84c] ss:$24 sps:$4 sm:$0xff]  }
 0x33e   : > { %4923 = vmatprep.mubr.bf16.mxu1 %v8441_v39  ;;  %v7295_v39 = vld [vmem:[%s8051_s11 + $0x6cc] ss:$24 sps:$4 sm:$0xff]  }
 0x33f   : > { %4853 = vmatpush1.bf16.msra.mxu0 %v7275_v34  ;;  %v7346_v34 = vld [vmem:[%s8051_s11 + $0x254] ss:$24 sps:$4 sm:$0xff]  }
 0x340   : > { %4894 = vmatpush1.bf16.msra.mxu1 %v7278_v61  ;;  %4854 = vmatprep.subr.bf16.mxu0 %v7283_v35  ;;  %v7341_v61 = vld [vmem:[%s8051_s11 + $0x848] ss:$24 sps:$4 sm:$0xff]  }
 0x341   : > { %4895 = vmatprep.subr.bf16.mxu1 %v7286_v16  ;;  %v7344_v35 = vld [vmem:[%s8051_s11 + $0x250] ss:$24 sps:$4 sm:$0xff]   ;;  %v7349_v16 = vld [vmem:[%s8051_s11 + $0x87c] ss:$24 sps:$4 sm:$0xff]  }
 0x343   : > { %4855 = vmatpush1.bf16.msra.mxu0 %v7281_v14  ;;  %v7352_v14 = vld [vmem:[%s8051_s11 + $0x284] ss:$24 sps:$4 sm:$0xff]  }
 0x344   : > { %4896 = vmatpush1.bf16.msra.mxu1 %v7284_v38  ;;  %4856 = vmatprep.subr.bf16.mxu0 %v7289_v40  ;;  %v7347_v38 = vld [vmem:[%s8051_s11 + $0x878] ss:$24 sps:$4 sm:$0xff]  }
 0x345   : > { %4897 = vmatprep.subr.bf16.mxu1 %v7292_v41  ;;  %v7350_v40 = vld [vmem:[%s8051_s11 + $0x280] ss:$24 sps:$4 sm:$0xff]   ;;  %v7355_v41 = vld [vmem:[%s8051_s11 + $0x8ac] ss:$24 sps:$4 sm:$0xff]  }
 0x347   : > { %4857 = vmatpush1.bf16.msra.mxu0 %v7287_v43  ;;  %v7358_v43 = vld [vmem:[%s8051_s11 + $0x2b4] ss:$24 sps:$4 sm:$0xff]  }
 0x348   : > { %4898 = vmatpush1.bf16.msra.mxu1 %v7290_v45  ;;  %4858 = vmatprep.subr.bf16.mxu0 %v7295_v39  ;;  %v7353_v45 = vld [vmem:[%s8051_s11 + $0x8a8] ss:$24 sps:$4 sm:$0xff]  }
 0x349   : > { %4899 = vmatprep.subr.bf16.mxu1 %v7298_v0  ;;  %v7356_v39 = vld [vmem:[%s8051_s11 + $0x2b0] ss:$24 sps:$4 sm:$0xff]   ;;  %v7361_v0 = vld [vmem:[%s8051_s11 + $0x8dc] ss:$24 sps:$4 sm:$0xff]  }
 0x34b   : > { %4859 = vmatpush1.bf16.msra.mxu0 %v7293_v23  ;;  %v7364_v23 = vld [vmem:[%s8051_s11 + $0x2e4] ss:$24 sps:$4 sm:$0xff]  }
 0x34c   : > { %4900 = vmatpush1.bf16.msra.mxu1 %v7296_v21  ;;  %4860 = vmatprep.subr.bf16.mxu0 %v7301_v50  ;;  %v7359_v21 = vld [vmem:[%s8051_s11 + $0x8d8] ss:$24 sps:$4 sm:$0xff]  }
 0x34d   : > { %4901 = vmatprep.subr.bf16.mxu1 %v7304_v52  ;;  %v3062_v59 = vpop.f32.mrb[12].mxu0  ;;  %v7362_v50 = vld [vmem:[%s8051_s11 + $0x2e0] ss:$24 sps:$4 sm:$0xff]   ;;  %v7367_v52 = vld [vmem:[%s8051_s11 + $0x314] ss:$24 sps:$4 sm:$0xff]  }
 0x34e   : > { %v3103_v60 = vpop.f32.mrb[12].mxu1  ;;  %v3064_v63 = vpop.f32.mrb[13].mxu0 }
 0x34f   : > { %v8717_v62 = vadd.f32 %v3103_v60, %v3062_v59  ;;  %v3105_v1 = vpop.f32.mrb[13].mxu1  ;;  %v3066_v3 = vpop.f32.mrb[14].mxu0  ;;  %4861 = vmatpush1.bf16.msra.mxu0 %v7299_v54  ;;  %v7370_v54 = vld [vmem:[%s8051_s11 + $0x614] ss:$24 sps:$4 sm:$0xff]   ;;  %v7376_v59 = vld [vmem:[%s8051_s11 + $0x644] ss:$24 sps:$4 sm:$0xff]  }
 0x350   : > { %v8719_v2 = vadd.f32 %v3105_v1, %v3064_v63  ;;  %v3107_v8 = vpop.f32.mrb[14].mxu1  ;;  %4902 = vmatpush1.bf16.msra.mxu1 %v7302_v4  ;;  %v3067_v49 = vpop.f32.mrb[15].mxu0  ;;  %4862 = vmatprep.subr.bf16.mxu0 %v7307_v55  ;;  %v7365_v4 = vld [vmem:[%s8051_s11 + $0x310] ss:$24 sps:$4 sm:$0xff]   ;;  %v7371_v60 = vld [vmem:[%s8051_s11 + $0x340] ss:$24 sps:$4 sm:$0xff]  }
 0x351   : > { %v3108_v15 = vpop.f32.mrb[15].mxu1  ;;  %4903 = vmatprep.subr.bf16.mxu1 %v7310_v58  ;;  %v7368_v55 = vld [vmem:[%s8051_s11 + $0x610] ss:$24 sps:$4 sm:$0xff]   ;;  %v7373_v58 = vld [vmem:[%s8051_s11 + $0x344] ss:$24 sps:$4 sm:$0xff]  }
 0x352   : > { %v7374_v63 = vld [vmem:[%s8051_s11 + $0x640] ss:$24 sps:$4 sm:$0xff]   ;;  %v7379_v1 = vld [vmem:[%s8051_s11 + $0x374] ss:$24 sps:$4 sm:$0xff]   ;;  %v7380_v8 = vld [vmem:[%s8051_s11 + $0x670] ss:$24 sps:$4 sm:$0xff]  }
 0x353   : > { %4863 = vmatpush1.bf16.msra.mxu0 %v7305_v9  ;;  %v7382_v3 = vld [vmem:[%s8051_s11 + $0x674] ss:$24 sps:$4 sm:$0xff]   ;;  %v7385_v9 = vld [vmem:[%s8051_s11 + $0x3a4] ss:$24 sps:$4 sm:$0xff]   ;;  %v7383_v49 = vld [vmem:[%s8051_s11 + $0x3a0] ss:$24 sps:$4 sm:$0xff]  }
 0x354   : > { %4904 = vmatpush1.bf16.msra.mxu1 %v7308_v13  ;;  %4864 = vmatprep.subr.bf16.mxu0 %v7313_v27  ;;  %v7388_v13 = vld [vmem:[%s8051_s11 + $0x6a4] ss:$24 sps:$4 sm:$0xff]   ;;  %v7394_v15 = vld [vmem:[%s8051_s11 + $0x6d4] ss:$24 sps:$4 sm:$0xff]   ;;  %v7389_v27 = vld [vmem:[%s8051_s11 + $0x3d0] ss:$24 sps:$4 sm:$0xff]  }
 0x355   : > { %4905 = vmatprep.subr.bf16.mxu1 %v7316_v37  ;;  %v7392_v37 = vld [vmem:[%s8051_s11 + $0x6d0] ss:$24 sps:$4 sm:$0xff]  }
 0x357   : > { %4865 = vmatpush1.bf16.msra.mxu0 %v7311_v6  ;;  %v7397_v6 = vld [vmem:[%s8051_s11 + $0x404] ss:$24 sps:$4 sm:$0xff]  }
 0x358   : > { %4906 = vmatpush1.bf16.msra.mxu1 %v7314_v18  ;;  %4866 = vmatprep.subr.bf16.mxu0 %v7319_v20  ;;  %v7400_v18 = vld [vmem:[%s8051_s11 + $0x704] ss:$24 sps:$4 sm:$0xff]   ;;  %v7395_v20 = vld [vmem:[%s8051_s11 + $0x400] ss:$24 sps:$4 sm:$0xff]  }
 0x359   : > { %4907 = vmatprep.subr.bf16.mxu1 %v7322_v25  ;;  %v7398_v25 = vld [vmem:[%s8051_s11 + $0x700] ss:$24 sps:$4 sm:$0xff]  }
 0x35b   : > { %4867 = vmatpush1.bf16.msra.mxu0 %v7317_v26  ;;  %v7403_v26 = vld [vmem:[%s8051_s11 + $0x434] ss:$24 sps:$4 sm:$0xff]  }
 0x35c   : > { %4908 = vmatpush1.bf16.msra.mxu1 %v7320_v5  ;;  %4868 = vmatprep.subr.bf16.mxu0 %v7325_v7  ;;  %v7406_v5 = vld [vmem:[%s8051_s11 + $0x734] ss:$24 sps:$4 sm:$0xff]  }
 0x35d   : > { %4909 = vmatprep.subr.bf16.mxu1 %v7328_v53 }
 0x35f   : > { %4869 = vmatpush1.bf16.msra.mxu0 %v7323_v28 }
 0x360   : > { %4910 = vmatpush1.bf16.msra.mxu1 %v7326_v57  ;;  %4870 = vmatprep.subr.bf16.mxu0 %v7331_v11 }
 0x361   : > { %4911 = vmatprep.subr.bf16.mxu1 %v7334_v36 }
 0x363   : > { %4871 = vmatpush1.bf16.msra.mxu0 %v7329_v29 }
 0x364   : > { %4912 = vmatpush1.bf16.msra.mxu1 %v7332_v30  ;;  %4872 = vmatprep.subr.bf16.mxu0 %v7337_v31 }
 0x365   : > { %4913 = vmatprep.subr.bf16.mxu1 %v7340_v32 }
 0x367   : > { %4873 = vmatpush1.bf16.msra.mxu0 %v7335_v51 }
 0x368   : > { %4914 = vmatpush1.bf16.msra.mxu1 %v7338_v56  ;;  %4874 = vmatprep.subr.bf16.mxu0 %v7343_v33  ;;  %v7412_v33 = vld [vmem:[%s8051_s11 + $0x764] ss:$24 sps:$4 sm:$0xff]  }
 0x369   : > { %4915 = vmatprep.subr.bf16.mxu1 %v7346_v34  ;;  %v7410_v34 = vld [vmem:[%s8051_s11 + $0x760] ss:$24 sps:$4 sm:$0xff]  }
 0x36b   : > { %4875 = vmatpush1.bf16.msra.mxu0 %v7341_v61  ;;  %v7415_v61 = vld [vmem:[%s8051_s11 + $0x494] ss:$24 sps:$4 sm:$0xff]  }
 0x36c   : > { %4916 = vmatpush1.bf16.msra.mxu1 %v7344_v35  ;;  %4876 = vmatprep.subr.bf16.mxu0 %v7349_v16  ;;  %v7418_v35 = vld [vmem:[%s8051_s11 + $0x794] ss:$24 sps:$4 sm:$0xff]   ;;  %v7413_v16 = vld [vmem:[%s8051_s11 + $0x490] ss:$24 sps:$4 sm:$0xff]  }
 0x36d   : > { %4917 = vmatprep.subr.bf16.mxu1 %v7352_v14  ;;  %v7416_v14 = vld [vmem:[%s8051_s11 + $0x790] ss:$24 sps:$4 sm:$0xff]  }
 0x36f   : > { %4877 = vmatpush1.bf16.msra.mxu0 %v7347_v38  ;;  %v7421_v38 = vld [vmem:[%s8051_s11 + $0x4c4] ss:$24 sps:$4 sm:$0xff]  }
 0x370   : > { %4918 = vmatpush1.bf16.msra.mxu1 %v7350_v40  ;;  %4878 = vmatprep.subr.bf16.mxu0 %v7355_v41  ;;  %v7424_v40 = vld [vmem:[%s8051_s11 + $0x7c4] ss:$24 sps:$4 sm:$0xff]   ;;  %v7419_v41 = vld [vmem:[%s8051_s11 + $0x4c0] ss:$24 sps:$4 sm:$0xff]  }
 0x371   : > { %4919 = vmatprep.subr.bf16.mxu1 %v7358_v43  ;;  %v7422_v43 = vld [vmem:[%s8051_s11 + $0x7c0] ss:$24 sps:$4 sm:$0xff]  }
 0x373   : > { %4879 = vmatpush1.bf16.msra.mxu0 %v7353_v45  ;;  %v7427_v45 = vld [vmem:[%s8051_s11 + $0x4f4] ss:$24 sps:$4 sm:$0xff]  }
 0x374   : > { %4920 = vmatpush1.bf16.msra.mxu1 %v7356_v39  ;;  %4880 = vmatprep.subr.bf16.mxu0 %v7361_v0  ;;  %v7430_v39 = vld [vmem:[%s8051_s11 + $0x7f4] ss:$24 sps:$4 sm:$0xff]   ;;  %v7425_v0 = vld [vmem:[%s8051_s11 + $0x4f0] ss:$24 sps:$4 sm:$0xff]  }
 0x375   : > { %4921 = vmatprep.subr.bf16.mxu1 %v7364_v23  ;;  %v7428_v23 = vld [vmem:[%s8051_s11 + $0x7f0] ss:$24 sps:$4 sm:$0xff]  }
 0x377   : > { %4881 = vmatpush1.bf16.msra.mxu0 %v7359_v21  ;;  %v7433_v21 = vld [vmem:[%s8051_s11 + $0x524] ss:$24 sps:$4 sm:$0xff]  }
 0x378   : > { %4922 = vmatpush1.bf16.msra.mxu1 %v7362_v50  ;;  %4932 = vmatprep.subr.bf16.mxu0 %v7367_v52  ;;  %v7436_v50 = vld [vmem:[%s8051_s11 + $0x824] ss:$24 sps:$4 sm:$0xff]   ;;  %v7431_v52 = vld [vmem:[%s8051_s11 + $0x520] ss:$24 sps:$4 sm:$0xff]  }
 0x379   : > { %4973 = vmatprep.subr.bf16.mxu1 %v7370_v54  ;;  %v7434_v54 = vld [vmem:[%s8051_s11 + $0x820] ss:$24 sps:$4 sm:$0xff]  }
 0x37a   : > { %4883 = vmatmul.mubr.bf16.vlgmr.msra.gmra.mrb[28].mxu0 %v8615_v12 }
 0x37b   : > { %4924 = vmatmul.mubr.bf16.vlgmr.msra.gmra.mrb[28].mxu1 %v8522_v44  ;;  %4933 = vmatpush1.bf16.msra.mxu0 %v7365_v4  ;;  %v7377_v44 = vld [vmem:[%s8051_s11 + $0x370] ss:$24 sps:$4 sm:$0xff]   ;;  %v7439_v4 = vld [vmem:[%s8051_s11 + $0x554] ss:$24 sps:$4 sm:$0xff]  }
 0x37c   : > { %4974 = vmatpush1.bf16.msra.mxu1 %v7368_v55  ;;  %4934 = vmatprep.subr.bf16.mxu0 %v7373_v58  ;;  %v7442_v55 = vld [vmem:[%s8051_s11 + $0x854] ss:$24 sps:$4 sm:$0xff]   ;;  %v7437_v58 = vld [vmem:[%s8051_s11 + $0x550] ss:$24 sps:$4 sm:$0xff]  }
 0x37d   : > { %4975 = vmatprep.subr.bf16.mxu1 %v7376_v59  ;;  %4964 = vmatprep.mubr.bf16.mxu0 %v8528_v47  ;;  %v7386_v47 = vld [vmem:[%s8051_s11 + $0x6a0] ss:$24 sps:$4 sm:$0xff]   ;;  %v7440_v59 = vld [vmem:[%s8051_s11 + $0x850] ss:$24 sps:$4 sm:$0xff]  }
 0x37e   : > { %5005 = vmatprep.mubr.bf16.mxu1 %v8531_v48  ;;  %v7391_v48 = vld [vmem:[%s8051_s11 + $0x3d4] ss:$24 sps:$4 sm:$0xff]  }
 0x37f   : > { %4935 = vmatpush1.bf16.msra.mxu0 %v7371_v60  ;;  %v7445_v60 = vld [vmem:[%s8051_s11 + $0x584] ss:$24 sps:$4 sm:$0xff]  }
 0x380   : > { %4976 = vmatpush1.bf16.msra.mxu1 %v7374_v63  ;;  %4936 = vmatprep.subr.bf16.mxu0 %v7379_v1  ;;  %v7448_v63 = vld [vmem:[%s8051_s11 + $0x884] ss:$24 sps:$4 sm:$0xff]   ;;  %v7443_v1 = vld [vmem:[%s8051_s11 + $0x580] ss:$24 sps:$4 sm:$0xff]  }
 0x381   : > { %4977 = vmatprep.subr.bf16.mxu1 %v7382_v3  ;;  %v7446_v3 = vld [vmem:[%s8051_s11 + $0x880] ss:$24 sps:$4 sm:$0xff]  }
 0x383   : > { %4937 = vmatpush1.bf16.msra.mxu0 %v7377_v44  ;;  %v7451_v44 = vld [vmem:[%s8051_s11 + $0x5b4] ss:$24 sps:$4 sm:$0xff]  }
 0x384   : > { %4978 = vmatpush1.bf16.msra.mxu1 %v7380_v8  ;;  %4938 = vmatprep.subr.bf16.mxu0 %v7385_v9  ;;  %v7454_v8 = vld [vmem:[%s8051_s11 + $0x8b4] ss:$24 sps:$4 sm:$0xff]   ;;  %v7449_v9 = vld [vmem:[%s8051_s11 + $0x5b0] ss:$24 sps:$4 sm:$0xff]  }
 0x385   : > { %4979 = vmatprep.subr.bf16.mxu1 %v7388_v13  ;;  %v7452_v13 = vld [vmem:[%s8051_s11 + $0x8b0] ss:$24 sps:$4 sm:$0xff]  }
 0x387   : > { %4939 = vmatpush1.bf16.msra.mxu0 %v7383_v49  ;;  %v7457_v49 = vld [vmem:[%s8051_s11 + $0x5e4] ss:$24 sps:$4 sm:$0xff]  }
 0x388   : > { %4980 = vmatpush1.bf16.msra.mxu1 %v7386_v47  ;;  %4940 = vmatprep.subr.bf16.mxu0 %v7391_v48  ;;  %v7460_v47 = vld [vmem:[%s8051_s11 + $0x8e4] ss:$24 sps:$4 sm:$0xff]   ;;  %v7455_v48 = vld [vmem:[%s8051_s11 + $0x5e0] ss:$24 sps:$4 sm:$0xff]  }
 0x389   : > { %4981 = vmatprep.subr.bf16.mxu1 %v7394_v15  ;;  %v7458_v15 = vld [vmem:[%s8051_s11 + $0x8e0] ss:$24 sps:$4 sm:$0xff]  }
 0x38b   : > { %4941 = vmatpush1.bf16.msra.mxu0 %v7389_v27  ;;  %v7461_v27 = vld [vmem:[%s8068_s15 + $0x40] sm:$0xff]  }
 0x38c   : > { %4982 = vmatpush1.bf16.msra.mxu1 %v7392_v37  ;;  %4942 = vmatprep.subr.bf16.mxu0 %v7397_v6  ;;  %v7477_v37 = vld [vmem:[%s8068_s15 + $0xc0] sm:$0xff]  }
 0x38d   : > { %4983 = vmatprep.subr.bf16.mxu1 %v7400_v18  ;;  %v3144_v7 = vpop.f32.mrb[16].mxu0  ;;  %v7462_v6 = vld [vmem:[%s8068_s15] sm:$0xff]  }
 0x38e   : > { %v4679_v53 = vpop.f32.mrb[16].mxu1  ;;  %v8790_v28 = vadd.f32 %v3144_v7, %v8717_v62  ;;  %v3146_v11 = vpop.f32.mrb[17].mxu0  ;;  %v7401_v62 = vld [vmem:[%s8051_s11 + $0x430] ss:$24 sps:$4 sm:$0xff]   ;;  %v7478_v18 = vld [vmem:[%s8068_s15 + $0x80] sm:$0xff]  }
 0x38f   : > { %v8793_v57 = vadd.f32 %v4679_v53, %v8562_v19  ;;  %v4681_v36 = vpop.f32.mrb[17].mxu1  ;;  %v8796_v29 = vadd.f32 %v3146_v11, %v8719_v2  ;;  %v3148_v31 = vpop.f32.mrb[18].mxu0  ;;  %4943 = vmatpush1.bf16.msra.mxu0 %v7395_v20  ;;  %v7404_v19 = vld [vmem:[%s8051_s11 + $0x730] ss:$24 sps:$4 sm:$0xff]   ;;  %v7409_v2 = vld [vmem:[%s8051_s11 + $0x464] ss:$24 sps:$4 sm:$0xff]  }
 0x390   : > { %v8799_v30 = vadd.f32 %v4681_v36, %v8567_v24  ;;  %v4683_v32 = vpop.f32.mrb[18].mxu1  ;;  %4984 = vmatpush1.bf16.msra.mxu1 %v7398_v25  ;;  %v3149_v51 = vpop.f32.mrb[19].mxu0  ;;  %4944 = vmatprep.subr.bf16.mxu0 %v7403_v26  ;;  %v7407_v24 = vld [vmem:[%s8051_s11 + $0x460] ss:$24 sps:$4 sm:$0xff]   ;;  %v7465_v7 = vld [vmem:[%s8068_s15 + $0x50] sm:$0xff]  }
 0x391   : > { %v4684_v56 = vpop.f32.mrb[19].mxu1  ;;  %4985 = vmatprep.subr.bf16.mxu1 %v7406_v5  ;;  %v7463_v20 = vld [vmem:[%s8068_s15 + $0x48] sm:$0xff]   ;;  %v7481_v53 = vld [vmem:[%s8068_s15 + $0xd0] sm:$0xff]   ;;  %v7469_v31 = vld [vmem:[%s8068_s15 + $0x60] sm:$0xff]  }
 0x392   : > { %v7479_v25 = vld [vmem:[%s8068_s15 + $0xc8] sm:$0xff]   ;;  %v7466_v11 = vld [vmem:[%s8068_s15 + $0x10] sm:$0xff]   ;;  %v7470_v32 = vld [vmem:[%s8068_s15 + $0x20] sm:$0xff]   ;;  %v5022_v56 = vsub.s32 1, %v8163_v22 }
 0x393   : > { %4945 = vmatpush1.bf16.msra.mxu0 %v7401_v62  ;;  %v7464_v26 = vld [vmem:[%s8068_s15 + $0x8] sm:$0xff]   ;;  %v7482_v36 = vld [vmem:[%s8068_s15 + $0x90] sm:$0xff]  }
 0x394   : > { %4986 = vmatpush1.bf16.msra.mxu1 %v7404_v19  ;;  %4946 = vmatprep.subr.bf16.mxu0 %v7409_v2  ;;  %v7480_v5 = vld [vmem:[%s8068_s15 + $0x88] sm:$0xff]   ;;  %v5018_v19 = vsub.s32 0, %v8163_v22 }
 0x395   : > { %4987 = vmatprep.subr.bf16.mxu1 %v7412_v33  ;;  %v7471_v62 = vld [vmem:[%s8068_s15 + $0x68] sm:$0xff]   ;;  %v7483_v33 = vld [vmem:[%s8068_s15 + $0xd8] sm:$0xff]  }
 0x396   : > { %v8861_v51 = vld [vmem:[%s355_s20] sm:$0x3f] }
 0x397   : > { %4947 = vmatpush1.bf16.msra.mxu0 %v7407_v24  ;;  %v7472_v2 = vld [vmem:[%s8068_s15 + $0x28] sm:$0xff]   ;;  %v7473_v24 = vld [vmem:[%s8068_s15 + $0x70] sm:$0xff]  }
 0x398   : > { %4988 = vmatpush1.bf16.msra.mxu1 %v7410_v34  ;;  %4948 = vmatprep.subr.bf16.mxu0 %v7415_v61  ;;  %v7484_v34 = vld [vmem:[%s8068_s15 + $0x98] sm:$0xff]  }
 0x399   : > { %4989 = vmatprep.subr.bf16.mxu1 %v7418_v35 }
 0x39b   : > { %4949 = vmatpush1.bf16.msra.mxu0 %v7413_v16 }
 0x39c   : > { %4990 = vmatpush1.bf16.msra.mxu1 %v7416_v14  ;;  %4950 = vmatprep.subr.bf16.mxu0 %v7421_v38  ;;  %v5019_v14 = vrot.slane %v8861_v51, %v5018_v19  ;;  %v7502_v19 = vld [vmem:[%s8068_s15 + $0x120] sm:$0xff]  }
 0x39d   : > { %4991 = vmatprep.subr.bf16.mxu1 %v7424_v40 }
 0x39f   : > { %4951 = vmatpush1.bf16.msra.mxu0 %v7419_v41 }
 0x3a0   : > { %4992 = vmatpush1.bf16.msra.mxu1 %v7422_v43  ;;  %4952 = vmatprep.subr.bf16.mxu0 %v7427_v45  ;;  %v5023_v43 = vrot.slane %v8861_v51, %v5022_v56  ;;  %v7503_v56 = vld [vmem:[%s8068_s15 + $0x168] sm:$0xff]  }
 0x3a1   : > { %4993 = vmatprep.subr.bf16.mxu1 %v7430_v39 }
 0x3a3   : > { %4953 = vmatpush1.bf16.msra.mxu0 %v7425_v0  ;;  %v7474_v0 = vld [vmem:[%s8068_s15 + $0x30] sm:$0xff]  }
 0x3a4   : > { %4994 = vmatpush1.bf16.msra.mxu1 %v7428_v23  ;;  %4954 = vmatprep.subr.bf16.mxu0 %v7433_v21  ;;  %v7485_v23 = vld [vmem:[%s8068_s15 + $0xe0] sm:$0xff]  }
 0x3a5   : > { %4995 = vmatprep.subr.bf16.mxu1 %v7436_v50 }
 0x3a7   : > { %4955 = vmatpush1.bf16.msra.mxu0 %v7431_v52  ;;  %v7475_v52 = vld [vmem:[%s8068_s15 + $0x78] sm:$0xff]  }
 0x3a8   : > { %4996 = vmatpush1.bf16.msra.mxu1 %v7434_v54  ;;  %4956 = vmatprep.subr.bf16.mxu0 %v7439_v4  ;;  %v7486_v54 = vld [vmem:[%s8068_s15 + $0xa0] sm:$0xff]  }
 0x3a9   : > { %4997 = vmatprep.subr.bf16.mxu1 %v7442_v55 }
 0x3ab   : > { %4957 = vmatpush1.bf16.msra.mxu0 %v7437_v58  ;;  %v7476_v58 = vld [vmem:[%s8068_s15 + $0x38] sm:$0xff]  }
 0x3ac   : > { %4998 = vmatpush1.bf16.msra.mxu1 %v7440_v59  ;;  %4958 = vmatprep.subr.bf16.mxu0 %v7445_v60  ;;  %v7487_v59 = vld [vmem:[%s8068_s15 + $0xe8] sm:$0xff]  }
 0x3ad   : > { %4999 = vmatprep.subr.bf16.mxu1 %v7448_v63  ;;  %v7488_v60 = vld [vmem:[%s8068_s15 + $0xa8] sm:$0xff]   ;;  %v7489_v63 = vld [vmem:[%s8068_s15 + $0xf0] sm:$0xff]  }
 0x3af   : > { %4959 = vmatpush1.bf16.msra.mxu0 %v7443_v1  ;;  %v7490_v1 = vld [vmem:[%s8068_s15 + $0xb0] sm:$0xff]  }
 0x3b0   : > { %5000 = vmatpush1.bf16.msra.mxu1 %v7446_v3  ;;  %4960 = vmatprep.subr.bf16.mxu0 %v7451_v44  ;;  %v7491_v3 = vld [vmem:[%s8068_s15 + $0xf8] sm:$0xff]  }
 0x3b1   : > { %5001 = vmatprep.subr.bf16.mxu1 %v7454_v8  ;;  %v7492_v44 = vld [vmem:[%s8068_s15 + $0xb8] sm:$0xff]  }
 0x3b3   : > { %4961 = vmatpush1.bf16.msra.mxu0 %v7449_v9 }
 0x3b4   : > { %5002 = vmatpush1.bf16.msra.mxu1 %v7452_v13  ;;  %4962 = vmatprep.subr.bf16.mxu0 %v7457_v49 }
 0x3b5   : > { %5003 = vmatprep.subr.bf16.mxu1 %v7460_v47  ;;  %v7493_v47 = vld [vmem:[%s8068_s15 + $0x140] sm:$0xff]  }
 0x3b7   : > { %4963 = vmatpush1.bf16.msra.mxu0 %v7455_v48  ;;  %v7494_v48 = vld [vmem:[%s8068_s15 + $0x100] sm:$0xff]  }
 0x3b8   : > { %5004 = vmatpush1.bf16.msra.mxu1 %v7458_v15  ;;  %6421 = vmatprep.subr.bf16.mxu0 %v7461_v27  ;;  %v7495_v15 = vld [vmem:[%s8068_s15 + $0x148] sm:$0xff]  }
 0x3b9   : > { %6443 = vmatprep.subr.bf16.mxu1 %v7477_v37  ;;  %v7496_v27 = vld [vmem:[%s8068_s15 + $0x108] sm:$0xff]   ;;  %v7497_v37 = vld [vmem:[%s8068_s15 + $0x150] sm:$0xff]  }
 0x3ba   : > { %4965 = vmatmul.mubr.bf16.vlgmr.msra.gmra.mrb[32].mxu0 %v8611_v10  ;;  %v7467_v10 = vld [vmem:[%s8068_s15 + $0x58] sm:$0xff]  }
 0x3bb   : > { %5006 = vmatmul.mubr.bf16.vlgmr.msra.gmra.mrb[32].mxu1 %v8615_v12  ;;  %6422 = vmatpush3.bf16.msra.mxu0 %v7462_v6  ;;  %v7468_v12 = vld [vmem:[%s8068_s15 + $0x18] sm:$0xff]   ;;  %v7498_v6 = vld [vmem:[%s8068_s15 + $0x110] sm:$0xff]  }
 0x3bc   : > { %6444 = vmatpush3.bf16.msra.mxu1 %v7478_v18  ;;  %6423 = vmatprep.subr.bf16.mxu0 %v7463_v20 }
 0x3bd   : > { %6445 = vmatprep.subr.bf16.mxu1 %v7479_v25  ;;  %v7499_v25 = vld [vmem:[%s8068_s15 + $0x158] sm:$0xff]  }
 0x3bf   : > { %6424 = vmatpush3.bf16.msra.mxu0 %v7464_v26 }
 0x3c0   : > { %6446 = vmatpush3.bf16.msra.mxu1 %v7480_v5  ;;  %6425 = vmatprep.subr.bf16.mxu0 %v7465_v7 }
 0x3c1   : > { %6447 = vmatprep.subr.bf16.mxu1 %v7481_v53  ;;  %v7500_v53 = vld [vmem:[%s8068_s15 + $0x118] sm:$0xff]  }
 0x3c3   : > { %6426 = vmatpush3.bf16.msra.mxu0 %v7466_v11 }
 0x3c4   : > { %6448 = vmatpush3.bf16.msra.mxu1 %v7482_v36  ;;  %6427 = vmatprep.subr.bf16.mxu0 %v7467_v10 }
 0x3c5   : > { %6449 = vmatprep.subr.bf16.mxu1 %v7483_v33  ;;  %v7506_v33 = vld [vmem:[%s8068_s15 + $0x130] sm:$0xff]  }
 0x3c7   : > { %6428 = vmatpush3.bf16.msra.mxu0 %v7468_v12 }
 0x3c8   : > { %6429 = vmatprep.subr.bf16.mxu0 %v7469_v31  ;;  %6450 = vmatpush3.bf16.msra.mxu1 %v7484_v34  ;;  %v7508_v34 = vld [vmem:[%s8068_s15 + $0x138] sm:$0xff]  }
 0x3c9   : > { %6451 = vmatprep.subr.bf16.mxu1 %v7485_v23 }
 0x3cb   : > { %6430 = vmatpush3.bf16.msra.mxu0 %v7470_v32 }
 0x3cc   : > { %6431 = vmatprep.subr.bf16.mxu0 %v7471_v62  ;;  %6452 = vmatpush3.bf16.msra.mxu1 %v7486_v54 }
 0x3cd   : > { %v4720_v61 = vpop.f32.mrb[20].mxu0  ;;  %6453 = vmatprep.subr.bf16.mxu1 %v7487_v59 }
 0x3ce   : > { %v4761_v35 = vpop.f32.mrb[20].mxu1  ;;  %v4721_v16 = vadd.f32 %v4720_v61, %v8793_v57  ;;  %v4722_v38 = vpop.f32.mrb[21].mxu0  ;;  %v5026_v61 = vsub.s32 2, %v8163_v22 }
 0x3cf   : > { %v4763_v40 = vpop.f32.mrb[21].mxu1  ;;  %v4723_v41 = vadd.f32 %v4722_v38, %v8799_v30  ;;  %v4724_v45 = vpop.f32.mrb[22].mxu0  ;;  %6432 = vmatpush3.bf16.msra.mxu0 %v7472_v2  ;;  %v7504_v2 = vld [vmem:[%s8068_s15 + $0x128] sm:$0xff]  }
 0x3d0   : > { %v4765_v39 = vpop.f32.mrb[22].mxu1  ;;  %v4762_v21 = vadd.f32 %v4761_v35, %v4721_v16  ;;  %v4725_v57 = vpop.f32.mrb[23].mxu0  ;;  %6433 = vmatprep.subr.bf16.mxu0 %v7473_v24  ;;  %6454 = vmatpush3.bf16.msra.mxu1 %v7488_v60  ;;  %v7507_v24 = vld [vmem:[%s8068_s15 + $0x178] sm:$0xff]   ;;  %v5030_v35 = vsub.s32 3, %v8163_v22  ;;  %v5027_v16 = vrot.slane %v8861_v51, %v5026_v61  ;;  %v5038_v60 = vsub.s32 5, %v8163_v22 }
 0x3d1   : > { %v4766_v50 = vpop.f32.mrb[23].mxu1  ;;  %v4764_v4 = vadd.f32 %v4763_v40, %v4723_v41  ;;  %6455 = vmatprep.subr.bf16.mxu1 %v7489_v63 }
 0x3d2   : > { %v5046_v30 = vadd.f32 %v5019_v14, %v4762_v21  ;;  %v5031_v40 = vrot.slane %v8861_v51, %v5030_v35  ;;  %v6413_v35 = vld [vmem:[#allocation13] ss:$0 sm:$0xff] (!%p6412_p2) }
 0x3d3   : > { %v5047_v55 = vadd.f32 %v5023_v43, %v4764_v4  ;;  %6434 = vmatpush3.bf16.msra.mxu0 %v7474_v0 }
 0x3d4   : > { %7509 = vtanh.f32 %v5046_v30  ;;  %6435 = vmatprep.subr.bf16.mxu0 %v7475_v52  ;;  %6456 = vmatpush3.bf16.msra.mxu1 %v7490_v1 }
 0x3d5   : > { %7511 = vtanh.f32 %v5047_v55  ;;  %6457 = vmatprep.subr.bf16.mxu1 %v7491_v3 }
 0x3d7   : > { %6436 = vmatpush3.bf16.msra.mxu0 %v7476_v58 }
 0x3d8   : > { %6458 = vmatpush3.bf16.msra.mxu1 %v7492_v44  ;;  %6465 = vmatprep.subr.bf16.mxu0 %v7493_v47 }
 0x3de   : > { %v7510_v8 = vpop.eup %7509 }
 0x3df   : > { %v7512_v9 = vpop.eup %7511  ;;  %v5059_v49 = vpack.c.bf16 %v7510_v8, %v7510_v8 }
 0x3e0   : > { %v5060_v13 = vpack.c.bf16 %v7512_v9, %v7512_v9 }
 0x3e2   : > { %5481 = vmatprep.mubr.bf16.mxu0 %v5060_v13  ;;  %v5039_v13 = vrot.slane %v8861_v51, %v5038_v60 }
 0x3e3   : > { %5482 = vmatmul.mubr.bf16.vlgmr.msra.gmra.mrb[36].mxu0 %v5059_v49 }
 0x3e4   : > { %6466 = vmatpush3.bf16.msra.mxu0 %v7494_v48 }
 0x3e5   : > { %6467 = vmatprep.subr.bf16.mxu0 %v7495_v15 }
 0x3e8   : > { %6468 = vmatpush3.bf16.msra.mxu0 %v7496_v27 }
 0x3e9   : > { %6469 = vmatprep.subr.bf16.mxu0 %v7497_v37 }
 0x3ec   : > { %6470 = vmatpush3.bf16.msra.mxu0 %v7498_v6 }
 0x3ed   : > { %6471 = vmatprep.subr.bf16.mxu0 %v7499_v25 }
 0x3f0   : > { %6472 = vmatpush3.bf16.msra.mxu0 %v7500_v53 }
 0x40d   : > { %v4802_v18 = vpop.f32.mrb[24].mxu0 }
 0x40e   : > { %v4843_v20 = vpop.f32.mrb[24].mxu1  ;;  %v4803_v26 = vadd.f32 %v4802_v18, %v8647_v42  ;;  %v4804_v5 = vpop.f32.mrb[25].mxu0  ;;  %v7501_v42 = vld [vmem:[%s8068_s15 + $0x160] sm:$0xff]  }
 0x40f   : > { %v4845_v7 = vpop.f32.mrb[25].mxu1  ;;  %v4805_v11 = vadd.f32 %v4804_v5, %v8651_v46  ;;  %v4806_v36 = vpop.f32.mrb[26].mxu0  ;;  %6473 = vmatprep.subr.bf16.mxu0 %v7501_v42  ;;  %v7505_v46 = vld [vmem:[%s8068_s15 + $0x170] sm:$0xff]  }
 0x410   : > { %v4847_v10 = vpop.f32.mrb[26].mxu1  ;;  %v4844_v12 = vadd.f32 %v4843_v20, %v4803_v26  ;;  %v4807_v31 = vpop.f32.mrb[27].mxu0  ;;  %6474 = vmatpush3.bf16.msra.mxu0 %v7502_v19 }
 0x411   : > { %v4848_v32 = vpop.f32.mrb[27].mxu1  ;;  %v4846_v62 = vadd.f32 %v4845_v7, %v4805_v11  ;;  %6475 = vmatprep.subr.bf16.mxu0 %v7503_v56 }
 0x414   : > { %6476 = vmatpush3.bf16.msra.mxu0 %v7504_v2 }
 0x415   : > { %6477 = vmatprep.subr.bf16.mxu0 %v7505_v46  ;;  %v5058_v46 = vld [vmem:[#allocation4] sm:$0x3] }
 0x418   : > { %6478 = vmatpush3.bf16.msra.mxu0 %v7506_v33 }
 0x419   : > { %6479 = vmatprep.subr.bf16.mxu0 %v7507_v24 }
 0x41c   : > { %6480 = vmatpush3.bf16.msra.mxu0 %v7508_v34 }
 0x44d   : > { %v4884_v14 = vpop.f32.mrb[28].mxu0 }
 0x44e   : > { %v4925_v38 = vpop.f32.mrb[28].mxu1  ;;  %v4885_v41 = vadd.f32 %v4884_v14, %v4844_v12  ;;  %v4886_v45 = vpop.f32.mrb[29].mxu0 }
 0x44f   : > { %v4926_v43 = vadd.f32 %v4925_v38, %v8790_v28  ;;  %v4927_v39 = vpop.f32.mrb[29].mxu1  ;;  %v4887_v0 = vadd.f32 %v4886_v45, %v4846_v62  ;;  %v4888_v21 = vpop.f32.mrb[30].mxu0  ;;  %v5034_v28 = vsub.s32 4, %v8163_v22  ;;  %v5602_v38 = vld [vmem:[%s8983_s6] sm:$0x3] (!%p6412_p2) }
 0x450   : > { %v4928_v23 = vadd.f32 %v4927_v39, %v8796_v29  ;;  %v4929_v57 = vpop.f32.mrb[30].mxu1  ;;  %v5048_v50 = vadd.f32 %v5027_v16, %v4885_v41  ;;  %v4889_v52 = vpop.f32.mrb[31].mxu0  ;;  %v5601_v21 = vand.u32 (!%p6412_p2), 127, %v1293_v17 }
 0x451   : > { %v4930_v54 = vpop.f32.mrb[31].mxu1  ;;  %v5049_v4 = vadd.f32 %v5031_v40, %v4887_v0  ;;  %v5035_v3 = vrot.slane %v8861_v51, %v5034_v28  ;;  %v7779_v40 = vmov (!%p6412_p2), 0  }
 0x452   : > { %7513 = vtanh.f32 %v5048_v50  ;;  %7521 = vset.pattern.permute.xlu1 (!%p6412_p2), %v7779_v40  ;;  %7522 = vset.pattern.permute.xlu0 (!%p6412_p2), %v7779_v40 }
 0x453   : > { %7515 = vtanh.f32 %v5049_v4  ;;  %5604 = vperm.xlu1 (!%p6412_p2), %7521, %v5602_v38  }
 0x45c   : > { %v7514_v30 = vpop.eup %7513 }
 0x45d   : > { %v7516_v55 = vpop.eup %7515  ;;  %v5061_v59 = vpack.c.bf16 %v7514_v30, %v7514_v30 }
 0x45e   : > { %v5062_v58 = vpack.c.bf16 %v7516_v55, %v7516_v55 }
 0x460   : > { %5521 = vmatprep.mubr.bf16.mxu1 %v5062_v58 }
 0x461   : > { %5522 = vmatmul.mubr.bf16.vlgmr.msra.gmra.mrb[36].mxu1 %v5061_v59 }
 0x48d   : > { %v4966_v63 = vpop.f32.mrb[32].mxu0 }
 0x48e   : > { %v5007_v29 = vpop.f32.mrb[32].mxu1  ;;  %v4967_v1 = vadd.f32 %v4966_v63, %v4926_v43  ;;  %v4968_v44 = vpop.f32.mrb[33].mxu0 }
 0x48f   : > { %v5009_v8 = vpop.f32.mrb[33].mxu1  ;;  %v4969_v9 = vadd.f32 %v4968_v44, %v4928_v23  ;;  %v4970_v49 = vpop.f32.mrb[34].mxu0 }
 0x490   : > { %v5011_v47 = vpop.f32.mrb[34].mxu1  ;;  %v5008_v48 = vadd.f32 %v5007_v29, %v4967_v1  ;;  %v4971_v15 = vpop.f32.mrb[35].mxu0 }
 0x491   : > { %v5012_v27 = vpop.f32.mrb[35].mxu1  ;;  %v5010_v37 = vadd.f32 %v5009_v8, %v4969_v9 }
 0x492   : > { %v5050_v6 = vadd.f32 %v5035_v3, %v5008_v48 }
 0x493   : > { %v5051_v18 = vadd.f32 %v5039_v13, %v5010_v37 }
 0x494   : > { %7517 = vtanh.f32 %v5050_v6 }
 0x495   : > { %7519 = vtanh.f32 %v5051_v18 }
 0x49e   : > { %v7518_v22 = vpop.eup %7517 }
 0x49f   : > { %v7520_v20 = vpop.eup %7519  ;;  %v5063_v26 = vpack.c.bf16 %v7518_v22, %v7518_v22 }
 0x4a0   : > { %v5064_v25 = vpack.c.bf16 %v7520_v20, %v7520_v20 }
 0x4a2   : > { %5561 = vmatprep.mubr.bf16.mxu0 %v5064_v25 }
 0x4a3   : > { %5562 = vmatmul.mubr.bf16.vlgmr.msra.gmra.mrb[40].mxu0 %v5063_v26 }
 0x4b6   : > { %v6437_v5 = vpop.f32.mrb[36].mxu0 }
 0x4b7   : > { %v6438_v7 = vpop.f32.mrb[37].mxu0 }
 0x4b8   : > { %v6439_v53 = vadd.f32 %v6438_v7, %v6437_v5  ;;  %v6440_v51 = vpop.f32.mrb[38].mxu0 }
 0x4b9   : > { %v6441_v11 = vpop.f32.mrb[39].mxu0 }
 0x4d2   : > { %v5605_v50 = vpop.permute.xlu1 (!%p6412_p2), %5604 }
 0x4d3   : > { %vm5606_vm3 = vcmp.eq.s32.totalorder (!%p6412_p2), %v5601_v21, %v5605_v50 }
 0x534   : > { %v6459_v36 = vpop.f32.mrb[36].mxu1 }
 0x535   : > { %v6460_v10 = vpop.f32.mrb[37].mxu1 }
 0x536   : > { %v6461_v12 = vadd.f32 %v6460_v10, %v6459_v36  ;;  %v6462_v31 = vpop.f32.mrb[38].mxu1 }
 0x537   : > { %v6463_v32 = vpop.f32.mrb[39].mxu1 }
 0x538   : > { %v5524_v62 = vadd.f32 %v6461_v12, %v6439_v53 }
 0x576   : > { %v6481_v42 = vpop.f32.mrb[40].mxu0 }
 0x577   : > { %v6482_v19 = vpop.f32.mrb[41].mxu0 }
 0x578   : > { %v6483_v56 = vadd.f32 %v6482_v19, %v6481_v42  ;;  %v6484_v2 = vpop.f32.mrb[42].mxu0  ;;  %5575 = sbr.rel (%p6412_p2) target bundleno = 2087 (0x827), region = 76 }
 0x579   : > { %v6485_v33 = vpop.f32.mrb[43].mxu0 }
 0x57a   : > { %v5564_v24 = vadd.f32 %v6483_v56, %v5524_v62 }
 0x57c   : > { %v5569_v34 = vadd.f32 %v5564_v24, %v5058_v46 }
 0x57e   : > { %5571 = vst.msk [vmem:[#allocation4] sm:$0x3] %vm5570_vm2, %v5569_v34 }
 0x585   : > { %v5576_v61 = vld [vmem:[#allocation4] sm:$0x3] }
 0x586   : > { %v5584_v16 = vadd.f32 %v6413_v35, %v5576_v61 }
 0x588   : > { %v5585_v14 = vsel %vm5570_vm2, %v5584_v16, -inf }
 0x589   : > { %5586 = vmax.xlane.f32.xlu0 %v5585_v14 }
 0x616   : > { %v5587_v41 = vpop.xlane.xlu0 %5586 }
 0x617   : > { %v5588_v43 = vsub.f32 %v5584_v16, %v5587_v41 }
 0x619   : > { %v5589_v45 = vmul.f32 1.442695, %v5588_v43 }
 0x61b   : > { %7523 = vpow2.f32 %v5589_v45 }
 0x625   : > { %v7524_v39 = vpop.eup %7523 }
 0x626   : > { %v5591_v0 = vsel %vm5570_vm2, %v7524_v39, 0.0 }
 0x627   : > { %5592 = vadd.xlane.f32.xlu0 %v5591_v0 }
 0x6b4   : > { %v5593_v23 = vpop.xlane.xlu0 %5592 }
 0x6b5   : > { %7525 = vrcp.f32 %v5593_v23 }
 0x6b6   : > { %7527 = vlog2.f32 %v5593_v23 }
 0x6bf   : > { %v7526_v57 = vpop.eup %7525 }
 0x6c0   : > { %v7528_v52 = vpop.eup %7527  ;;  %v5595_v54 = vmul.f32 %v7526_v57, %v7524_v39 }
 0x6c1   : > { %v5598_v4 = vmul.f32 0.6931472, %v7528_v52 }
 0x6c2   : > { %5596 = vst.msk [vmem:[#allocation14] sm:$0x3] %vm5570_vm2, %v5595_v54 }
 0x6c3   : > { %v5599_v30 = vsub.f32 %v5588_v43, %v5598_v4 }
 0x6c5   : > { %v5607_v55 = vsel %vm5606_vm3, %v5599_v30, 0.0 }
 0x6c6   : > { %v5608_v58 = vsel %vm5570_vm2, %v5607_v55, 0.0 }
 0x6c7   : > { %5609 = vadd.xlane.f32.xlu1 %v5608_v58 }
 0x754   : > { %v5610_v59 = vpop.xlane.xlu1 %5609 }
 0x755   : > { %v5611_v28 = vsub.f32 0.0, %v5610_v59 }
 0x757   : > { %v5613_v60 = vsel %vm5612_vm4, %v5611_v28, 0.0 }
 0x758   : > { %5614 = vadd.xlane.f32.xlu0 %v5613_v60 }
 0x7e5   : > { %v5615_v63 = vpop.xlane.xlu0 %5614 }
 0x7e6   : > { %v5616_v17 = vrot.slane %v5615_v63, 4 }
 0x7e8   : > { %v5617_v29 = vadd.f32 %v5616_v17, %v5615_v63 }
 0x7ea   : > { %v5618_v1 = vrot.slane %v5617_v29, 2 }
 0x7ec   : > { %v5619_v3 = vadd.f32 %v5618_v1, %v5617_v29 }
 0x7ee   : > { %v5620_v44 = vrot.slane %v5619_v3, 1 }
 0x7f0   : > { %v5621_v8 = vadd.f32 %v5620_v44, %v5619_v3 }
 0x7f2   : > { %6492 = vpush %v5621_v8 }
 0x823   : > { %s6493_s17 = spop %6492 }
 0x824   : > { %s5625_s1 = smul.f32 0.5, %s6493_s17 }
 0x826   : > { %5627 = sst [smem:[#allocation15]] %s5625_s1 }
 0x827 PF: > { %p6542_p6 = scmp.eq.s32.totalorder %s7846_s9, 1  ;;  %s7780_s2 = smov [#allocation14]  }
 0x828   : > { %s5635_s18 = sshll.u32 %s7780_s2, 4  ;;  %s5636_s18 = int_to_ptr.vmem [resolvable:$true] %s5635_s18 }
 0x829   : > { %s7673_s12 = scalar_lea.vmem %s5636_s18, 32  ;;  %p7680_p5 = scmp.lt.s32.totalorder %s5636_s18, %s5636_s18 }
 0x82a   : > { %p7674_p11 = scmp.ne.s32.totalorder %s5636_s18, %s7673_s12  ;;  %p7681_p1 = scmp.lt.s32.totalorder %s7673_s12, %s7673_s12 }
 0x82c   : > { %p7675_p12 = pnand %p7674_p11, %p6542_p6  ;;  %p7682_p8 = por %p7681_p1, %p7680_p5 }
 0x82e   : > { %p7676_p7 = pneg %p7675_p12 }
 0x830   : > { %p7683_p10 = pnand %p7682_p8, %p7676_p7 }
 0x832   : > { %7686 = shalt.err (!%p7683_p10)
}
 0x833   : > { %s7687_s0 = scalar_lea.hbm %s8984_s7, 32 }
 0x834   : > { %p7688_p3 = scmp.ne.s32.totalorder %s8984_s7, %s7687_s0  ;;  %p7693_p9 = scmp.lt.u32.totalorder %s7687_s0, %s8984_s7 }
 0x836   : > { %p7689_p0 = pnand %p7688_p3, %p6542_p6 }
 0x838   : > { %p7690_p4 = pneg %p7689_p0 }
 0x83a   : > { %p7695_p13 = pnand %p7693_p9, %p7690_p4 }
 0x83c   : > { %7698 = shalt.err (!%p7695_p13)
}
 0x83d   : > { %6511 = dma.vmem_to_hbm [thread:$0]  (%p6542_p6), %s5636_s18, 32, %s8984_s7, [#allocation7]  }
 0x83e   : > { %s7699_s24 = scalar_lea.hbm %s8985_s8, 16 }
 0x83f   : > { %p7700_p2 = scmp.ne.s32.totalorder %s8985_s8, %s7699_s24  ;;  %p7705_p7 = scmp.lt.u32.totalorder %s7699_s24, %s8985_s8 }
 0x841   : > { %p7701_p11 = pnand %p7700_p2, %p6542_p6 }
 0x843   : > { %p7702_p12 = pneg %p7701_p11 }
 0x845   : > { %p7707_p5 = pnand %p7705_p7, %p7702_p12 }
 0x847   : > { %7710 = shalt.err (!%p7707_p5)
}
 0x848   : > { %s7781_s1 = smov [#allocation15]  }
 0x849   : > { %6513 = dma.smem_to_hbm (%p6542_p6), %s7781_s1, 16, %s8985_s8, [#allocation8]  }
 0x84a   : > { %7744 = dma.done.wait (%p6542_p6), [#allocation7], 32  }
 0x84b   : > { %7746 = vsyncadd (%p6542_p6), [#allocation7], 4294967264 }
 0x84c   : > { %7748 = dma.done.wait (%p6542_p6), [#allocation8], 16  }
 0x84d   : > { %7750 = vsyncadd (%p6542_p6), [#allocation8], 4294967280 }
 0x84e   : > { %5656 = sfence }
 0x84f PF: > { %p20_p1 = scmp.ge.s32.totalorder %s7849_s10, 4   ;;  %s9017_s27 = smov %s7757_s28 }
 0x850   : > { %s9018_s28 = smov %s7761_s29  ;;  %s9019_s29 = smov %s7859_s13 }
 0x851   : > { %s9020_s30 = smov %s7849_s10  ;;  %22 = sbr.rel (!%p20_p1) target bundleno = 9 (0x9), region = 128 }
 0x858   :  { %5662 = vsyncpa [#allocation6], 1 }
 0x859   :  { %5664 = vsyncpa [#allocation6 + $0x1], 1 }
 0x85a   :  { %5665 = vsyncpa [#allocation10], 1 }
 0x85b   :  { %5666 = vsyncpa [#allocation7], 1 }
 0x85c   :  { %5668 = vsyncpa [#allocation7 + $0x1], 1 }
 0x85d   :  { %5669 = vsyncpa [#allocation8], 1 }
 0x85e   :  { %5671 = vsyncpa [#allocation8 + $0x1], 1 }

</bundles_post_ra>
